<compile_context>
chip_gen: v7x
topology: tpu7x:2x2x1
jax: 0.10.0
libtpu: 0.0.40
codegen_flags: <defaults>
</compile_context>

<pallas_src>
import functools

import jax
import jax.numpy as jnp
from jax.experimental import pallas as pl
from jax.experimental.pallas import tpu as pltpu

BOTTLENECK = 10               # d
IN_DIM = 28 * 28              # 784
HID = 256
D2 = BOTTLENECK * BOTTLENECK  # 100
D2_PAD = 128                  # pad 100-wide hidden dims to a full 128-lane width


def _autoencoder_kernel(x_ref,
                        w1_ref, b1_ref,
                        w2_ref, b2_ref,
                        w34_ref, b34_ref,
                        w5_ref, b5_ref,
                        w6_ref, b6_ref,
                        out_ref):
    """One (TB, 784) batch tile; all weights are VMEM-resident across grid steps."""
    x = x_ref[...]

    # encoder: Linear(784,256) + ReLU
    h = jnp.dot(x, w1_ref[...], preferred_element_type=jnp.float32) + b1_ref[...]
    h = jnp.maximum(h, 0.0)
    # encoder: Linear(256,100->padded 128) + ReLU (padded lanes stay exactly 0)
    h = jnp.dot(h, w2_ref[...], preferred_element_type=jnp.float32) + b2_ref[...]
    h = jnp.maximum(h, 0.0)
    # folded Linear(100,10) @ Linear(10,100) (no activation between them in the module) + ReLU
    h = jnp.dot(h, w34_ref[...], preferred_element_type=jnp.float32) + b34_ref[...]
    h = jnp.maximum(h, 0.0)
    # decoder: Linear(100->padded 128, 256) + ReLU
    h = jnp.dot(h, w5_ref[...], preferred_element_type=jnp.float32) + b5_ref[...]
    h = jnp.maximum(h, 0.0)
    # decoder: Linear(256,784) + Sigmoid
    logits = jnp.dot(h, w6_ref[...], preferred_element_type=jnp.float32) + b6_ref[...]
    out_ref[...] = jax.nn.sigmoid(logits)


def _prepare_params(params):
    """Fold the bottleneck pair and zero-pad 100-wide dims to 128 (exact, padded cols are zero)."""
    (w1, b1), (w2, b2), (w3, b3), (w4, b4), (w5, b5), (w6, b6) = params
    # No nonlinearity between encoder Linear(100,10) and decoder Linear(10,100) -> fold.
    w34 = w3 @ w4                 # (100, 100)
    b34 = b3 @ w4 + b4            # (1, 100)
    pad = D2_PAD - D2
    w2p = jnp.pad(w2, ((0, 0), (0, pad)))          # (256, 128)
    b2p = jnp.pad(b2, ((0, 0), (0, pad)))          # (1, 128)
    w34p = jnp.pad(w34, ((0, pad), (0, pad)))      # (128, 128)
    b34p = jnp.pad(b34, ((0, 0), (0, pad)))        # (1, 128)
    w5p = jnp.pad(w5, ((0, pad), (0, 0)))          # (128, 256)
    return (w1, b1, w2p, b2p, w34p, b34p, w5p, b5, w6, b6)


@functools.partial(jax.jit, static_argnames=("tb",))
def autoencoder_forward(x, params, *, tb=256):
    """x: (B, 784) float32. params: list of (W, b) with W (in, out), b (1, out)."""
    assert tb % 8 == 0, "batch tile must be a multiple of 8 sublanes"
    B = x.shape[0]
    n_tiles = pl.cdiv(B, tb)
    Bp = n_tiles * tb
    if Bp != B:
        x = jnp.pad(x, ((0, Bp - B), (0, 0)))

    flat = _prepare_params(params)

    x_spec = pl.BlockSpec((tb, IN_DIM), lambda i: (i, 0))
    out_spec = pl.BlockSpec((tb, IN_DIM), lambda i: (i, 0))
    # Constant block index => weights/biases stay resident in VMEM across all grid steps.
    w_specs = [pl.BlockSpec(a.shape, lambda i: (0, 0)) for a in flat]

    flops = 2 * Bp * (IN_DIM * HID + HID * D2_PAD + D2_PAD * D2_PAD
                      + D2_PAD * HID + HID * IN_DIM)
    weight_bytes = sum(int(a.size) * a.dtype.itemsize for a in flat)
    bytes_accessed = 2 * Bp * IN_DIM * 4 + weight_bytes   # x in + out + weights (loaded once)

    out = pl.pallas_call(
        _autoencoder_kernel,
        out_shape=jax.ShapeDtypeStruct((Bp, IN_DIM), jnp.float32),
        grid_spec=pltpu.PrefetchScalarGridSpec(
            num_scalar_prefetch=0,
            grid=(n_tiles,),
            in_specs=[x_spec] + w_specs,
            out_specs=out_spec,
        ),
        compiler_params=pltpu.CompilerParams(
            dimension_semantics=("parallel",)),
        cost_estimate=pl.CostEstimate(
            flops=flops,
            transcendentals=Bp * IN_DIM,
            bytes_accessed=bytes_accessed),
    )(x, *flat)

    return out[:B]


def make_params(key):
    """Deterministic synthetic parameters matching the nn.Linear shapes."""
    dims = [
        (IN_DIM, HID),       # encoder Linear(784, 256)
        (HID, D2),           # encoder Linear(256, d**2)
        (D2, BOTTLENECK),    # encoder Linear(d**2, d)
        (BOTTLENECK, D2),    # decoder Linear(d, d**2)
        (D2, HID),           # decoder Linear(d**2, 256)
        (HID, IN_DIM),       # decoder Linear(256, 784)
    ]
    params = []
    for (fan_in, fan_out) in dims:
        key, kw, kb = jax.random.split(key, 3)
        bound = 1.0 / jnp.sqrt(fan_in)
        w = jax.random.uniform(kw, (fan_in, fan_out), jnp.float32, -bound, bound)
        b = jax.random.uniform(kb, (1, fan_out), jnp.float32, -bound, bound)
        params.append((w, b))
    return params


def reference_forward(x, params):
    """Pure-JAX reference (unfolded, unpadded) for a sanity check."""
    (w1, b1), (w2, b2), (w3, b3), (w4, b4), (w5, b5), (w6, b6) = params
    h = jnp.maximum(x @ w1 + b1, 0.0)
    h = jnp.maximum(h @ w2 + b2, 0.0)
    z = h @ w3 + b3
    h = jnp.maximum(z @ w4 + b4, 0.0)
    h = jnp.maximum(h @ w5 + b5, 0.0)
    return jax.nn.sigmoid(h @ w6 + b6)


if __name__ == "__main__":
    key = jax.random.PRNGKey(0)
    key, kx = jax.random.split(key)

    # Small test shapes: B=200 with a TB=128 tile exercises batch tiling (2 grid steps),
    # tail-tile padding, and weight residency across grid steps.
    B = 200
    x = jax.random.uniform(kx, (B, IN_DIM), jnp.float32)  # MNIST-like pixels in [0, 1)

    params = make_params(key)

    out = autoencoder_forward(x, params, tb=128)
    out = jax.block_until_ready(out)

    ref = reference_forward(x, params)
    assert out.shape == (B, IN_DIM)
    # Folding W3@W4 reorders the f32 accumulation, so allow a slightly looser tolerance than 1e-5.
    assert jnp.allclose(out, ref, atol=1e-4, rtol=1e-4), "mismatch vs reference"

    print("KERNEL_OK")
</pallas_src>

<mosaic_0001>
module attributes {stable_mosaic.version = 11 : i64} {
  func.func @_autoencoder_kernel(%arg0: i32, %arg1: memref<128x784xf32, #tpu.memory_space<vmem>>, %arg2: memref<784x256xf32, #tpu.memory_space<vmem>>, %arg3: memref<1x256xf32, #tpu.memory_space<vmem>>, %arg4: memref<256x128xf32, #tpu.memory_space<vmem>>, %arg5: memref<1x128xf32, #tpu.memory_space<vmem>>, %arg6: memref<128x128xf32, #tpu.memory_space<vmem>>, %arg7: memref<1x128xf32, #tpu.memory_space<vmem>>, %arg8: memref<128x256xf32, #tpu.memory_space<vmem>>, %arg9: memref<1x256xf32, #tpu.memory_space<vmem>>, %arg10: memref<256x784xf32, #tpu.memory_space<vmem>>, %arg11: memref<1x784xf32, #tpu.memory_space<vmem>>, %arg12: memref<128x784xf32, #tpu.memory_space<vmem>>) attributes {dimension_semantics = [#tpu.dimension_semantics<parallel>], iteration_bounds = array<i64: 2>, scalar_prefetch = 0 : i64, scratch_operands = 0 : i64, tpu.core_type = #tpu.core_type<tc>, window_params = [{transform_indices = @transform_0, window_bounds = array<i64: 128, 784>}, {pipeline_mode = #tpu.pipeline_mode<synchronous>, transform_indices = @transform_1, window_bounds = array<i64: 784, 256>}, {pipeline_mode = #tpu.pipeline_mode<synchronous>, transform_indices = @transform_2, window_bounds = array<i64: 1, 256>}, {pipeline_mode = #tpu.pipeline_mode<synchronous>, transform_indices = @transform_3, window_bounds = array<i64: 256, 128>}, {pipeline_mode = #tpu.pipeline_mode<synchronous>, transform_indices = @transform_4, window_bounds = array<i64: 1, 128>}, {pipeline_mode = #tpu.pipeline_mode<synchronous>, transform_indices = @transform_5, window_bounds = array<i64: 128, 128>}, {pipeline_mode = #tpu.pipeline_mode<synchronous>, transform_indices = @transform_6, window_bounds = array<i64: 1, 128>}, {pipeline_mode = #tpu.pipeline_mode<synchronous>, transform_indices = @transform_7, window_bounds = array<i64: 128, 256>}, {pipeline_mode = #tpu.pipeline_mode<synchronous>, transform_indices = @transform_8, window_bounds = array<i64: 1, 256>}, {pipeline_mode = #tpu.pipeline_mode<synchronous>, transform_indices = @transform_9, window_bounds = array<i64: 256, 784>}, {pipeline_mode = #tpu.pipeline_mode<synchronous>, transform_indices = @transform_10, window_bounds = array<i64: 1, 784>}, {transform_indices = @transform_11, window_bounds = array<i64: 128, 784>}]} {
    %c0 = arith.constant 0 : index
    %c0_0 = arith.constant 0 : index
    %0 = vector.load %arg1[%c0, %c0_0] : memref<128x784xf32, #tpu.memory_space<vmem>>, vector<128x784xf32>
    %c0_1 = arith.constant 0 : index
    %c0_2 = arith.constant 0 : index
    %1 = vector.load %arg2[%c0_1, %c0_2] : memref<784x256xf32, #tpu.memory_space<vmem>>, vector<784x256xf32>
    %cst = arith.constant dense<0.000000e+00> : vector<128x256xf32>
    %2 = tpu.matmul %0, %1, %cst {dimension_numbers = #tpu.dot_dimension_numbers<[1], [0], [0], [1], [0, 0, 1, 1], [], []>} : vector<128x784xf32>, vector<784x256xf32>, vector<128x256xf32> -> vector<128x256xf32>
    %c0_3 = arith.constant 0 : index
    %c0_4 = arith.constant 0 : index
    %3 = vector.load %arg3[%c0_3, %c0_4] : memref<1x256xf32, #tpu.memory_space<vmem>>, vector<1x256xf32>
    %4 = vector.broadcast %3 : vector<1x256xf32> to vector<128x256xf32>
    %5 = arith.addf %2, %4 : vector<128x256xf32>
    %cst_5 = arith.constant 0.000000e+00 : f32
    %6 = vector.broadcast %cst_5 : f32 to vector<128x256xf32>
    %7 = arith.maximumf %5, %6 : vector<128x256xf32>
    %c0_6 = arith.constant 0 : index
    %c0_7 = arith.constant 0 : index
    %8 = vector.load %arg4[%c0_6, %c0_7] : memref<256x128xf32, #tpu.memory_space<vmem>>, vector<256x128xf32>
    %cst_8 = arith.constant dense<0.000000e+00> : vector<128x128xf32>
    %9 = tpu.matmul %7, %8, %cst_8 {dimension_numbers = #tpu.dot_dimension_numbers<[1], [0], [0], [1], [0, 0, 1, 1], [], []>} : vector<128x256xf32>, vector<256x128xf32>, vector<128x128xf32> -> vector<128x128xf32>
    %c0_9 = arith.constant 0 : index
    %c0_10 = arith.constant 0 : index
    %10 = vector.load %arg5[%c0_9, %c0_10] : memref<1x128xf32, #tpu.memory_space<vmem>>, vector<1x128xf32>
    %11 = vector.broadcast %10 : vector<1x128xf32> to vector<128x128xf32>
    %12 = arith.addf %9, %11 : vector<128x128xf32>
    %cst_11 = arith.constant 0.000000e+00 : f32
    %13 = vector.broadcast %cst_11 : f32 to vector<128x128xf32>
    %14 = arith.maximumf %12, %13 : vector<128x128xf32>
    %c0_12 = arith.constant 0 : index
    %c0_13 = arith.constant 0 : index
    %15 = vector.load %arg6[%c0_12, %c0_13] : memref<128x128xf32, #tpu.memory_space<vmem>>, vector<128x128xf32>
    %cst_14 = arith.constant dense<0.000000e+00> : vector<128x128xf32>
    %16 = tpu.matmul %14, %15, %cst_14 {dimension_numbers = #tpu.dot_dimension_numbers<[1], [0], [0], [1], [0, 0, 1, 1], [], []>} : vector<128x128xf32>, vector<128x128xf32>, vector<128x128xf32> -> vector<128x128xf32>
    %c0_15 = arith.constant 0 : index
    %c0_16 = arith.constant 0 : index
    %17 = vector.load %arg7[%c0_15, %c0_16] : memref<1x128xf32, #tpu.memory_space<vmem>>, vector<1x128xf32>
    %18 = vector.broadcast %17 : vector<1x128xf32> to vector<128x128xf32>
    %19 = arith.addf %16, %18 : vector<128x128xf32>
    %cst_17 = arith.constant 0.000000e+00 : f32
    %20 = vector.broadcast %cst_17 : f32 to vector<128x128xf32>
    %21 = arith.maximumf %19, %20 : vector<128x128xf32>
    %c0_18 = arith.constant 0 : index
    %c0_19 = arith.constant 0 : index
    %22 = vector.load %arg8[%c0_18, %c0_19] : memref<128x256xf32, #tpu.memory_space<vmem>>, vector<128x256xf32>
    %cst_20 = arith.constant dense<0.000000e+00> : vector<128x256xf32>
    %23 = tpu.matmul %21, %22, %cst_20 {dimension_numbers = #tpu.dot_dimension_numbers<[1], [0], [0], [1], [0, 0, 1, 1], [], []>} : vector<128x128xf32>, vector<128x256xf32>, vector<128x256xf32> -> vector<128x256xf32>
    %c0_21 = arith.constant 0 : index
    %c0_22 = arith.constant 0 : index
    %24 = vector.load %arg9[%c0_21, %c0_22] : memref<1x256xf32, #tpu.memory_space<vmem>>, vector<1x256xf32>
    %25 = vector.broadcast %24 : vector<1x256xf32> to vector<128x256xf32>
    %26 = arith.addf %23, %25 : vector<128x256xf32>
    %cst_23 = arith.constant 0.000000e+00 : f32
    %27 = vector.broadcast %cst_23 : f32 to vector<128x256xf32>
    %28 = arith.maximumf %26, %27 : vector<128x256xf32>
    %c0_24 = arith.constant 0 : index
    %c0_25 = arith.constant 0 : index
    %29 = vector.load %arg10[%c0_24, %c0_25] : memref<256x784xf32, #tpu.memory_space<vmem>>, vector<256x784xf32>
    %cst_26 = arith.constant dense<0.000000e+00> : vector<128x784xf32>
    %30 = tpu.matmul %28, %29, %cst_26 {dimension_numbers = #tpu.dot_dimension_numbers<[1], [0], [0], [1], [0, 0, 1, 1], [], []>} : vector<128x256xf32>, vector<256x784xf32>, vector<128x784xf32> -> vector<128x784xf32>
    %c0_27 = arith.constant 0 : index
    %c0_28 = arith.constant 0 : index
    %31 = vector.load %arg11[%c0_27, %c0_28] : memref<1x784xf32, #tpu.memory_space<vmem>>, vector<1x784xf32>
    %32 = vector.broadcast %31 : vector<1x784xf32> to vector<128x784xf32>
    %33 = arith.addf %30, %32 : vector<128x784xf32>
    %34 = arith.negf %33 : vector<128x784xf32>
    %35 = math.exp %34 : vector<128x784xf32>
    %cst_29 = arith.constant 1.000000e+00 : f32
    %36 = vector.broadcast %cst_29 : f32 to vector<128x784xf32>
    %37 = arith.addf %36, %35 : vector<128x784xf32>
    %38 = arith.divf %36, %37 : vector<128x784xf32>
    %c0_30 = arith.constant 0 : index
    %c0_31 = arith.constant 0 : index
    %39 = vector.load %arg12[%c0_30, %c0_31] : memref<128x784xf32, #tpu.memory_space<vmem>>, vector<128x784xf32>
    tpu.vector_store %arg12[%c0_30, %c0_31], %38 {strides = array<i32>} : memref<128x784xf32, #tpu.memory_space<vmem>>, vector<128x784xf32>,
    return
  }
  func.func @transform_0(%arg0: i32) -> (i32, i32) {
    %c0_i32 = arith.constant 0 : i32
    %c0_i32_0 = arith.constant 0 : i32
    return %arg0, %c0_i32 : i32, i32
  }
  func.func @transform_1(%arg0: i32) -> (i32, i32) {
    %c0_i32 = arith.constant 0 : i32
    %c0_i32_0 = arith.constant 0 : i32
    %c0_i32_1 = arith.constant 0 : i32
    return %c0_i32, %c0_i32_0 : i32, i32
  }
  func.func @transform_2(%arg0: i32) -> (i32, i32) {
    %c0_i32 = arith.constant 0 : i32
    %c0_i32_0 = arith.constant 0 : i32
    %c0_i32_1 = arith.constant 0 : i32
    return %c0_i32, %c0_i32_0 : i32, i32
  }
  func.func @transform_3(%arg0: i32) -> (i32, i32) {
    %c0_i32 = arith.constant 0 : i32
    %c0_i32_0 = arith.constant 0 : i32
    %c0_i32_1 = arith.constant 0 : i32
    return %c0_i32, %c0_i32_0 : i32, i32
  }
  func.func @transform_4(%arg0: i32) -> (i32, i32) {
    %c0_i32 = arith.constant 0 : i32
    %c0_i32_0 = arith.constant 0 : i32
    %c0_i32_1 = arith.constant 0 : i32
    return %c0_i32, %c0_i32_0 : i32, i32
  }
  func.func @transform_5(%arg0: i32) -> (i32, i32) {
    %c0_i32 = arith.constant 0 : i32
    %c0_i32_0 = arith.constant 0 : i32
    %c0_i32_1 = arith.constant 0 : i32
    return %c0_i32, %c0_i32_0 : i32, i32
  }
  func.func @transform_6(%arg0: i32) -> (i32, i32) {
    %c0_i32 = arith.constant 0 : i32
    %c0_i32_0 = arith.constant 0 : i32
    %c0_i32_1 = arith.constant 0 : i32
    return %c0_i32, %c0_i32_0 : i32, i32
  }
  func.func @transform_7(%arg0: i32) -> (i32, i32) {
    %c0_i32 = arith.constant 0 : i32
    %c0_i32_0 = arith.constant 0 : i32
    %c0_i32_1 = arith.constant 0 : i32
    return %c0_i32, %c0_i32_0 : i32, i32
  }
  func.func @transform_8(%arg0: i32) -> (i32, i32) {
    %c0_i32 = arith.constant 0 : i32
    %c0_i32_0 = arith.constant 0 : i32
    %c0_i32_1 = arith.constant 0 : i32
    return %c0_i32, %c0_i32_0 : i32, i32
  }
  func.func @transform_9(%arg0: i32) -> (i32, i32) {
    %c0_i32 = arith.constant 0 : i32
    %c0_i32_0 = arith.constant 0 : i32
    %c0_i32_1 = arith.constant 0 : i32
    return %c0_i32, %c0_i32_0 : i32, i32
  }
  func.func @transform_10(%arg0: i32) -> (i32, i32) {
    %c0_i32 = arith.constant 0 : i32
    %c0_i32_0 = arith.constant 0 : i32
    %c0_i32_1 = arith.constant 0 : i32
    return %c0_i32, %c0_i32_0 : i32, i32
  }
  func.func @transform_11(%arg0: i32) -> (i32, i32) {
    %c0_i32 = arith.constant 0 : i32
    %c0_i32_0 = arith.constant 0 : i32
    return %arg0, %c0_i32 : i32, i32
  }
}

</mosaic_0001>

<bundles_post_ra>
// kernel: autoencoder_forward.1
= control target key start
LH: loop header
LB: loop body
LE: loop exit
PB: predicated region body
PF: predicated region fallthrough
CT: control target
= control target key end

     0   :  { %s5353_s17 = smov 0   ;;  %s7901_s0 = inlined_call_operand.vmem [shape: f32[256,784], index: 0, kind: input, shape index: {}]   ;;  %s7902_s1 = inlined_call_operand.vmem [shape: f32[784,256], index: 1, kind: input, shape index: {}]   ;;  %s7903_s2 = inlined_call_operand.vmem [shape: f32[1,256], index: 2, kind: input, shape index: {}]   ;;  %s7904_s3 = inlined_call_operand.vmem [shape: f32[256,128], index: 3, kind: input, shape index: {}]   ;;  %s7905_s4 = inlined_call_operand.vmem [shape: f32[1,128], index: 4, kind: input, shape index: {}]   ;;  %s7906_s5 = inlined_call_operand.vmem [shape: f32[128,128], index: 5, kind: input, shape index: {}]   ;;  %s7907_s6 = inlined_call_operand.vmem [shape: f32[1,128], index: 6, kind: input, shape index: {}]   ;;  %s7908_s7 = inlined_call_operand.vmem [shape: f32[128,256], index: 7, kind: input, shape index: {}]   ;;  %s7909_s8 = inlined_call_operand.vmem [shape: f32[1,256], index: 8, kind: input, shape index: {}]   ;;  %s7910_s9 = inlined_call_operand.vmem [shape: f32[256,784], index: 9, kind: input, shape index: {}]   ;;  %s7911_s10 = inlined_call_operand.vmem [shape: f32[1,784], index: 10, kind: input, shape index: {}]   ;;  %s7912_s11 = inlined_call_operand.vmem [shape: f32[256,784], index: 11, kind: output, shape index: {}]  }
   0x1 LB: > { %s3792_s18 = sadd.s32 4294967295, %s5290_s17   ;;  %p3796_p0 = scmp.ge.s32.totalorder %s5290_s17, 1  ;;  %s5290_s17 = sphi %s5353_s17, %s21_s17  }
   0x2   : > { %p339_p1 = scmp.lt.s32.totalorder %s5290_s17, 3 }
   0x4   : > { %p340_p2 = pnand %p3796_p0, %p339_p1 }
   0x5   : > { %v508_v0 = vld [vmem:[%s7902_s1 + $0x8] sm:$0xff] (!%p340_p2)  ;;  %v510_v1 = vld [vmem:[%s7902_s1 + $0x18] sm:$0xff] (!%p340_p2)  ;;  %v507_v2 = vld [vmem:[%s7902_s1] sm:$0xff] (!%p340_p2)  ;;  %s3797_s22 = sshll.u32 (!%p340_p2), %s3792_s18, 4  ;;  %vm715_vm0 = vcmask (!%p340_p2), 130048  }
   0x6   : > { %343 = sbr.rel (%p340_p2) target bundleno = 1597 (0x63d), region = 64  ;;  %v4181_v3 = vpack.c.bf16 (!%p340_p2), %v510_v1, %v508_v0  ;;  %v509_v4 = vld [vmem:[%s7902_s1 + $0x10] sm:$0xff] (!%p340_p2)  ;;  %v512_v5 = vld [vmem:[%s7902_s1 + $0x28] sm:$0xff] (!%p340_p2)  ;;  %v514_v6 = vld [vmem:[%s7902_s1 + $0x38] sm:$0xff] (!%p340_p2)  ;;  %p382_p3 = scmp.lt.s32.totalorder (!%p340_p2), %s3797_s22, 31 }
   0x7   : > { %v4183_v7 = vpack.c.bf16 (!%p340_p2), %v509_v4, %v507_v2  ;;  %v4185_v8 = vpack.c.bf16 (!%p340_p2), %v514_v6, %v512_v5  ;;  %v511_v9 = vld [vmem:[%s7902_s1 + $0x20] sm:$0xff] (!%p340_p2)  ;;  %v513_v10 = vld [vmem:[%s7902_s1 + $0x30] sm:$0xff] (!%p340_p2)  ;;  %v516_v11 = vld [vmem:[%s7902_s1 + $0x48] sm:$0xff] (!%p340_p2) }
   0x8   : > { %4182 = vmatprep.subr.bf16.mxu0 (!%p340_p2), %v4181_v3  ;;  %v518_v12 = vld [vmem:[%s7902_s1 + $0x58] sm:$0xff] (!%p340_p2)  ;;  %v4187_v13 = vpack.c.bf16 (!%p340_p2), %v513_v10, %v511_v9  ;;  %v515_v15 = vld [vmem:[%s7902_s1 + $0x40] sm:$0xff] (!%p340_p2)  ;;  %v517_v16 = vld [vmem:[%s7902_s1 + $0x50] sm:$0xff] (!%p340_p2) }
   0x9   : > { %4184 = vmatpush1.bf16.msra.mxu0 (!%p340_p2), %v4183_v7  ;;  %v4189_v14 = vpack.c.bf16 (!%p340_p2), %v518_v12, %v516_v11  ;;  %v520_v17 = vld [vmem:[%s7902_s1 + $0x68] sm:$0xff] (!%p340_p2)  ;;  %v522_v18 = vld [vmem:[%s7902_s1 + $0x78] sm:$0xff] (!%p340_p2)  ;;  %v4191_v19 = vpack.c.bf16 (!%p340_p2), %v517_v16, %v515_v15  ;;  %v519_v21 = vld [vmem:[%s7902_s1 + $0x60] sm:$0xff] (!%p340_p2) }
   0xa   : > { %4186 = vmatprep.subr.bf16.mxu0 (!%p340_p2), %v4185_v8  ;;  %v4193_v20 = vpack.c.bf16 (!%p340_p2), %v522_v18, %v520_v17  ;;  %v521_v22 = vld [vmem:[%s7902_s1 + $0x70] sm:$0xff] (!%p340_p2)  ;;  %v524_v23 = vld [vmem:[%s7902_s1 + $0x88] sm:$0xff] (!%p340_p2)  ;;  %v526_v24 = vld [vmem:[%s7902_s1 + $0x98] sm:$0xff] (!%p340_p2) }
   0xb   : > { %v4195_v25 = vpack.c.bf16 (!%p340_p2), %v521_v22, %v519_v21  ;;  %v4197_v26 = vpack.c.bf16 (!%p340_p2), %v526_v24, %v524_v23  ;;  %v523_v27 = vld [vmem:[%s7902_s1 + $0x80] sm:$0xff] (!%p340_p2)  ;;  %v525_v28 = vld [vmem:[%s7902_s1 + $0x90] sm:$0xff] (!%p340_p2)  ;;  %v528_v29 = vld [vmem:[%s7902_s1 + $0xa8] sm:$0xff] (!%p340_p2) }
   0xc   : > { %v530_v30 = vld [vmem:[%s7902_s1 + $0xb8] sm:$0xff] (!%p340_p2)  ;;  %v4199_v31 = vpack.c.bf16 (!%p340_p2), %v525_v28, %v523_v27  ;;  %v527_v33 = vld [vmem:[%s7902_s1 + $0xa0] sm:$0xff] (!%p340_p2)  ;;  %v529_v34 = vld [vmem:[%s7902_s1 + $0xb0] sm:$0xff] (!%p340_p2) }
   0xd   : > { %4188 = vmatpush1.bf16.msra.mxu0 %v4187_v13  ;;  %s7914_s22 = smov (!%p382_p3, %s3797_s22), 31  ;;  %v4201_v32 = vpack.c.bf16 %v530_v30, %v528_v29  ;;  %v532_v35 = vld [vmem:[%s7902_s1 + $0xc8] sm:$0xff]  ;;  %v534_v36 = vld [vmem:[%s7902_s1 + $0xd8] sm:$0xff]  ;;  %v4203_v37 = vpack.c.bf16 %v529_v34, %v527_v33  ;;  %v531_v39 = vld [vmem:[%s7902_s1 + $0xc0] sm:$0xff] }
   0xe   : > { %4190 = vmatprep.subr.bf16.mxu0 %v4189_v14  ;;  %s4825_s30 = smul.u32 56, %s7914_s22  ;;  %v4205_v38 = vpack.c.bf16 %v534_v36, %v532_v35  ;;  %v533_v40 = vld [vmem:[%s7902_s1 + $0xd0] sm:$0xff]  ;;  %v536_v42 = vld [vmem:[%s7902_s1 + $0xe8] sm:$0xff]  ;;  %v538_v43 = vld [vmem:[%s7902_s1 + $0xf8] sm:$0xff] }
   0xf   : > { %v4207_v44 = vpack.c.bf16 %v533_v40, %v531_v39  ;;  %v4209_v45 = vpack.c.bf16 %v538_v43, %v536_v42  ;;  %v535_v46 = vld [vmem:[%s7902_s1 + $0xe0] sm:$0xff]  ;;  %v537_v47 = vld [vmem:[%s7902_s1 + $0xf0] sm:$0xff]  ;;  %v540_v48 = vld [vmem:[%s7902_s1 + $0x108] sm:$0xff] }
  0x10   : > { %s5447_s24 = scalar_lea.vmem %s7901_s0, %s4825_s30  ;;  %v542_v49 = vld [vmem:[%s7902_s1 + $0x118] sm:$0xff]  ;;  %v4211_v50 = vpack.c.bf16 %v537_v47, %v535_v46  ;;  %v539_v52 = vld [vmem:[%s7902_s1 + $0x100] sm:$0xff]  ;;  %v541_v53 = vld [vmem:[%s7902_s1 + $0x110] sm:$0xff] }
  0x11   : > { %4192 = vmatpush1.bf16.msra.mxu0 %v4191_v19  ;;  %v396_v41 = vld [vmem:[%s5447_s24 + $0x8] sm:$0xff]  ;;  %v4213_v51 = vpack.c.bf16 %v542_v49, %v540_v48  ;;  %v546_v55 = vld [vmem:[%s7902_s1 + $0x138] sm:$0xff]  ;;  %v4215_v56 = vpack.c.bf16 %v541_v53, %v539_v52  ;;  %v543_v58 = vld [vmem:[%s7902_s1 + $0x120] sm:$0xff] }
  0x12   : > { %4194 = vmatprep.subr.bf16.mxu0 %v4193_v20  ;;  %828 = vmatprep.mubr.f32.mxu0 %v396_v41  ;;  %v544_v54 = vld [vmem:[%s7902_s1 + $0x128] sm:$0xff]  ;;  %v545_v59 = vld [vmem:[%s7902_s1 + $0x130] sm:$0xff]  ;;  %v550_v61 = vld [vmem:[%s7902_s1 + $0x158] sm:$0xff] }
  0x13   : > { %v4217_v57 = vpack.c.bf16 %v546_v55, %v544_v54  ;;  %v548_v60 = vld [vmem:[%s7902_s1 + $0x148] sm:$0xff]  ;;  %v4219_v62 = vpack.c.bf16 %v545_v59, %v543_v58  ;;  %v547_v0 = vld [vmem:[%s7902_s1 + $0x140] sm:$0xff]  ;;  %v549_v1 = vld [vmem:[%s7902_s1 + $0x150] sm:$0xff] }
  0x14   : > { %v4221_v63 = vpack.c.bf16 %v550_v61, %v548_v60  ;;  %v552_v2 = vld [vmem:[%s7902_s1 + $0x168] sm:$0xff]  ;;  %v554_v3 = vld [vmem:[%s7902_s1 + $0x178] sm:$0xff]  ;;  %v4223_v4 = vpack.c.bf16 %v549_v1, %v547_v0  ;;  %v551_v6 = vld [vmem:[%s7902_s1 + $0x160] sm:$0xff] }
  0x15   : > { %4196 = vmatpush1.bf16.msra.mxu0 %v4195_v25  ;;  %v4225_v5 = vpack.c.bf16 %v554_v3, %v552_v2  ;;  %v553_v7 = vld [vmem:[%s7902_s1 + $0x170] sm:$0xff]  ;;  %v556_v8 = vld [vmem:[%s7902_s1 + $0x188] sm:$0xff]  ;;  %v558_v9 = vld [vmem:[%s7902_s1 + $0x198] sm:$0xff] }
  0x16   : > { %4198 = vmatprep.subr.bf16.mxu0 %v4197_v26  ;;  %v4227_v10 = vpack.c.bf16 %v553_v7, %v551_v6  ;;  %v4229_v11 = vpack.c.bf16 %v558_v9, %v556_v8  ;;  %v555_v12 = vld [vmem:[%s7902_s1 + $0x180] sm:$0xff]  ;;  %v557_v13 = vld [vmem:[%s7902_s1 + $0x190] sm:$0xff]  ;;  %v560_v14 = vld [vmem:[%s7902_s1 + $0x1a8] sm:$0xff] }
  0x17   : > { %v562_v15 = vld [vmem:[%s7902_s1 + $0x1b8] sm:$0xff]  ;;  %v4231_v16 = vpack.c.bf16 %v557_v13, %v555_v12  ;;  %v559_v18 = vld [vmem:[%s7902_s1 + $0x1a0] sm:$0xff]  ;;  %v561_v19 = vld [vmem:[%s7902_s1 + $0x1b0] sm:$0xff] }
  0x18   : > { %v4233_v17 = vpack.c.bf16 %v562_v15, %v560_v14  ;;  %v564_v20 = vld [vmem:[%s7902_s1 + $0x1c8] sm:$0xff]  ;;  %v566_v21 = vld [vmem:[%s7902_s1 + $0x1d8] sm:$0xff]  ;;  %v4235_v22 = vpack.c.bf16 %v561_v19, %v559_v18  ;;  %v563_v24 = vld [vmem:[%s7902_s1 + $0x1c0] sm:$0xff] }
  0x19   : > { %4200 = vmatpush1.bf16.msra.mxu0 %v4199_v31  ;;  %v4237_v23 = vpack.c.bf16 %v566_v21, %v564_v20  ;;  %v565_v25 = vld [vmem:[%s7902_s1 + $0x1d0] sm:$0xff]  ;;  %v568_v26 = vld [vmem:[%s7902_s1 + $0x1e8] sm:$0xff]  ;;  %v570_v27 = vld [vmem:[%s7902_s1 + $0x1f8] sm:$0xff] }
  0x1a   : > { %4202 = vmatprep.subr.bf16.mxu0 %v4201_v32  ;;  %v4239_v28 = vpack.c.bf16 %v565_v25, %v563_v24  ;;  %v4241_v29 = vpack.c.bf16 %v570_v27, %v568_v26  ;;  %v567_v30 = vld [vmem:[%s7902_s1 + $0x1e0] sm:$0xff]  ;;  %v569_v31 = vld [vmem:[%s7902_s1 + $0x1f0] sm:$0xff]  ;;  %v572_v32 = vld [vmem:[%s7902_s1 + $0x208] sm:$0xff] }
  0x1b   : > { %v574_v33 = vld [vmem:[%s7902_s1 + $0x218] sm:$0xff]  ;;  %v4243_v34 = vpack.c.bf16 %v569_v31, %v567_v30  ;;  %v571_v36 = vld [vmem:[%s7902_s1 + $0x200] sm:$0xff]  ;;  %v580_v46 = vld [vmem:[%s7902_s1 + $0x248] sm:$0xff] }
  0x1c   : > { %v4245_v35 = vpack.c.bf16 %v574_v33, %v572_v32  ;;  %v578_v39 = vld [vmem:[%s7902_s1 + $0x238] sm:$0xff]  ;;  %v395_v40 = vld [vmem:[%s5447_s24] sm:$0xff]  ;;  %v581_v53 = vld [vmem:[%s7902_s1 + $0x250] sm:$0xff] }
  0x1d   : > { %4204 = vmatpush1.bf16.msra.mxu0 %v4203_v37  ;;  %v573_v37 = vld [vmem:[%s7902_s1 + $0x210] sm:$0xff]  ;;  %v403_v42 = vld [vmem:[%s5447_s24 + $0x40] sm:$0xff]  ;;  %v582_v47 = vld [vmem:[%s7902_s1 + $0x258] sm:$0xff] }
  0x1e   : > { %4206 = vmatprep.subr.bf16.mxu0 %v4205_v38  ;;  %v576_v38 = vld [vmem:[%s7902_s1 + $0x228] sm:$0xff]  ;;  %v4247_v41 = vpack.c.bf16 %v573_v37, %v571_v36  ;;  %v402_v48 = vld [vmem:[%s5447_s24 + $0x38] sm:$0xff]  ;;  %v579_v52 = vld [vmem:[%s7902_s1 + $0x240] sm:$0xff] }
  0x1f   : > { %v4249_v43 = vpack.c.bf16 %v578_v39, %v576_v38  ;;  %v584_v54 = vld [vmem:[%s7902_s1 + $0x268] sm:$0xff]  ;;  %v586_v55 = vld [vmem:[%s7902_s1 + $0x278] sm:$0xff]  ;;  %v417_v58 = vld [vmem:[%s5447_s24 + $0xb0] sm:$0xff] }
  0x20   : > { %v4257_v59 = vpack.c.bf16 %v586_v55, %v584_v54  ;;  %v583_v60 = vld [vmem:[%s7902_s1 + $0x260] sm:$0xff]  ;;  %v585_v61 = vld [vmem:[%s7902_s1 + $0x270] sm:$0xff]  ;;  %v416_v0 = vld [vmem:[%s5447_s24 + $0xa8] sm:$0xff] }
  0x21   : > { %4208 = vmatpush1.bf16.msra.mxu0 %v4207_v44  ;;  %v575_v44 = vld [vmem:[%s7902_s1 + $0x220] sm:$0xff]  ;;  %v4259_v1 = vpack.c.bf16 %v585_v61, %v583_v60  ;;  %v424_v2 = vld [vmem:[%s5447_s24 + $0xe8] sm:$0xff]  ;;  %v594_v7 = vld [vmem:[%s7902_s1 + $0x2b8] sm:$0xff] }
  0x22   : > { %4210 = vmatprep.subr.bf16.mxu0 %v4209_v45  ;;  %v577_v45 = vld [vmem:[%s7902_s1 + $0x230] sm:$0xff]  ;;  %v592_v6 = vld [vmem:[%s7902_s1 + $0x2a8] sm:$0xff]  ;;  %v423_v8 = vld [vmem:[%s5447_s24 + $0xe0] sm:$0xff] }
  0x23   : > { %v4251_v49 = vpack.c.bf16 %v577_v45, %v575_v44  ;;  %v591_v12 = vld [vmem:[%s7902_s1 + $0x2a0] sm:$0xff]  ;;  %v593_v13 = vld [vmem:[%s7902_s1 + $0x2b0] sm:$0xff]  ;;  %v596_v14 = vld [vmem:[%s7902_s1 + $0x2c8] sm:$0xff] }
  0x24   : > { %v598_v15 = vld [vmem:[%s7902_s1 + $0x2d8] sm:$0xff]  ;;  %v595_v20 = vld [vmem:[%s7902_s1 + $0x2c0] sm:$0xff]  ;;  %v597_v21 = vld [vmem:[%s7902_s1 + $0x2d0] sm:$0xff] }
  0x25   : > { %4212 = vmatpush1.bf16.msra.mxu0 %v4211_v50  ;;  %v410_v50 = vld [vmem:[%s5447_s24 + $0x78] sm:$0xff]  ;;  %v4269_v19 = vpack.c.bf16 %v598_v15, %v596_v14  ;;  %v437_v24 = vld [vmem:[%s5447_s24 + $0x150] sm:$0xff]  ;;  %v4271_v25 = vpack.c.bf16 %v597_v21, %v595_v20  ;;  %v604_v30 = vld [vmem:[%s7902_s1 + $0x308] sm:$0xff] }
  0x26   : > { %4214 = vmatprep.subr.bf16.mxu0 %v4213_v51  ;;  %v4253_v51 = vpack.c.bf16 %v582_v47, %v580_v46  ;;  %v438_v18 = vld [vmem:[%s5447_s24 + $0x158] sm:$0xff]  ;;  %v445_v26 = vld [vmem:[%s5447_s24 + $0x190] sm:$0xff]  ;;  %v444_v32 = vld [vmem:[%s5447_s24 + $0x188] sm:$0xff] }
  0x27   : > { %v606_v31 = vld [vmem:[%s7902_s1 + $0x318] sm:$0xff]  ;;  %v603_v36 = vld [vmem:[%s7902_s1 + $0x300] sm:$0xff]  ;;  %v605_v37 = vld [vmem:[%s7902_s1 + $0x310] sm:$0xff] }
  0x28   : > { %v608_v38 = vld [vmem:[%s7902_s1 + $0x328] sm:$0xff]  ;;  %v610_v39 = vld [vmem:[%s7902_s1 + $0x338] sm:$0xff]  ;;  %v607_v44 = vld [vmem:[%s7902_s1 + $0x320] sm:$0xff] }
  0x29   : > { %4216 = vmatpush1.bf16.msra.mxu0 %v4215_v56  ;;  %v409_v56 = vld [vmem:[%s5447_s24 + $0x70] sm:$0xff]  ;;  %v612_v46 = vld [vmem:[%s7902_s1 + $0x348] sm:$0xff]  ;;  %v614_v47 = vld [vmem:[%s7902_s1 + $0x358] sm:$0xff] }
  0x2a   : > { %4218 = vmatprep.subr.bf16.mxu0 %v4217_v57  ;;  %v4255_v57 = vpack.c.bf16 %v581_v53, %v579_v52  ;;  %v609_v45 = vld [vmem:[%s7902_s1 + $0x330] sm:$0xff]  ;;  %v611_v52 = vld [vmem:[%s7902_s1 + $0x340] sm:$0xff]  ;;  %v616_v54 = vld [vmem:[%s7902_s1 + $0x368] sm:$0xff] }
  0x2b   : > { %v613_v53 = vld [vmem:[%s7902_s1 + $0x350] sm:$0xff]  ;;  %v618_v55 = vld [vmem:[%s7902_s1 + $0x378] sm:$0xff]  ;;  %v615_v60 = vld [vmem:[%s7902_s1 + $0x360] sm:$0xff] }
  0x2c   : > { %v617_v61 = vld [vmem:[%s7902_s1 + $0x370] sm:$0xff]  ;;  %v628_v14 = vld [vmem:[%s7902_s1 + $0x3c8] sm:$0xff]  ;;  %v630_v15 = vld [vmem:[%s7902_s1 + $0x3d8] sm:$0xff] }
  0x2d   : > { %4220 = vmatpush1.bf16.msra.mxu0 %v4219_v62  ;;  %v588_v62 = vld [vmem:[%s7902_s1 + $0x288] sm:$0xff]  ;;  %v627_v20 = vld [vmem:[%s7902_s1 + $0x3c0] sm:$0xff]  ;;  %v629_v21 = vld [vmem:[%s7902_s1 + $0x3d0] sm:$0xff] }
  0x2e   : > { %4222 = vmatprep.subr.bf16.mxu0 %v4221_v63  ;;  %v590_v63 = vld [vmem:[%s7902_s1 + $0x298] sm:$0xff] }
  0x2f   : > { %v4261_v3 = vpack.c.bf16 %v590_v63, %v588_v62  ;;  %v620_v62 = vld [vmem:[%s7902_s1 + $0x388] sm:$0xff]  ;;  %v622_v63 = vld [vmem:[%s7902_s1 + $0x398] sm:$0xff] }
  0x31   : > { %4224 = vmatpush1.bf16.msra.mxu0 %v4223_v4  ;;  %v587_v4 = vld [vmem:[%s7902_s1 + $0x280] sm:$0xff] }
  0x32   : > { %4226 = vmatprep.subr.bf16.mxu0 %v4225_v5  ;;  %v589_v5 = vld [vmem:[%s7902_s1 + $0x290] sm:$0xff] }
  0x33   : > { %v4263_v9 = vpack.c.bf16 %v589_v5, %v587_v4  ;;  %v619_v4 = vld [vmem:[%s7902_s1 + $0x380] sm:$0xff]  ;;  %v621_v5 = vld [vmem:[%s7902_s1 + $0x390] sm:$0xff] }
  0x35   : > { %4228 = vmatpush1.bf16.msra.mxu0 %v4227_v10  ;;  %v431_v10 = vld [vmem:[%s5447_s24 + $0x120] sm:$0xff] }
  0x36   : > { %4230 = vmatprep.subr.bf16.mxu0 %v4229_v11  ;;  %v4265_v11 = vpack.c.bf16 %v594_v7, %v592_v6  ;;  %v624_v6 = vld [vmem:[%s7902_s1 + $0x3a8] sm:$0xff]  ;;  %v626_v7 = vld [vmem:[%s7902_s1 + $0x3b8] sm:$0xff] }
  0x39   : > { %4232 = vmatpush1.bf16.msra.mxu0 %v4231_v16  ;;  %v430_v16 = vld [vmem:[%s5447_s24 + $0x118] sm:$0xff] }
  0x3a   : > { %4234 = vmatprep.subr.bf16.mxu0 %v4233_v17  ;;  %v4267_v17 = vpack.c.bf16 %v593_v13, %v591_v12  ;;  %v623_v12 = vld [vmem:[%s7902_s1 + $0x3a0] sm:$0xff]  ;;  %v625_v13 = vld [vmem:[%s7902_s1 + $0x3b0] sm:$0xff] }
  0x3d   : > { %4236 = vmatpush1.bf16.msra.mxu0 %v4235_v22  ;;  %v600_v22 = vld [vmem:[%s7902_s1 + $0x2e8] sm:$0xff] }
  0x3e   : > { %4238 = vmatprep.subr.bf16.mxu0 %v4237_v23  ;;  %v602_v23 = vld [vmem:[%s7902_s1 + $0x2f8] sm:$0xff] }
  0x3f   : > { %v4273_v27 = vpack.c.bf16 %v602_v23, %v600_v22  ;;  %v632_v22 = vld [vmem:[%s7902_s1 + $0x3e8] sm:$0xff]  ;;  %v634_v23 = vld [vmem:[%s7902_s1 + $0x3f8] sm:$0xff] }
  0x41   : > { %4240 = vmatpush1.bf16.msra.mxu0 %v4239_v28  ;;  %v599_v28 = vld [vmem:[%s7902_s1 + $0x2e0] sm:$0xff] }
  0x42   : > { %4242 = vmatprep.subr.bf16.mxu0 %v4241_v29  ;;  %v601_v29 = vld [vmem:[%s7902_s1 + $0x2f0] sm:$0xff] }
  0x43   : > { %v4275_v33 = vpack.c.bf16 %v601_v29, %v599_v28  ;;  %v631_v28 = vld [vmem:[%s7902_s1 + $0x3e0] sm:$0xff]  ;;  %v633_v29 = vld [vmem:[%s7902_s1 + $0x3f0] sm:$0xff] }
  0x45   : > { %4244 = vmatpush1.bf16.msra.mxu0 %v4243_v34  ;;  %v452_v34 = vld [vmem:[%s5447_s24 + $0x1c8] sm:$0xff] }
  0x46   : > { %4246 = vmatprep.subr.bf16.mxu0 %v4245_v35  ;;  %v4277_v35 = vpack.c.bf16 %v606_v31, %v604_v30  ;;  %v636_v30 = vld [vmem:[%s7902_s1 + $0x408] sm:$0xff]  ;;  %v638_v31 = vld [vmem:[%s7902_s1 + $0x418] sm:$0xff] }
  0x48   : > { %829 = vmatmul.mubr.f32.vlgmr.msra.gmra.mrb[0].mxu0 %v395_v40  ;;  %v451_v40 = vld [vmem:[%s5447_s24 + $0x1c0] sm:$0xff] }
  0x49   : > { %4248 = vmatpush1.bf16.msra.mxu0 %v4247_v41  ;;  %834 = vmatprep.mubr.f32.mxu0 %v403_v42  ;;  %v4279_v41 = vpack.c.bf16 %v605_v37, %v603_v36  ;;  %v459_v42 = vld [vmem:[%s5447_s24 + $0x200] sm:$0xff]  ;;  %v637_v37 = vld [vmem:[%s7902_s1 + $0x410] sm:$0xff] }
  0x4a   : > { %4250 = vmatprep.subr.bf16.mxu0 %v4249_v43  ;;  %v4281_v43 = vpack.c.bf16 %v610_v39, %v608_v38  ;;  %v635_v36 = vld [vmem:[%s7902_s1 + $0x400] sm:$0xff]  ;;  %v640_v38 = vld [vmem:[%s7902_s1 + $0x428] sm:$0xff]  ;;  %v642_v39 = vld [vmem:[%s7902_s1 + $0x438] sm:$0xff] }
  0x4c   : > { %835 = vmatmul.mubr.f32.gmra.mrb[2].mxu0 %v402_v48  ;;  %v458_v48 = vld [vmem:[%s5447_s24 + $0x1f8] sm:$0xff] }
  0x4d   : > { %4252 = vmatpush1.bf16.msra.mxu0 %v4251_v49  ;;  %840 = vmatprep.mubr.f32.mxu0 %v410_v50  ;;  %v4283_v49 = vpack.c.bf16 %v609_v45, %v607_v44  ;;  %v466_v50 = vld [vmem:[%s5447_s24 + $0x238] sm:$0xff]  ;;  %v639_v44 = vld [vmem:[%s7902_s1 + $0x420] sm:$0xff]  ;;  %v641_v45 = vld [vmem:[%s7902_s1 + $0x430] sm:$0xff] }
  0x4e   : > { %4254 = vmatprep.subr.bf16.mxu0 %v4253_v51  ;;  %v4285_v51 = vpack.c.bf16 %v614_v47, %v612_v46  ;;  %v644_v46 = vld [vmem:[%s7902_s1 + $0x448] sm:$0xff]  ;;  %v646_v47 = vld [vmem:[%s7902_s1 + $0x458] sm:$0xff] }
  0x50   : > { %841 = vmatmul.mubr.f32.gmra.mrb[4].mxu0 %v409_v56  ;;  %v465_v56 = vld [vmem:[%s5447_s24 + $0x230] sm:$0xff] }
  0x51   : > { %4256 = vmatpush1.bf16.msra.mxu0 %v4255_v57  ;;  %846 = vmatprep.mubr.f32.mxu0 %v417_v58  ;;  %v4287_v57 = vpack.c.bf16 %v613_v53, %v611_v52  ;;  %v473_v58 = vld [vmem:[%s5447_s24 + $0x270] sm:$0xff]  ;;  %v643_v52 = vld [vmem:[%s7902_s1 + $0x440] sm:$0xff] }
  0x52   : > { %4258 = vmatprep.subr.bf16.mxu0 %v4257_v59  ;;  %v4289_v59 = vpack.c.bf16 %v618_v55, %v616_v54  ;;  %v645_v53 = vld [vmem:[%s7902_s1 + $0x450] sm:$0xff]  ;;  %v648_v54 = vld [vmem:[%s7902_s1 + $0x468] sm:$0xff]  ;;  %v650_v55 = vld [vmem:[%s7902_s1 + $0x478] sm:$0xff] }
  0x54   : > { %847 = vmatmul.mubr.f32.gmra.mrb[6].mxu0 %v416_v0  ;;  %v472_v0 = vld [vmem:[%s5447_s24 + $0x268] sm:$0xff] }
  0x55   : > { %4260 = vmatpush1.bf16.msra.mxu0 %v4259_v1  ;;  %852 = vmatprep.mubr.f32.mxu0 %v424_v2  ;;  %v4291_v1 = vpack.c.bf16 %v617_v61, %v615_v60  ;;  %v480_v2 = vld [vmem:[%s5447_s24 + $0x2a8] sm:$0xff]  ;;  %v647_v60 = vld [vmem:[%s7902_s1 + $0x460] sm:$0xff]  ;;  %v649_v61 = vld [vmem:[%s7902_s1 + $0x470] sm:$0xff] }
  0x56   : > { %4262 = vmatprep.subr.bf16.mxu0 %v4261_v3  ;;  %v4293_v3 = vpack.c.bf16 %v622_v63, %v620_v62  ;;  %v652_v62 = vld [vmem:[%s7902_s1 + $0x488] sm:$0xff]  ;;  %v654_v63 = vld [vmem:[%s7902_s1 + $0x498] sm:$0xff] }
  0x58   : > { %853 = vmatmul.mubr.f32.gmra.mrb[8].mxu0 %v423_v8  ;;  %v479_v8 = vld [vmem:[%s5447_s24 + $0x2a0] sm:$0xff] }
  0x59   : > { %4264 = vmatpush1.bf16.msra.mxu0 %v4263_v9  ;;  %858 = vmatprep.mubr.f32.mxu0 %v431_v10  ;;  %v4295_v9 = vpack.c.bf16 %v621_v5, %v619_v4  ;;  %v487_v10 = vld [vmem:[%s5447_s24 + $0x2e0] sm:$0xff]  ;;  %v653_v5 = vld [vmem:[%s7902_s1 + $0x490] sm:$0xff] }
  0x5a   : > { %4266 = vmatprep.subr.bf16.mxu0 %v4265_v11  ;;  %v4297_v11 = vpack.c.bf16 %v626_v7, %v624_v6  ;;  %v651_v4 = vld [vmem:[%s7902_s1 + $0x480] sm:$0xff]  ;;  %v656_v6 = vld [vmem:[%s7902_s1 + $0x4a8] sm:$0xff]  ;;  %v658_v7 = vld [vmem:[%s7902_s1 + $0x4b8] sm:$0xff] }
  0x5c   : > { %859 = vmatmul.mubr.f32.gmra.mrb[10].mxu0 %v430_v16  ;;  %v486_v16 = vld [vmem:[%s5447_s24 + $0x2d8] sm:$0xff] }
  0x5d   : > { %4268 = vmatpush1.bf16.msra.mxu0 %v4267_v17  ;;  %864 = vmatprep.mubr.f32.mxu0 %v438_v18  ;;  %v4299_v17 = vpack.c.bf16 %v625_v13, %v623_v12  ;;  %v494_v18 = vld [vmem:[%s5447_s24 + $0x318] sm:$0xff]  ;;  %v655_v12 = vld [vmem:[%s7902_s1 + $0x4a0] sm:$0xff]  ;;  %v657_v13 = vld [vmem:[%s7902_s1 + $0x4b0] sm:$0xff] }
  0x5e   : > { %4270 = vmatprep.subr.bf16.mxu0 %v4269_v19  ;;  %v4301_v19 = vpack.c.bf16 %v630_v15, %v628_v14  ;;  %v660_v14 = vld [vmem:[%s7902_s1 + $0x4c8] sm:$0xff]  ;;  %v662_v15 = vld [vmem:[%s7902_s1 + $0x4d8] sm:$0xff] }
  0x60   : > { %865 = vmatmul.mubr.f32.gmra.mrb[12].mxu0 %v437_v24  ;;  %v493_v24 = vld [vmem:[%s5447_s24 + $0x310] sm:$0xff] }
  0x61   : > { %4272 = vmatpush1.bf16.msra.mxu0 %v4271_v25  ;;  %870 = vmatprep.mubr.f32.mxu0 %v445_v26  ;;  %v4303_v25 = vpack.c.bf16 %v629_v21, %v627_v20  ;;  %v501_v26 = vld [vmem:[%s5447_s24 + $0x350] sm:$0xff]  ;;  %v659_v20 = vld [vmem:[%s7902_s1 + $0x4c0] sm:$0xff] }
  0x62   : > { %4274 = vmatprep.subr.bf16.mxu0 %v4273_v27  ;;  %v4305_v27 = vpack.c.bf16 %v634_v23, %v632_v22  ;;  %v661_v21 = vld [vmem:[%s7902_s1 + $0x4d0] sm:$0xff]  ;;  %v664_v22 = vld [vmem:[%s7902_s1 + $0x4e8] sm:$0xff]  ;;  %v666_v23 = vld [vmem:[%s7902_s1 + $0x4f8] sm:$0xff] }
  0x64   : > { %871 = vmatmul.mubr.f32.gmra.mrb[14].mxu0 %v444_v32  ;;  %v500_v32 = vld [vmem:[%s5447_s24 + $0x348] sm:$0xff] }
  0x65   : > { %4276 = vmatpush1.bf16.msra.mxu0 %v4275_v33  ;;  %876 = vmatprep.mubr.f32.mxu0 %v452_v34  ;;  %v4307_v33 = vpack.c.bf16 %v633_v29, %v631_v28  ;;  %v398_v34 = vld [vmem:[%s5447_s24 + $0x18] sm:$0xff]  ;;  %v663_v28 = vld [vmem:[%s7902_s1 + $0x4e0] sm:$0xff]  ;;  %v665_v29 = vld [vmem:[%s7902_s1 + $0x4f0] sm:$0xff] }
  0x66   : > { %4278 = vmatprep.subr.bf16.mxu0 %v4277_v35  ;;  %v4309_v35 = vpack.c.bf16 %v638_v31, %v636_v30  ;;  %v668_v30 = vld [vmem:[%s7902_s1 + $0x508] sm:$0xff]  ;;  %v670_v31 = vld [vmem:[%s7902_s1 + $0x518] sm:$0xff] }
  0x68   : > { %877 = vmatmul.mubr.f32.gmra.mrb[16].mxu0 %v451_v40  ;;  %v397_v40 = vld [vmem:[%s5447_s24 + $0x10] sm:$0xff] }
  0x69   : > { %4280 = vmatpush1.bf16.msra.mxu0 %v4279_v41  ;;  %882 = vmatprep.mubr.f32.mxu0 %v459_v42  ;;  %v4311_v41 = vpack.c.bf16 %v637_v37, %v635_v36  ;;  %v405_v42 = vld [vmem:[%s5447_s24 + $0x50] sm:$0xff]  ;;  %v667_v36 = vld [vmem:[%s7902_s1 + $0x500] sm:$0xff] }
  0x6a   : > { %4282 = vmatprep.subr.bf16.mxu0 %v4281_v43  ;;  %v4313_v43 = vpack.c.bf16 %v642_v39, %v640_v38  ;;  %v669_v37 = vld [vmem:[%s7902_s1 + $0x510] sm:$0xff]  ;;  %v672_v38 = vld [vmem:[%s7902_s1 + $0x528] sm:$0xff]  ;;  %v674_v39 = vld [vmem:[%s7902_s1 + $0x538] sm:$0xff] }
  0x6c   : > { %883 = vmatmul.mubr.f32.gmra.mrb[18].mxu0 %v458_v48  ;;  %v404_v48 = vld [vmem:[%s5447_s24 + $0x48] sm:$0xff] }
  0x6d   : > { %4284 = vmatpush1.bf16.msra.mxu0 %v4283_v49  ;;  %888 = vmatprep.mubr.f32.mxu0 %v466_v50  ;;  %v4315_v49 = vpack.c.bf16 %v641_v45, %v639_v44  ;;  %v412_v50 = vld [vmem:[%s5447_s24 + $0x88] sm:$0xff]  ;;  %v671_v44 = vld [vmem:[%s7902_s1 + $0x520] sm:$0xff]  ;;  %v673_v45 = vld [vmem:[%s7902_s1 + $0x530] sm:$0xff] }
  0x6e   : > { %4286 = vmatprep.subr.bf16.mxu0 %v4285_v51  ;;  %v4317_v51 = vpack.c.bf16 %v646_v47, %v644_v46  ;;  %v676_v46 = vld [vmem:[%s7902_s1 + $0x548] sm:$0xff]  ;;  %v678_v47 = vld [vmem:[%s7902_s1 + $0x558] sm:$0xff] }
  0x70   : > { %889 = vmatmul.mubr.f32.gmra.mrb[20].mxu0 %v465_v56  ;;  %v411_v56 = vld [vmem:[%s5447_s24 + $0x80] sm:$0xff] }
  0x71   : > { %4288 = vmatpush1.bf16.msra.mxu0 %v4287_v57  ;;  %894 = vmatprep.mubr.f32.mxu0 %v473_v58  ;;  %v4319_v57 = vpack.c.bf16 %v645_v53, %v643_v52  ;;  %v419_v58 = vld [vmem:[%s5447_s24 + $0xc0] sm:$0xff]  ;;  %v677_v53 = vld [vmem:[%s7902_s1 + $0x550] sm:$0xff] }
  0x72   : > { %4290 = vmatprep.subr.bf16.mxu0 %v4289_v59  ;;  %v4321_v59 = vpack.c.bf16 %v650_v55, %v648_v54  ;;  %v675_v52 = vld [vmem:[%s7902_s1 + $0x540] sm:$0xff]  ;;  %v680_v54 = vld [vmem:[%s7902_s1 + $0x568] sm:$0xff]  ;;  %v682_v55 = vld [vmem:[%s7902_s1 + $0x578] sm:$0xff] }
  0x74   : > { %895 = vmatmul.mubr.f32.gmra.mrb[22].mxu0 %v472_v0  ;;  %v418_v0 = vld [vmem:[%s5447_s24 + $0xb8] sm:$0xff] }
  0x75   : > { %4292 = vmatpush1.bf16.msra.mxu0 %v4291_v1  ;;  %900 = vmatprep.mubr.f32.mxu0 %v480_v2  ;;  %v4323_v1 = vpack.c.bf16 %v649_v61, %v647_v60  ;;  %v426_v2 = vld [vmem:[%s5447_s24 + $0xf8] sm:$0xff]  ;;  %v679_v60 = vld [vmem:[%s7902_s1 + $0x560] sm:$0xff]  ;;  %v681_v61 = vld [vmem:[%s7902_s1 + $0x570] sm:$0xff] }
  0x76   : > { %4294 = vmatprep.subr.bf16.mxu0 %v4293_v3  ;;  %v4325_v3 = vpack.c.bf16 %v654_v63, %v652_v62  ;;  %v684_v62 = vld [vmem:[%s7902_s1 + $0x588] sm:$0xff]  ;;  %v686_v63 = vld [vmem:[%s7902_s1 + $0x598] sm:$0xff] }
  0x78   : > { %901 = vmatmul.mubr.f32.gmra.mrb[24].mxu0 %v479_v8  ;;  %v425_v8 = vld [vmem:[%s5447_s24 + $0xf0] sm:$0xff] }
  0x79   : > { %4296 = vmatpush1.bf16.msra.mxu0 %v4295_v9  ;;  %906 = vmatprep.mubr.f32.mxu0 %v487_v10  ;;  %v4327_v9 = vpack.c.bf16 %v653_v5, %v651_v4  ;;  %v433_v10 = vld [vmem:[%s5447_s24 + $0x130] sm:$0xff]  ;;  %v683_v4 = vld [vmem:[%s7902_s1 + $0x580] sm:$0xff] }
  0x7a   : > { %4298 = vmatprep.subr.bf16.mxu0 %v4297_v11  ;;  %v4329_v11 = vpack.c.bf16 %v658_v7, %v656_v6  ;;  %v685_v5 = vld [vmem:[%s7902_s1 + $0x590] sm:$0xff]  ;;  %v688_v6 = vld [vmem:[%s7902_s1 + $0x5a8] sm:$0xff]  ;;  %v690_v7 = vld [vmem:[%s7902_s1 + $0x5b8] sm:$0xff] }
  0x7c   : > { %907 = vmatmul.mubr.f32.gmra.mrb[26].mxu0 %v486_v16  ;;  %v432_v16 = vld [vmem:[%s5447_s24 + $0x128] sm:$0xff] }
  0x7d   : > { %4300 = vmatpush1.bf16.msra.mxu0 %v4299_v17  ;;  %912 = vmatprep.mubr.f32.mxu0 %v494_v18  ;;  %v4331_v17 = vpack.c.bf16 %v657_v13, %v655_v12  ;;  %v440_v18 = vld [vmem:[%s5447_s24 + $0x168] sm:$0xff]  ;;  %v687_v12 = vld [vmem:[%s7902_s1 + $0x5a0] sm:$0xff]  ;;  %v689_v13 = vld [vmem:[%s7902_s1 + $0x5b0] sm:$0xff] }
  0x7e   : > { %4302 = vmatprep.subr.bf16.mxu0 %v4301_v19  ;;  %v4333_v19 = vpack.c.bf16 %v662_v15, %v660_v14  ;;  %v692_v14 = vld [vmem:[%s7902_s1 + $0x5c8] sm:$0xff]  ;;  %v694_v15 = vld [vmem:[%s7902_s1 + $0x5d8] sm:$0xff] }
  0x80   : > { %913 = vmatmul.mubr.f32.gmra.mrb[28].mxu0 %v493_v24  ;;  %v439_v24 = vld [vmem:[%s5447_s24 + $0x160] sm:$0xff] }
  0x81   : > { %4304 = vmatpush1.bf16.msra.mxu0 %v4303_v25  ;;  %918 = vmatprep.mubr.f32.mxu0 %v501_v26  ;;  %v4335_v25 = vpack.c.bf16 %v661_v21, %v659_v20  ;;  %v447_v26 = vld [vmem:[%s5447_s24 + $0x1a0] sm:$0xff]  ;;  %v693_v21 = vld [vmem:[%s7902_s1 + $0x5d0] sm:$0xff] }
  0x82   : > { %4306 = vmatprep.subr.bf16.mxu0 %v4305_v27  ;;  %v4337_v27 = vpack.c.bf16 %v666_v23, %v664_v22  ;;  %v691_v20 = vld [vmem:[%s7902_s1 + $0x5c0] sm:$0xff]  ;;  %v696_v22 = vld [vmem:[%s7902_s1 + $0x5e8] sm:$0xff]  ;;  %v698_v23 = vld [vmem:[%s7902_s1 + $0x5f8] sm:$0xff] }
  0x84   : > { %919 = vmatmul.mubr.f32.gmra.mrb[30].mxu0 %v500_v32  ;;  %v446_v32 = vld [vmem:[%s5447_s24 + $0x198] sm:$0xff] }
  0x85   : > { %4308 = vmatpush1.bf16.msra.mxu0 %v4307_v33  ;;  %989 = vmatprep.mubr.f32.mxu0 %v398_v34  ;;  %v4339_v33 = vpack.c.bf16 %v665_v29, %v663_v28  ;;  %v454_v34 = vld [vmem:[%s5447_s24 + $0x1d8] sm:$0xff]  ;;  %v695_v28 = vld [vmem:[%s7902_s1 + $0x5e0] sm:$0xff]  ;;  %v697_v29 = vld [vmem:[%s7902_s1 + $0x5f0] sm:$0xff] }
  0x86   : > { %4310 = vmatprep.subr.bf16.mxu0 %v4309_v35  ;;  %v4341_v35 = vpack.c.bf16 %v670_v31, %v668_v30  ;;  %v700_v30 = vld [vmem:[%s7902_s1 + $0x608] sm:$0xff]  ;;  %v702_v31 = vld [vmem:[%s7902_s1 + $0x618] sm:$0xff] }
  0x88   : > { %990 = vmatmul.mubr.f32.vlgmr.msra.gmra.mrb[0].mxu0 %v397_v40  ;;  %v453_v40 = vld [vmem:[%s5447_s24 + $0x1d0] sm:$0xff] }
  0x89   : > { %4312 = vmatpush1.bf16.msra.mxu0 %v4311_v41  ;;  %995 = vmatprep.mubr.f32.mxu0 %v405_v42  ;;  %v4343_v41 = vpack.c.bf16 %v669_v37, %v667_v36  ;;  %v461_v42 = vld [vmem:[%s5447_s24 + $0x210] sm:$0xff]  ;;  %v699_v36 = vld [vmem:[%s7902_s1 + $0x600] sm:$0xff] }
  0x8a   : > { %4314 = vmatprep.subr.bf16.mxu0 %v4313_v43  ;;  %v4345_v43 = vpack.c.bf16 %v674_v39, %v672_v38  ;;  %v701_v37 = vld [vmem:[%s7902_s1 + $0x610] sm:$0xff]  ;;  %v399_v38 = vld [vmem:[%s5447_s24 + $0x20] sm:$0xff] }
  0x8b   : > { %v407_v39 = vld [vmem:[%s5447_s24 + $0x60] sm:$0xff] }
  0x8c   : > { %996 = vmatmul.mubr.f32.gmra.mrb[2].mxu0 %v404_v48  ;;  %v460_v48 = vld [vmem:[%s5447_s24 + $0x208] sm:$0xff] }
  0x8d   : > { %4316 = vmatpush1.bf16.msra.mxu0 %v4315_v49  ;;  %1001 = vmatprep.mubr.f32.mxu0 %v412_v50  ;;  %v4347_v49 = vpack.c.bf16 %v673_v45, %v671_v44  ;;  %v468_v50 = vld [vmem:[%s5447_s24 + $0x248] sm:$0xff] }
  0x8e   : > { %4318 = vmatprep.subr.bf16.mxu0 %v4317_v51  ;;  %v4349_v51 = vpack.c.bf16 %v678_v47, %v676_v46  ;;  %v1441_v45 = vld [vmem:[%s7904_s3 + $0x8] sm:$0xff]  ;;  %v1458_v46 = vld [vmem:[%s7904_s3 + $0x90] sm:$0xff]  ;;  %v1459_v47 = vld [vmem:[%s7904_s3 + $0x98] sm:$0xff] }
  0x90   : > { %1002 = vmatmul.mubr.f32.gmra.mrb[4].mxu0 %v411_v56  ;;  %v467_v56 = vld [vmem:[%s5447_s24 + $0x240] sm:$0xff] }
  0x91   : > { %4320 = vmatpush1.bf16.msra.mxu0 %v4319_v57  ;;  %1007 = vmatprep.mubr.f32.mxu0 %v419_v58  ;;  %v4351_v57 = vpack.c.bf16 %v677_v53, %v675_v52  ;;  %v475_v58 = vld [vmem:[%s5447_s24 + $0x280] sm:$0xff]  ;;  %v1461_v53 = vld [vmem:[%s7904_s3 + $0xa8] sm:$0xff] }
  0x92   : > { %4322 = vmatprep.subr.bf16.mxu0 %v4321_v59  ;;  %v4353_v59 = vpack.c.bf16 %v682_v55, %v680_v54  ;;  %v1460_v52 = vld [vmem:[%s7904_s3 + $0xa0] sm:$0xff]  ;;  %v406_v55 = vld [vmem:[%s5447_s24 + $0x58] sm:$0xff] }
  0x94   : > { %1008 = vmatmul.mubr.f32.gmra.mrb[6].mxu0 %v418_v0  ;;  %v474_v0 = vld [vmem:[%s5447_s24 + $0x278] sm:$0xff] }
  0x95   : > { %4324 = vmatpush1.bf16.msra.mxu0 %v4323_v1  ;;  %1013 = vmatprep.mubr.f32.mxu0 %v426_v2  ;;  %v4355_v1 = vpack.c.bf16 %v681_v61, %v679_v60  ;;  %v482_v2 = vld [vmem:[%s5447_s24 + $0x2b8] sm:$0xff]  ;;  %v1462_v60 = vld [vmem:[%s7904_s3 + $0xb0] sm:$0xff] }
  0x96   : > { %4326 = vmatprep.subr.bf16.mxu0 %v4325_v3  ;;  %v4357_v3 = vpack.c.bf16 %v686_v63, %v684_v62  ;;  %v1463_v61 = vld [vmem:[%s7904_s3 + $0xb8] sm:$0xff]  ;;  %v413_v63 = vld [vmem:[%s5447_s24 + $0x90] sm:$0xff] }
  0x98   : > { %1014 = vmatmul.mubr.f32.gmra.mrb[8].mxu0 %v425_v8  ;;  %v481_v8 = vld [vmem:[%s5447_s24 + $0x2b0] sm:$0xff] }
  0x99   : > { %4328 = vmatpush1.bf16.msra.mxu0 %v4327_v9  ;;  %1019 = vmatprep.mubr.f32.mxu0 %v433_v10  ;;  %v4359_v9 = vpack.c.bf16 %v685_v5, %v683_v4  ;;  %v489_v10 = vld [vmem:[%s5447_s24 + $0x2f0] sm:$0xff]  ;;  %v1464_v4 = vld [vmem:[%s7904_s3 + $0xc0] sm:$0xff]  ;;  %v1465_v5 = vld [vmem:[%s7904_s3 + $0xc8] sm:$0xff] }
  0x9a   : > { %4330 = vmatprep.subr.bf16.mxu0 %v4329_v11  ;;  %v4361_v11 = vpack.c.bf16 %v690_v7, %v688_v6  ;;  %v420_v7 = vld [vmem:[%s5447_s24 + $0xc8] sm:$0xff] }
  0x9c   : > { %1020 = vmatmul.mubr.f32.gmra.mrb[10].mxu0 %v432_v16  ;;  %v488_v16 = vld [vmem:[%s5447_s24 + $0x2e8] sm:$0xff] }
  0x9d   : > { %4332 = vmatpush1.bf16.msra.mxu0 %v4331_v17  ;;  %1025 = vmatprep.mubr.f32.mxu0 %v440_v18  ;;  %v4363_v17 = vpack.c.bf16 %v689_v13, %v687_v12  ;;  %v496_v18 = vld [vmem:[%s5447_s24 + $0x328] sm:$0xff]  ;;  %v1466_v12 = vld [vmem:[%s7904_s3 + $0xd0] sm:$0xff]  ;;  %v1467_v13 = vld [vmem:[%s7904_s3 + $0xd8] sm:$0xff] }
  0x9e   : > { %4334 = vmatprep.subr.bf16.mxu0 %v4333_v19  ;;  %v4365_v19 = vpack.c.bf16 %v694_v15, %v692_v14  ;;  %v427_v15 = vld [vmem:[%s5447_s24 + $0x100] sm:$0xff] }
  0xa0   : > { %1026 = vmatmul.mubr.f32.gmra.mrb[12].mxu0 %v439_v24  ;;  %v495_v24 = vld [vmem:[%s5447_s24 + $0x320] sm:$0xff] }
  0xa1   : > { %4336 = vmatpush1.bf16.msra.mxu0 %v4335_v25  ;;  %1031 = vmatprep.mubr.f32.mxu0 %v447_v26  ;;  %v4367_v25 = vpack.c.bf16 %v693_v21, %v691_v20  ;;  %v503_v26 = vld [vmem:[%s5447_s24 + $0x360] sm:$0xff]  ;;  %v1469_v21 = vld [vmem:[%s7904_s3 + $0xe8] sm:$0xff] }
  0xa2   : > { %4338 = vmatprep.subr.bf16.mxu0 %v4337_v27  ;;  %v4369_v27 = vpack.c.bf16 %v698_v23, %v696_v22  ;;  %v1468_v20 = vld [vmem:[%s7904_s3 + $0xe0] sm:$0xff]  ;;  %v434_v23 = vld [vmem:[%s5447_s24 + $0x138] sm:$0xff] }
  0xa4   : > { %1032 = vmatmul.mubr.f32.gmra.mrb[14].mxu0 %v446_v32  ;;  %v502_v32 = vld [vmem:[%s5447_s24 + $0x358] sm:$0xff] }
  0xa5   : > { %4340 = vmatpush1.bf16.msra.mxu0 %v4339_v33  ;;  %1037 = vmatprep.mubr.f32.mxu0 %v454_v34  ;;  %v4371_v33 = vpack.c.bf16 %v697_v29, %v695_v28  ;;  %v400_v34 = vld [vmem:[%s5447_s24 + $0x28] sm:$0xff] }
  0xa6   : > { %4342 = vmatprep.subr.bf16.mxu0 %v4341_v35  ;;  %v4373_v35 = vpack.c.bf16 %v702_v31, %v700_v30  ;;  %v448_v28 = vld [vmem:[%s5447_s24 + $0x1a8] sm:$0xff]  ;;  %v455_v30 = vld [vmem:[%s5447_s24 + $0x1e0] sm:$0xff] }
  0xa7   : > { %v456_v29 = vld [vmem:[%s5447_s24 + $0x1e8] sm:$0xff]  ;;  %v463_v31 = vld [vmem:[%s5447_s24 + $0x220] sm:$0xff] }
  0xa8   : > { %1038 = vmatmul.mubr.f32.gmra.mrb[16].mxu0 %v453_v40  ;;  %v1456_v40 = vld [vmem:[%s7904_s3 + $0x80] sm:$0xff] }
  0xa9   : > { %4344 = vmatpush1.bf16.msra.mxu0 %v4343_v41  ;;  %1043 = vmatprep.mubr.f32.mxu0 %v461_v42  ;;  %v1457_v41 = vld [vmem:[%s7904_s3 + $0x88] sm:$0xff]  ;;  %v1440_v42 = vld [vmem:[%s7904_s3] sm:$0xff] }
  0xaa   : > { %4346 = vmatprep.subr.bf16.mxu0 %v4345_v43  ;;  %v4375_v43 = vpack.c.bf16 %v701_v37, %v699_v36  ;;  %v4377_v44 = vpack.c.bf16 %v1457_v41, %v1456_v40  ;;  %v476_v36 = vld [vmem:[%s5447_s24 + $0x288] sm:$0xff]  ;;  %v490_v40 = vld [vmem:[%s5447_s24 + $0x2f8] sm:$0xff] }
  0xab   : > { %v484_v37 = vld [vmem:[%s5447_s24 + $0x2c8] sm:$0xff]  ;;  %v498_v41 = vld [vmem:[%s5447_s24 + $0x338] sm:$0xff] }
  0xac   : > { %1044 = vmatmul.mubr.f32.gmra.mrb[18].mxu0 %v460_v48  ;;  %v4379_v48 = vpack.c.bf16 %v1441_v45, %v1440_v42  ;;  %4378 = vmatprep.subr.bf16.mxu1 %v4377_v44  ;;  %v497_v42 = vld [vmem:[%s5447_s24 + $0x330] sm:$0xff]  ;;  %v504_v44 = vld [vmem:[%s5447_s24 + $0x368] sm:$0xff]  ;;  %v5292_v45 = vmov 0.0  }
  0xad   : > { %4348 = vmatpush1.bf16.msra.mxu0 %v4347_v49  ;;  %1049 = vmatprep.mubr.f32.mxu0 %v468_v50  ;;  %v4381_v49 = vpack.c.bf16 %v1459_v47, %v1458_v46  ;;  %v1442_v50 = vld [vmem:[%s7904_s3 + $0x10] sm:$0xff]  ;;  %v408_v47 = vld [vmem:[%s5447_s24 + $0x68] sm:$0xff] }
  0xae   : > { %4350 = vmatprep.subr.bf16.mxu0 %v4349_v51  ;;  %v1443_v51 = vld [vmem:[%s7904_s3 + $0x18] sm:$0xff]  ;;  %4380 = vmatpush3.bf16.msra.mxu1 %v4379_v48  ;;  %v401_v46 = vld [vmem:[%s5447_s24 + $0x30] sm:$0xff]  ;;  %v415_v48 = vld [vmem:[%s5447_s24 + $0xa0] sm:$0xff] }
  0xaf   : > { %v4383_v54 = vpack.c.bf16 %v1443_v51, %v1442_v50  ;;  %4382 = vmatprep.subr.bf16.mxu1 %v4381_v49  ;;  %v422_v49 = vld [vmem:[%s5447_s24 + $0xd8] sm:$0xff]  ;;  %v429_v50 = vld [vmem:[%s5447_s24 + $0x110] sm:$0xff]  ;;  %v436_v51 = vld [vmem:[%s5447_s24 + $0x148] sm:$0xff] }
  0xb0   : > { %1050 = vmatmul.mubr.f32.gmra.mrb[20].mxu0 %v467_v56  ;;  %v4385_v56 = vpack.c.bf16 %v1461_v53, %v1460_v52  ;;  %v443_v52 = vld [vmem:[%s5447_s24 + $0x180] sm:$0xff]  ;;  %v450_v53 = vld [vmem:[%s5447_s24 + $0x1b8] sm:$0xff] }
  0xb1   : > { %4352 = vmatpush1.bf16.msra.mxu0 %v4351_v57  ;;  %1055 = vmatprep.mubr.f32.mxu0 %v475_v58  ;;  %v1444_v57 = vld [vmem:[%s7904_s3 + $0x20] sm:$0xff]  ;;  %v1445_v58 = vld [vmem:[%s7904_s3 + $0x28] sm:$0xff] }
  0xb2   : > { %4354 = vmatprep.subr.bf16.mxu0 %v4353_v59  ;;  %v414_v59 = vld [vmem:[%s5447_s24 + $0x98] sm:$0xff]  ;;  %4384 = vmatpush3.bf16.msra.mxu1 %v4383_v54  ;;  %v4387_v62 = vpack.c.bf16 %v1445_v58, %v1444_v57  ;;  %v457_v54 = vld [vmem:[%s5447_s24 + $0x1f0] sm:$0xff] }
  0xb3   : > { %4386 = vmatprep.subr.bf16.mxu1 %v4385_v56  ;;  %v471_v56 = vld [vmem:[%s5447_s24 + $0x260] sm:$0xff]  ;;  %v478_v57 = vld [vmem:[%s5447_s24 + $0x298] sm:$0xff]  ;;  %v485_v58 = vld [vmem:[%s5447_s24 + $0x2d0] sm:$0xff] }
  0xb4   : > { %1056 = vmatmul.mubr.f32.gmra.mrb[22].mxu0 %v474_v0  ;;  %v4389_v0 = vpack.c.bf16 %v1463_v61, %v1462_v60  ;;  %v499_v60 = vld [vmem:[%s5447_s24 + $0x340] sm:$0xff]  ;;  %v506_v61 = vld [vmem:[%s5447_s24 + $0x378] sm:$0xff] }
  0xb5   : > { %4356 = vmatpush1.bf16.msra.mxu0 %v4355_v1  ;;  %1061 = vmatprep.mubr.f32.mxu0 %v482_v2  ;;  %v1446_v1 = vld [vmem:[%s7904_s3 + $0x30] sm:$0xff]  ;;  %v1447_v2 = vld [vmem:[%s7904_s3 + $0x38] sm:$0xff] }
  0xb6   : > { %4358 = vmatprep.subr.bf16.mxu0 %v4357_v3  ;;  %v421_v3 = vld [vmem:[%s5447_s24 + $0xd0] sm:$0xff]  ;;  %4388 = vmatpush3.bf16.msra.mxu1 %v4387_v62  ;;  %v4391_v6 = vpack.c.bf16 %v1447_v2, %v1446_v1  ;;  %v1452_v62 = vld [vmem:[%s7904_s3 + $0x60] sm:$0xff]  ;;  %v1471_v2 = vld [vmem:[%s7904_s3 + $0xf8] sm:$0xff] }
  0xb7   : > { %4390 = vmatprep.subr.bf16.mxu1 %v4389_v0  ;;  %v1470_v1 = vld [vmem:[%s7904_s3 + $0xf0] sm:$0xff] }
  0xb8   : > { %1062 = vmatmul.mubr.f32.gmra.mrb[24].mxu0 %v481_v8  ;;  %v4393_v8 = vpack.c.bf16 %v1465_v5, %v1464_v4  ;;  %v1454_v4 = vld [vmem:[%s7904_s3 + $0x70] sm:$0xff]  ;;  %v1455_v5 = vld [vmem:[%s7904_s3 + $0x78] sm:$0xff] }
  0xb9   : > { %4360 = vmatpush1.bf16.msra.mxu0 %v4359_v9  ;;  %1067 = vmatprep.mubr.f32.mxu0 %v489_v10  ;;  %v1448_v9 = vld [vmem:[%s7904_s3 + $0x40] sm:$0xff]  ;;  %v1449_v10 = vld [vmem:[%s7904_s3 + $0x48] sm:$0xff] }
  0xba   : > { %4362 = vmatprep.subr.bf16.mxu0 %v4361_v11  ;;  %v428_v11 = vld [vmem:[%s5447_s24 + $0x108] sm:$0xff]  ;;  %4392 = vmatpush3.bf16.msra.mxu1 %v4391_v6  ;;  %v4395_v14 = vpack.c.bf16 %v1449_v10, %v1448_v9  ;;  %v4407_v6 = vpack.c.bf16 %v1455_v5, %v1454_v4  ;;  %v705_v10 = vlaneseq }
  0xbb   : > { %4394 = vmatprep.subr.bf16.mxu1 %v4393_v8  ;;  %v1641_v8 = vld [vmem:[%s7906_s5 + $0x8] sm:$0xff] }
  0xbc   : > { %1068 = vmatmul.mubr.f32.gmra.mrb[26].mxu0 %v488_v16  ;;  %v4397_v16 = vpack.c.bf16 %v1467_v13, %v1466_v12  ;;  %v703_v13 = vld [vmem:[%s7903_s2] sm:$0x3]  ;;  %v1653_v4 = vld [vmem:[%s7906_s5 + $0x68] sm:$0xff] }
  0xbd   : > { %4364 = vmatpush1.bf16.msra.mxu0 %v4363_v17  ;;  %1073 = vmatprep.mubr.f32.mxu0 %v496_v18  ;;  %v1450_v17 = vld [vmem:[%s7904_s3 + $0x50] sm:$0xff]  ;;  %v1451_v18 = vld [vmem:[%s7904_s3 + $0x58] sm:$0xff] }
  0xbe   : > { %4366 = vmatprep.subr.bf16.mxu0 %v4365_v19  ;;  %v435_v19 = vld [vmem:[%s5447_s24 + $0x140] sm:$0xff]  ;;  %4396 = vmatpush3.bf16.msra.mxu1 %v4395_v14  ;;  %v4399_v22 = vpack.c.bf16 %v1451_v18, %v1450_v17 }
  0xbf   : > { %4398 = vmatprep.subr.bf16.mxu1 %v4397_v16 }
  0xc0   : > { %1074 = vmatmul.mubr.f32.gmra.mrb[28].mxu0 %v495_v24  ;;  %v4401_v24 = vpack.c.bf16 %v1469_v21, %v1468_v20  ;;  %v1642_v21 = vld [vmem:[%s7906_s5 + $0x10] sm:$0xff] }
  0xc1   : > { %4368 = vmatpush1.bf16.msra.mxu0 %v4367_v25  ;;  %1079 = vmatprep.mubr.f32.mxu0 %v503_v26  ;;  %v442_v25 = vld [vmem:[%s5447_s24 + $0x178] sm:$0xff]  ;;  %v441_v26 = vld [vmem:[%s5447_s24 + $0x170] sm:$0xff] }
  0xc2   : > { %4370 = vmatprep.subr.bf16.mxu0 %v4369_v27  ;;  %4400 = vmatpush3.bf16.msra.mxu1 %v4399_v22  ;;  %v449_v27 = vld [vmem:[%s5447_s24 + $0x1b0] sm:$0xff]  ;;  %v1643_v22 = vld [vmem:[%s7906_s5 + $0x18] sm:$0xff] }
  0xc3   : > { %4402 = vmatprep.subr.bf16.mxu1 %v4401_v24 }
  0xc4   : > { %1080 = vmatmul.mubr.f32.gmra.mrb[30].mxu0 %v502_v32  ;;  %v462_v32 = vld [vmem:[%s5447_s24 + $0x218] sm:$0xff] }
  0xc5   : > { %4372 = vmatpush1.bf16.msra.mxu0 %v4371_v33  ;;  %1150 = vmatprep.mubr.f32.mxu0 %v400_v34  ;;  %v470_v33 = vld [vmem:[%s5447_s24 + $0x258] sm:$0xff]  ;;  %v469_v34 = vld [vmem:[%s5447_s24 + $0x250] sm:$0xff] }
  0xc6   : > { %4374 = vmatprep.subr.bf16.mxu0 %v4373_v35  ;;  %v477_v35 = vld [vmem:[%s5447_s24 + $0x290] sm:$0xff] }
  0xc8   : > { %1151 = vmatmul.mubr.f32.vlgmr.msra.gmra.mrb[0].mxu0 %v399_v38  ;;  %v483_v38 = vld [vmem:[%s5447_s24 + $0x2c0] sm:$0xff] }
  0xc9   : > { %4376 = vmatpush1.bf16.msra.mxu0 %v4375_v43  ;;  %1156 = vmatprep.mubr.f32.mxu0 %v407_v39  ;;  %v491_v39 = vld [vmem:[%s5447_s24 + $0x300] sm:$0xff]  ;;  %v505_v43 = vld [vmem:[%s5447_s24 + $0x370] sm:$0xff] }
  0xcc   : > { %1157 = vmatmul.mubr.f32.gmra.mrb[2].mxu0 %v406_v55  ;;  %v464_v55 = vld [vmem:[%s5447_s24 + $0x228] sm:$0xff] }
  0xcd   : > { %1162 = vmatprep.mubr.f32.mxu0 %v414_v59  ;;  %v492_v59 = vld [vmem:[%s5447_s24 + $0x308] sm:$0xff]  ;;  %s7399_s24 = scalar_lea.vmem %s7912_s11, %s4825_s30 }
  0xd0   : > { %1163 = vmatmul.mubr.f32.gmra.mrb[4].mxu0 %v413_v63  ;;  %v1453_v63 = vld [vmem:[%s7904_s3 + $0x68] sm:$0xff] }
  0xd1   : > { %1168 = vmatprep.mubr.f32.mxu0 %v421_v3  ;;  %v4403_v0 = vpack.c.bf16 %v1453_v63, %v1452_v62  ;;  %v4405_v3 = vpack.c.bf16 %v1471_v2, %v1470_v1 }
  0xd3   : > { %4404 = vmatpush3.bf16.msra.mxu1 %v4403_v0 }
  0xd4   : > { %1169 = vmatmul.mubr.f32.gmra.mrb[6].mxu0 %v420_v7  ;;  %4406 = vmatprep.subr.bf16.mxu1 %v4405_v3  ;;  %v1640_v7 = vld [vmem:[%s7906_s5] sm:$0xff] }
  0xd5   : > { %1174 = vmatprep.mubr.f32.mxu0 %v428_v11  ;;  %v4409_v9 = vpack.c.bf16 %v1641_v8, %v1640_v7  ;;  %v6205_v11 = vshrl.u32 %v705_v10, 7  ;;  %v1652_v3 = vld [vmem:[%s7906_s5 + $0x60] sm:$0xff] }
  0xd6   : > { %v4433_v10 = vpack.c.bf16 %v1653_v4, %v1652_v3 }
  0xd7   : > { %4408 = vmatpush3.bf16.msra.mxu1 %v4407_v6  ;;  %v6208_v12 = vsub.s32 0, %v6205_v11  ;;  %v6214_v14 = vsub.s32 1, %v6205_v11 }
  0xd8   : > { %1175 = vmatmul.mubr.f32.gmra.mrb[8].mxu0 %v427_v15  ;;  %4410 = vmatprep.subr.bf16.mxu1 %v4409_v9 }
  0xd9   : > { %1180 = vmatprep.mubr.f32.mxu0 %v435_v19  ;;  %v6217_v15 = vrot.slane %v703_v13, %v6208_v12  ;;  %v6220_v16 = vrot.slane %v703_v13, %v6214_v14 }
  0xdc   : > { %1181 = vmatmul.mubr.f32.gmra.mrb[10].mxu0 %v434_v23 }
  0xdd   : > { %1186 = vmatprep.mubr.f32.mxu0 %v442_v25 }
  0xe0   : > { %1187 = vmatmul.mubr.f32.gmra.mrb[12].mxu0 %v441_v26 }
  0xe1   : > { %1192 = vmatprep.mubr.f32.mxu0 %v449_v27 }
  0xe4   : > { %1193 = vmatmul.mubr.f32.gmra.mrb[14].mxu0 %v448_v28  ;;  %v4413_v28 = vpack.c.bf16 %v1643_v22, %v1642_v21 }
  0xe5   : > { %1198 = vmatprep.mubr.f32.mxu0 %v456_v29 }
  0xe8   : > { %1199 = vmatmul.mubr.f32.gmra.mrb[16].mxu0 %v455_v30  ;;  %v1644_v30 = vld [vmem:[%s7906_s5 + $0x20] sm:$0xff] }
  0xe9   : > { %1204 = vmatprep.mubr.f32.mxu0 %v463_v31  ;;  %v1645_v31 = vld [vmem:[%s7906_s5 + $0x28] sm:$0xff] }
  0xec   : > { %1205 = vmatmul.mubr.f32.gmra.mrb[18].mxu0 %v462_v32 }
  0xed   : > { %1210 = vmatprep.mubr.f32.mxu0 %v470_v33 }
  0xf0   : > { %1211 = vmatmul.mubr.f32.gmra.mrb[20].mxu0 %v469_v34 }
  0xf1   : > { %1216 = vmatprep.mubr.f32.mxu0 %v477_v35 }
  0xf4   : > { %1217 = vmatmul.mubr.f32.gmra.mrb[22].mxu0 %v476_v36 }
  0xf5   : > { %1222 = vmatprep.mubr.f32.mxu0 %v484_v37  ;;  %v4417_v37 = vpack.c.bf16 %v1645_v31, %v1644_v30 }
  0xf8   : > { %1223 = vmatmul.mubr.f32.gmra.mrb[24].mxu0 %v483_v38 }
  0xf9   : > { %1228 = vmatprep.mubr.f32.mxu0 %v491_v39  ;;  %v1646_v39 = vld [vmem:[%s7906_s5 + $0x30] sm:$0xff] }
  0xfc   : > { %1229 = vmatmul.mubr.f32.gmra.mrb[26].mxu0 %v490_v40  ;;  %v1647_v40 = vld [vmem:[%s7906_s5 + $0x38] sm:$0xff] }
  0xfd   : > { %1234 = vmatprep.mubr.f32.mxu0 %v498_v41 }
 0x100   : > { %1235 = vmatmul.mubr.f32.gmra.mrb[28].mxu0 %v497_v42 }
 0x101   : > { %1240 = vmatprep.mubr.f32.mxu0 %v505_v43 }
 0x104   : > { %1241 = vmatmul.mubr.f32.gmra.mrb[30].mxu0 %v504_v44 }
 0x105   : > { %1311 = vmatprep.mubr.f32.mxu0 %v5292_v45 }
 0x108   : > { %3801 = vmatmul.mubr.msk.f32.vlgmr.msra.gmra.mrb[0].mxu0 %vm715_vm0, %v401_v46 }
 0x109   : > { %1317 = vmatprep.mubr.f32.mxu0 %v5292_v45 }
 0x10c   : > { %3802 = vmatmul.mubr.msk.f32.gmra.mrb[2].mxu0 %vm715_vm0, %v408_v47  ;;  %v4421_v47 = vpack.c.bf16 %v1647_v40, %v1646_v39 }
 0x10d   : > { %1323 = vmatprep.mubr.f32.mxu0 %v5292_v45 }
 0x110   : > { %3803 = vmatmul.mubr.msk.f32.gmra.mrb[4].mxu0 %vm715_vm0, %v415_v48 }
 0x111   : > { %1329 = vmatprep.mubr.f32.mxu0 %v5292_v45 }
 0x114   : > { %3804 = vmatmul.mubr.msk.f32.gmra.mrb[6].mxu0 %vm715_vm0, %v422_v49  ;;  %v1648_v49 = vld [vmem:[%s7906_s5 + $0x40] sm:$0xff] }
 0x115   : > { %1335 = vmatprep.mubr.f32.mxu0 %v5292_v45 }
 0x118   : > { %3805 = vmatmul.mubr.msk.f32.gmra.mrb[8].mxu0 %vm715_vm0, %v429_v50  ;;  %v1649_v50 = vld [vmem:[%s7906_s5 + $0x48] sm:$0xff] }
 0x119   : > { %1341 = vmatprep.mubr.f32.mxu0 %v5292_v45 }
 0x11c   : > { %3806 = vmatmul.mubr.msk.f32.gmra.mrb[10].mxu0 %vm715_vm0, %v436_v51 }
 0x11d   : > { %1347 = vmatprep.mubr.f32.mxu0 %v5292_v45 }
 0x120   : > { %3807 = vmatmul.mubr.msk.f32.gmra.mrb[12].mxu0 %vm715_vm0, %v443_v52 }
 0x121   : > { %1353 = vmatprep.mubr.f32.mxu0 %v5292_v45 }
 0x124   : > { %3808 = vmatmul.mubr.msk.f32.gmra.mrb[14].mxu0 %vm715_vm0, %v450_v53 }
 0x125   : > { %1359 = vmatprep.mubr.f32.mxu0 %v5292_v45 }
 0x128   : > { %3809 = vmatmul.mubr.msk.f32.gmra.mrb[16].mxu0 %vm715_vm0, %v457_v54 }
 0x129   : > { %1365 = vmatprep.mubr.f32.mxu0 %v5292_v45 }
 0x12c   : > { %3810 = vmatmul.mubr.msk.f32.gmra.mrb[18].mxu0 %vm715_vm0, %v464_v55 }
 0x12d   : > { %1371 = vmatprep.mubr.f32.mxu0 %v5292_v45 }
 0x130   : > { %3811 = vmatmul.mubr.msk.f32.gmra.mrb[20].mxu0 %vm715_vm0, %v471_v56  ;;  %v4425_v56 = vpack.c.bf16 %v1649_v50, %v1648_v49 }
 0x131   : > { %1377 = vmatprep.mubr.f32.mxu0 %v5292_v45 }
 0x134   : > { %3812 = vmatmul.mubr.msk.f32.gmra.mrb[22].mxu0 %vm715_vm0, %v478_v57 }
 0x135   : > { %1383 = vmatprep.mubr.f32.mxu0 %v5292_v45 }
 0x138   : > { %3813 = vmatmul.mubr.msk.f32.gmra.mrb[24].mxu0 %vm715_vm0, %v485_v58  ;;  %v1650_v58 = vld [vmem:[%s7906_s5 + $0x50] sm:$0xff] }
 0x139   : > { %1389 = vmatprep.mubr.f32.mxu0 %v5292_v45 }
 0x13c   : > { %3814 = vmatmul.mubr.msk.f32.gmra.mrb[26].mxu0 %vm715_vm0, %v492_v59  ;;  %v1651_v59 = vld [vmem:[%s7906_s5 + $0x58] sm:$0xff] }
 0x13d   : > { %1395 = vmatprep.mubr.f32.mxu0 %v5292_v45  ;;  %v4429_v1 = vpack.c.bf16 %v1651_v59, %v1650_v58 }
 0x140   : > { %3815 = vmatmul.mubr.msk.f32.gmra.mrb[28].mxu0 %vm715_vm0, %v499_v60 }
 0x141   : > { %1401 = vmatprep.mubr.f32.mxu0 %v5292_v45 }
 0x144   : > { %3816 = vmatmul.mubr.msk.f32.gmra.mrb[30].mxu0 %vm715_vm0, %v506_v61 }
 0x1db   : > { %v1313_v17 = vpop.f32.mrb[0].mxu0 }
 0x1dc   : > { %v4697_v18 = vadd.f32 %v1313_v17, %v6217_v15  ;;  %v1315_v19 = vpop.f32.mrb[1].mxu0 }
 0x1dd   : > { %v4698_v20 = vadd.f32 %v1315_v19, %v6220_v16 }
 0x1de   : > { %v1408_v25 = vmax.f32 %v4697_v18, 0.0 }
 0x1df   : > { %v1319_v23 = vpop.f32.mrb[2].mxu0  ;;  %v1409_v24 = vmax.f32 %v4698_v20, 0.0 }
 0x1e0   : > { %v4699_v26 = vadd.f32 %v1319_v23, %v6217_v15  ;;  %v1321_v27 = vpop.f32.mrb[3].mxu0 }
 0x1e1   : > { %v4700_v29 = vadd.f32 %v1321_v27, %v6220_v16  ;;  %1543 = vmatprep.mubr.f32.mxu1 %v1409_v24 }
 0x1e2   : > { %1544 = vmatmul.mubr.f32.vlgmr.msra.gmra.mrb[0].mxu1 %v1408_v25  ;;  %v1410_v34 = vmax.f32 %v4699_v26, 0.0 }
 0x1e3   : > { %v1411_v32 = vmax.f32 %v4700_v29, 0.0  ;;  %v1325_v33 = vpop.f32.mrb[4].mxu0  ;;  %4412 = vmatpush3.bf16.msra.mxu1 %v4409_v9 }
 0x1e4   : > { %v4701_v35 = vadd.f32 %v1325_v33, %v6217_v15  ;;  %v1327_v36 = vpop.f32.mrb[5].mxu0  ;;  %4414 = vmatprep.subr.bf16.mxu1 %v4413_v28 }
 0x1e5   : > { %v4702_v38 = vadd.f32 %v1327_v36, %v6220_v16  ;;  %1548 = vmatprep.mubr.f32.mxu1 %v1411_v32 }
 0x1e6   : > { %1549 = vmatmul.mubr.f32.gmra.mrb[2].mxu1 %v1410_v34  ;;  %v1412_v43 = vmax.f32 %v4701_v35, 0.0 }
 0x1e7   : > { %v1413_v41 = vmax.f32 %v4702_v38, 0.0  ;;  %v1331_v42 = vpop.f32.mrb[6].mxu0  ;;  %4416 = vmatpush3.bf16.msra.mxu1 %v4413_v28 }
 0x1e8   : > { %v4703_v44 = vadd.f32 %v1331_v42, %v6217_v15  ;;  %v1333_v46 = vpop.f32.mrb[7].mxu0  ;;  %4418 = vmatprep.subr.bf16.mxu1 %v4417_v37 }
 0x1e9   : > { %v4704_v48 = vadd.f32 %v1333_v46, %v6220_v16  ;;  %1553 = vmatprep.mubr.f32.mxu1 %v1413_v41 }
 0x1ea   : > { %1554 = vmatmul.mubr.f32.gmra.mrb[4].mxu1 %v1412_v43  ;;  %v1414_v53 = vmax.f32 %v4703_v44, 0.0 }
 0x1eb   : > { %v1415_v51 = vmax.f32 %v4704_v48, 0.0  ;;  %v1337_v52 = vpop.f32.mrb[8].mxu0  ;;  %4420 = vmatpush3.bf16.msra.mxu1 %v4417_v37 }
 0x1ec   : > { %v4705_v54 = vadd.f32 %v1337_v52, %v6217_v15  ;;  %v1339_v55 = vpop.f32.mrb[9].mxu0  ;;  %4422 = vmatprep.subr.bf16.mxu1 %v4421_v47 }
 0x1ed   : > { %v4706_v57 = vadd.f32 %v1339_v55, %v6220_v16  ;;  %1558 = vmatprep.mubr.f32.mxu1 %v1415_v51 }
 0x1ee   : > { %1559 = vmatmul.mubr.f32.gmra.mrb[6].mxu1 %v1414_v53  ;;  %v1416_v62 = vmax.f32 %v4705_v54, 0.0 }
 0x1ef   : > { %v1417_v60 = vmax.f32 %v4706_v57, 0.0  ;;  %v1343_v61 = vpop.f32.mrb[10].mxu0  ;;  %4424 = vmatpush3.bf16.msra.mxu1 %v4421_v47 }
 0x1f0   : > { %v4707_v63 = vadd.f32 %v1343_v61, %v6217_v15  ;;  %v1345_v0 = vpop.f32.mrb[11].mxu0  ;;  %4426 = vmatprep.subr.bf16.mxu1 %v4425_v56 }
 0x1f1   : > { %v4708_v2 = vadd.f32 %v1345_v0, %v6220_v16  ;;  %1563 = vmatprep.mubr.f32.mxu1 %v1417_v60 }
 0x1f2   : > { %1564 = vmatmul.mubr.f32.gmra.mrb[8].mxu1 %v1416_v62  ;;  %v1418_v7 = vmax.f32 %v4707_v63, 0.0 }
 0x1f3   : > { %v1419_v5 = vmax.f32 %v4708_v2, 0.0  ;;  %v1349_v6 = vpop.f32.mrb[12].mxu0  ;;  %4428 = vmatpush3.bf16.msra.mxu1 %v4425_v56 }
 0x1f4   : > { %v4709_v8 = vadd.f32 %v1349_v6, %v6217_v15  ;;  %v1351_v9 = vpop.f32.mrb[13].mxu0  ;;  %4430 = vmatprep.subr.bf16.mxu1 %v4429_v1 }
 0x1f5   : > { %v4710_v13 = vadd.f32 %v1351_v9, %v6220_v16  ;;  %1568 = vmatprep.mubr.f32.mxu1 %v1419_v5 }
 0x1f6   : > { %1569 = vmatmul.mubr.f32.gmra.mrb[10].mxu1 %v1418_v7  ;;  %v1420_v19 = vmax.f32 %v4709_v8, 0.0 }
 0x1f7   : > { %v1421_v17 = vmax.f32 %v4710_v13, 0.0  ;;  %v1355_v18 = vpop.f32.mrb[14].mxu0  ;;  %4432 = vmatpush3.bf16.msra.mxu1 %v4429_v1  ;;  %v1655_v13 = vld [vmem:[%s7906_s5 + $0x78] sm:$0xff] }
 0x1f8   : > { %v4711_v20 = vadd.f32 %v1355_v18, %v6217_v15  ;;  %v1357_v21 = vpop.f32.mrb[15].mxu0  ;;  %4434 = vmatprep.subr.bf16.mxu1 %v4433_v10 }
 0x1f9   : > { %v4712_v22 = vadd.f32 %v1357_v21, %v6220_v16  ;;  %1573 = vmatprep.mubr.f32.mxu1 %v1421_v17 }
 0x1fa   : > { %1574 = vmatmul.mubr.f32.gmra.mrb[12].mxu1 %v1420_v19  ;;  %v1422_v25 = vmax.f32 %v4711_v20, 0.0  ;;  %v6305_v20 = vld [vmem:[%s7905_s4] ss:$0 sm:$0xff] }
 0x1fb   : > { %v1423_v23 = vmax.f32 %v4712_v22, 0.0  ;;  %v1361_v24 = vpop.f32.mrb[16].mxu0  ;;  %4436 = vmatpush3.bf16.msra.mxu1 %v4433_v10  ;;  %v1654_v10 = vld [vmem:[%s7906_s5 + $0x70] sm:$0xff] }
 0x1fc   : > { %v4713_v26 = vadd.f32 %v1361_v24, %v6217_v15  ;;  %v1363_v27 = vpop.f32.mrb[17].mxu0  ;;  %v4437_v17 = vpack.c.bf16 %v1655_v13, %v1654_v10  ;;  %v1842_v10 = vld [vmem:[%s7908_s7 + $0x90] sm:$0xff]  ;;  %v1845_v13 = vld [vmem:[%s7908_s7 + $0xa8] sm:$0xff] }
 0x1fd   : > { %v4714_v28 = vadd.f32 %v1363_v27, %v6220_v16  ;;  %1578 = vmatprep.mubr.f32.mxu1 %v1423_v23 }
 0x1fe   : > { %1579 = vmatmul.mubr.f32.gmra.mrb[14].mxu1 %v1422_v25  ;;  %v1424_v31 = vmax.f32 %v4713_v26, 0.0  ;;  %4438 = vmatprep.subr.bf16.mxu1 %v4437_v17 }
 0x1ff   : > { %v1425_v29 = vmax.f32 %v4714_v28, 0.0  ;;  %v1367_v30 = vpop.f32.mrb[18].mxu0  ;;  %4440 = vmatpush3.bf16.msra.mxu1 %v4437_v17  ;;  %v1824_v28 = vld [vmem:[%s7908_s7] sm:$0xff]  ;;  %v1847_v17 = vld [vmem:[%s7908_s7 + $0xb8] sm:$0xff] }
 0x200   : > { %v4715_v32 = vadd.f32 %v1367_v30, %v6217_v15  ;;  %v1369_v33 = vpop.f32.mrb[19].mxu0  ;;  %v1829_v30 = vld [vmem:[%s7908_s7 + $0x28] sm:$0xff] }
 0x201   : > { %v4716_v34 = vadd.f32 %v1369_v33, %v6220_v16  ;;  %1583 = vmatprep.mubr.f32.mxu1 %v1425_v29  ;;  %v1826_v29 = vld [vmem:[%s7908_s7 + $0x10] sm:$0xff] }
 0x202   : > { %1584 = vmatmul.mubr.f32.gmra.mrb[16].mxu1 %v1424_v31  ;;  %v1426_v37 = vmax.f32 %v4715_v32, 0.0  ;;  %v1831_v31 = vld [vmem:[%s7908_s7 + $0x38] sm:$0xff] }
 0x203   : > { %v1427_v35 = vmax.f32 %v4716_v34, 0.0  ;;  %v1373_v36 = vpop.f32.mrb[20].mxu0 }
 0x204   : > { %v4717_v38 = vadd.f32 %v1373_v36, %v6217_v15  ;;  %v1375_v39 = vpop.f32.mrb[21].mxu0 }
 0x205   : > { %v4718_v40 = vadd.f32 %v1375_v39, %v6220_v16  ;;  %1588 = vmatprep.mubr.f32.mxu1 %v1427_v35  ;;  %v4443_v35 = vpack.c.bf16 %v1826_v29, %v1824_v28  ;;  %v1828_v39 = vld [vmem:[%s7908_s7 + $0x20] sm:$0xff] }
 0x206   : > { %1589 = vmatmul.mubr.f32.gmra.mrb[18].mxu1 %v1426_v37  ;;  %v1428_v43 = vmax.f32 %v4717_v38, 0.0  ;;  %v4445_v38 = vpack.c.bf16 %v1831_v31, %v1829_v30 }
 0x207   : > { %v1429_v41 = vmax.f32 %v4718_v40, 0.0  ;;  %v1379_v42 = vpop.f32.mrb[22].mxu0  ;;  %v1830_v40 = vld [vmem:[%s7908_s7 + $0x30] sm:$0xff] }
 0x208   : > { %v4719_v44 = vadd.f32 %v1379_v42, %v6217_v15  ;;  %v1381_v46 = vpop.f32.mrb[23].mxu0  ;;  %v1835_v42 = vld [vmem:[%s7908_s7 + $0x58] sm:$0xff] }
 0x209   : > { %v4720_v47 = vadd.f32 %v1381_v46, %v6220_v16  ;;  %1593 = vmatprep.mubr.f32.mxu1 %v1429_v41  ;;  %v1833_v41 = vld [vmem:[%s7908_s7 + $0x48] sm:$0xff] }
 0x20a   : > { %1594 = vmatmul.mubr.f32.gmra.mrb[20].mxu1 %v1428_v43  ;;  %v1430_v50 = vmax.f32 %v4719_v44, 0.0 }
 0x20b   : > { %v1431_v48 = vmax.f32 %v4720_v47, 0.0  ;;  %v1385_v49 = vpop.f32.mrb[24].mxu0  ;;  %v4447_v47 = vpack.c.bf16 %v1830_v40, %v1828_v39 }
 0x20c   : > { %v4721_v51 = vadd.f32 %v1385_v49, %v6217_v15  ;;  %v1387_v52 = vpop.f32.mrb[25].mxu0 }
 0x20d   : > { %v4722_v53 = vadd.f32 %v1387_v52, %v6220_v16  ;;  %1598 = vmatprep.mubr.f32.mxu1 %v1431_v48  ;;  %v1834_v52 = vld [vmem:[%s7908_s7 + $0x50] sm:$0xff] }
 0x20e   : > { %1599 = vmatmul.mubr.f32.gmra.mrb[22].mxu1 %v1430_v50  ;;  %v1432_v56 = vmax.f32 %v4721_v51, 0.0  ;;  %v4449_v50 = vpack.c.bf16 %v1835_v42, %v1833_v41  ;;  %v1832_v51 = vld [vmem:[%s7908_s7 + $0x40] sm:$0xff] }
 0x20f   : > { %v1433_v54 = vmax.f32 %v4722_v53, 0.0  ;;  %v1391_v55 = vpop.f32.mrb[26].mxu0  ;;  %v1837_v53 = vld [vmem:[%s7908_s7 + $0x68] sm:$0xff] }
 0x210   : > { %v4723_v57 = vadd.f32 %v1391_v55, %v6217_v15  ;;  %v1393_v58 = vpop.f32.mrb[27].mxu0 }
 0x211   : > { %v4724_v59 = vadd.f32 %v1393_v58, %v6220_v16  ;;  %1603 = vmatprep.mubr.f32.mxu1 %v1433_v54  ;;  %v1839_v54 = vld [vmem:[%s7908_s7 + $0x78] sm:$0xff]  ;;  %v4451_v58 = vpack.c.bf16 %v1834_v52, %v1832_v51 }
 0x212   : > { %1604 = vmatmul.mubr.f32.gmra.mrb[24].mxu1 %v1432_v56  ;;  %v1434_v62 = vmax.f32 %v4723_v57, 0.0 }
 0x213   : > { %v1435_v60 = vmax.f32 %v4724_v59, 0.0  ;;  %v1397_v61 = vpop.f32.mrb[28].mxu0 }
 0x214   : > { %v4725_v63 = vadd.f32 %v1397_v61, %v6217_v15  ;;  %v1399_v0 = vpop.f32.mrb[29].mxu0  ;;  %v4453_v61 = vpack.c.bf16 %v1839_v54, %v1837_v53 }
 0x215   : > { %v4726_v1 = vadd.f32 %v1399_v0, %v6220_v16  ;;  %1608 = vmatprep.mubr.f32.mxu1 %v1435_v60  ;;  %v1841_v0 = vld [vmem:[%s7908_s7 + $0x88] sm:$0xff] }
 0x216   : > { %1609 = vmatmul.mubr.f32.gmra.mrb[26].mxu1 %v1434_v62  ;;  %v1436_v4 = vmax.f32 %v4725_v63, 0.0  ;;  %v1836_v62 = vld [vmem:[%s7908_s7 + $0x60] sm:$0xff]  ;;  %v1838_v63 = vld [vmem:[%s7908_s7 + $0x70] sm:$0xff] }
 0x217   : > { %v1437_v2 = vmax.f32 %v4726_v1, 0.0  ;;  %v1403_v3 = vpop.f32.mrb[30].mxu0  ;;  %v1843_v1 = vld [vmem:[%s7908_s7 + $0x98] sm:$0xff] }
 0x218   : > { %v4727_v5 = vadd.f32 %v1403_v3, %v6217_v15  ;;  %v1405_v6 = vpop.f32.mrb[31].mxu0  ;;  %v1825_v15 = vld [vmem:[%s7908_s7 + $0x8] sm:$0xff] }
 0x219   : > { %v4728_v7 = vadd.f32 %v1405_v6, %v6220_v16  ;;  %1613 = vmatprep.mubr.f32.mxu1 %v1437_v2  ;;  %v1827_v16 = vld [vmem:[%s7908_s7 + $0x18] sm:$0xff] }
 0x21a   : > { %1614 = vmatmul.mubr.f32.gmra.mrb[28].mxu1 %v1436_v4  ;;  %v1438_v9 = vmax.f32 %v4727_v5, 0.0  ;;  %v4441_v18 = vpack.c.bf16 %v1827_v16, %v1825_v15  ;;  %v4455_v5 = vpack.c.bf16 %v1838_v63, %v1836_v62 }
 0x21b   : > { %v1439_v8 = vmax.f32 %v4728_v7, 0.0 }
 0x21c   : > { %4442 = vmatprep.subr.bf16.mxu1 %v4441_v18 }
 0x21d   : > { %1618 = vmatprep.mubr.f32.mxu1 %v1439_v8  ;;  %v4457_v8 = vpack.c.bf16 %v1843_v1, %v1841_v0 }
 0x21e   : > { %1619 = vmatmul.mubr.f32.gmra.mrb[30].mxu1 %v1438_v9  ;;  %v1840_v9 = vld [vmem:[%s7908_s7 + $0x80] sm:$0xff] }
 0x2b5   : > { %v3965_v19 = vpop.f32.mrb[0].mxu1 }
 0x2b6   : > { %v3966_v21 = vpop.f32.mrb[1].mxu1 }
 0x2b7   : > { %v3967_v22 = vadd.f32 %v3966_v21, %v3965_v19  ;;  %v4459_v19 = vpack.c.bf16 %v1842_v10, %v1840_v9 }
 0x2b9   : > { %v1546_v23 = vadd.f32 %v3967_v22, %v6305_v20  ;;  %v3968_v24 = vpop.f32.mrb[2].mxu1 }
 0x2ba   : > { %v3969_v25 = vpop.f32.mrb[3].mxu1 }
 0x2bb   : > { %v1624_v26 = vmax.f32 %v1546_v23, 0.0  ;;  %v3970_v27 = vadd.f32 %v3969_v25, %v3968_v24  ;;  %v4461_v23 = vpack.c.bf16 %v1847_v17, %v1845_v13  ;;  %v1844_v24 = vld [vmem:[%s7908_s7 + $0xa0] sm:$0xff]  ;;  %v1846_v25 = vld [vmem:[%s7908_s7 + $0xb0] sm:$0xff] }
 0x2bc   : > { %v4463_v31 = vpack.c.bf16 %v1846_v25, %v1844_v24  ;;  %v1852_v24 = vld [vmem:[%s7908_s7 + $0xe0] sm:$0xff] }
 0x2bd   : > { %v1551_v32 = vadd.f32 %v3970_v27, %v6305_v20  ;;  %v3971_v33 = vpop.f32.mrb[4].mxu1  ;;  %4157 = vmatprep.mubr.f32.mxu1 %v1624_v26  ;;  %v1849_v26 = vld [vmem:[%s7908_s7 + $0xc8] sm:$0xff]  ;;  %v1851_v27 = vld [vmem:[%s7908_s7 + $0xd8] sm:$0xff] }
 0x2be   : > { %v3972_v34 = vpop.f32.mrb[5].mxu1 }
 0x2bf   : > { %v1625_v36 = vmax.f32 %v1551_v32, 0.0  ;;  %v3973_v37 = vadd.f32 %v3972_v34, %v3971_v33  ;;  %v4465_v34 = vpack.c.bf16 %v1851_v27, %v1849_v26  ;;  %v2062_v26 = vld [vmem:[%s7910_s9 + $0x8] sm:$0xff]  ;;  %v2069_v27 = vld [vmem:[%s7910_s9 + $0x40] sm:$0xff] }
 0x2c1   : > { %v1556_v43 = vadd.f32 %v3973_v37, %v6305_v20  ;;  %v3974_v44 = vpop.f32.mrb[6].mxu1  ;;  %4158 = vmatmul.mubr.f32.vlgmr.msra.gmra.mrb[32].mxu1 %v1625_v36  ;;  %v1850_v36 = vld [vmem:[%s7908_s7 + $0xd0] sm:$0xff] }
 0x2c2   : > { %v3975_v46 = vpop.f32.mrb[7].mxu1  ;;  %4444 = vmatpush1.bf16.msra.mxu1 %v4443_v35  ;;  %v1848_v35 = vld [vmem:[%s7908_s7 + $0xc0] sm:$0xff] }
 0x2c3   : > { %v1626_v48 = vmax.f32 %v1556_v43, 0.0  ;;  %v3976_v49 = vadd.f32 %v3975_v46, %v3974_v44  ;;  %4446 = vmatprep.subr.bf16.mxu1 %v4445_v38  ;;  %v4467_v40 = vpack.c.bf16 %v1850_v36, %v1848_v35  ;;  %v2080_v35 = vld [vmem:[%s7910_s9 + $0x98] sm:$0xff]  ;;  %v2087_v36 = vld [vmem:[%s7910_s9 + $0xd0] sm:$0xff] }
 0x2c5   : > { %v1561_v55 = vadd.f32 %v3976_v49, %v6305_v20  ;;  %v3977_v56 = vpop.f32.mrb[8].mxu1  ;;  %4160 = vmatprep.mubr.f32.mxu1 %v1626_v48 }
 0x2c6   : > { %v3978_v57 = vpop.f32.mrb[9].mxu1  ;;  %4448 = vmatpush1.bf16.msra.mxu1 %v4447_v47 }
 0x2c7   : > { %v1627_v59 = vmax.f32 %v1561_v55, 0.0  ;;  %v3979_v60 = vadd.f32 %v3978_v57, %v3977_v56  ;;  %4450 = vmatprep.subr.bf16.mxu1 %v4449_v50 }
 0x2c9   : > { %v1566_v2 = vadd.f32 %v3979_v60, %v6305_v20  ;;  %v3980_v3 = vpop.f32.mrb[10].mxu1  ;;  %4161 = vmatmul.mubr.f32.gmra.mrb[34].mxu1 %v1627_v59 }
 0x2ca   : > { %v3981_v4 = vpop.f32.mrb[11].mxu1  ;;  %4452 = vmatpush1.bf16.msra.mxu1 %v4451_v58 }
 0x2cb   : > { %v1628_v6 = vmax.f32 %v1566_v2, 0.0  ;;  %v3982_v7 = vadd.f32 %v3981_v4, %v3980_v3  ;;  %4454 = vmatprep.subr.bf16.mxu1 %v4453_v61 }
 0x2cd   : > { %v1571_v15 = vadd.f32 %v3982_v7, %v6305_v20  ;;  %v3983_v16 = vpop.f32.mrb[12].mxu1  ;;  %4163 = vmatprep.mubr.f32.mxu1 %v1628_v6 }
 0x2ce   : > { %v3984_v18 = vpop.f32.mrb[13].mxu1  ;;  %4456 = vmatpush1.bf16.msra.mxu1 %v4455_v5 }
 0x2cf   : > { %v1629_v21 = vmax.f32 %v1571_v15, 0.0  ;;  %v3985_v22 = vadd.f32 %v3984_v18, %v3983_v16  ;;  %4458 = vmatprep.subr.bf16.mxu1 %v4457_v8 }
 0x2d1   : > { %v1576_v28 = vadd.f32 %v3985_v22, %v6305_v20  ;;  %v3986_v29 = vpop.f32.mrb[14].mxu1  ;;  %4164 = vmatmul.mubr.f32.gmra.mrb[36].mxu1 %v1629_v21  ;;  %v1853_v21 = vld [vmem:[%s7908_s7 + $0xe8] sm:$0xff]  ;;  %v1855_v22 = vld [vmem:[%s7908_s7 + $0xf8] sm:$0xff] }
 0x2d2   : > { %v3987_v30 = vpop.f32.mrb[15].mxu1  ;;  %4460 = vmatpush1.bf16.msra.mxu1 %v4459_v19 }
 0x2d3   : > { %v1630_v32 = vmax.f32 %v1576_v28, 0.0  ;;  %v3988_v33 = vadd.f32 %v3987_v30, %v3986_v29  ;;  %4462 = vmatprep.subr.bf16.mxu1 %v4461_v23  ;;  %v4469_v23 = vpack.c.bf16 %v1855_v22, %v1853_v21  ;;  %v2066_v28 = vld [vmem:[%s7910_s9 + $0x28] sm:$0xff]  ;;  %v4473_v29 = vpack.c.bf16 %v2069_v27, %v2062_v26  ;;  %v2073_v30 = vld [vmem:[%s7910_s9 + $0x60] sm:$0xff]  ;;  %v2184_v22 = vld [vmem:[%s7910_s9 + $0x3d8] sm:$0xff] }
 0x2d4   : > { %v2177_v21 = vld [vmem:[%s7910_s9 + $0x3a0] sm:$0xff]  ;;  %v2191_v26 = vld [vmem:[%s7910_s9 + $0x410] sm:$0xff]  ;;  %v2198_v27 = vld [vmem:[%s7910_s9 + $0x448] sm:$0xff] }
 0x2d5   : > { %v1581_v37 = vadd.f32 %v3988_v33, %v6305_v20  ;;  %v3989_v38 = vpop.f32.mrb[16].mxu1  ;;  %4166 = vmatprep.mubr.f32.mxu1 %v1630_v32  ;;  %v2065_v32 = vld [vmem:[%s7910_s9 + $0x20] sm:$0xff]  ;;  %v2072_v33 = vld [vmem:[%s7910_s9 + $0x58] sm:$0xff] }
 0x2d6   : > { %v3990_v39 = vpop.f32.mrb[17].mxu1  ;;  %4464 = vmatpush1.bf16.msra.mxu1 %v4463_v31  ;;  %v4601_v31 = vpack.c.bf16 %v2073_v30, %v2066_v28  ;;  %v2206_v28 = vld [vmem:[%s7910_s9 + $0x488] sm:$0xff]  ;;  %v4639_v30 = vpack.c.bf16 %v2198_v27, %v2191_v26  ;;  %v2103_v26 = vld [vmem:[%s7910_s9 + $0x150] sm:$0xff] }
 0x2d7   : > { %v1631_v41 = vmax.f32 %v1581_v37, 0.0  ;;  %v3991_v42 = vadd.f32 %v3990_v39, %v3989_v38  ;;  %4466 = vmatprep.subr.bf16.mxu1 %v4465_v34  ;;  %v4603_v34 = vpack.c.bf16 %v2072_v33, %v2065_v32  ;;  %v4605_v37 = vpack.c.bf16 %v2087_v36, %v2080_v35  ;;  %v2079_v38 = vld [vmem:[%s7910_s9 + $0x90] sm:$0xff]  ;;  %v2086_v39 = vld [vmem:[%s7910_s9 + $0xc8] sm:$0xff]  ;;  %v2205_v32 = vld [vmem:[%s7910_s9 + $0x480] sm:$0xff] }
 0x2d8   : > { %4602 = vmatprep.subr.bf16.mxu0 %v4601_v31  ;;  %v2212_v33 = vld [vmem:[%s7910_s9 + $0x4b8] sm:$0xff]  ;;  %v2227_v35 = vld [vmem:[%s7910_s9 + $0x530] sm:$0xff]  ;;  %v2110_v27 = vld [vmem:[%s7910_s9 + $0x188] sm:$0xff] }
 0x2d9   : > { %v1586_v43 = vadd.f32 %v3991_v42, %v6305_v20  ;;  %v3992_v44 = vpop.f32.mrb[18].mxu1  ;;  %4167 = vmatmul.mubr.f32.gmra.mrb[38].mxu1 %v1631_v41  ;;  %4604 = vmatpush1.bf16.msra.mxu0 %v4603_v34  ;;  %v2094_v41 = vld [vmem:[%s7910_s9 + $0x108] sm:$0xff]  ;;  %v2101_v42 = vld [vmem:[%s7910_s9 + $0x140] sm:$0xff]  ;;  %v2220_v34 = vld [vmem:[%s7910_s9 + $0x4f8] sm:$0xff]  ;;  %v4643_v36 = vpack.c.bf16 %v2212_v33, %v2205_v32 }
 0x2da   : > { %v3993_v46 = vpop.f32.mrb[19].mxu1  ;;  %4468 = vmatpush1.bf16.msra.mxu1 %v4467_v40  ;;  %4606 = vmatprep.subr.bf16.mxu0 %v4605_v37  ;;  %v4607_v40 = vpack.c.bf16 %v2086_v39, %v2079_v38  ;;  %v4645_v37 = vpack.c.bf16 %v2227_v35, %v2220_v34  ;;  %v2219_v38 = vld [vmem:[%s7910_s9 + $0x4f0] sm:$0xff]  ;;  %v2226_v39 = vld [vmem:[%s7910_s9 + $0x528] sm:$0xff]  ;;  %v2117_v34 = vld [vmem:[%s7910_s9 + $0x1c0] sm:$0xff] }
 0x2db   : > { %v1632_v47 = vmax.f32 %v1586_v43, 0.0  ;;  %v3994_v48 = vadd.f32 %v3993_v46, %v3992_v44  ;;  %4470 = vmatprep.subr.bf16.mxu1 %v4469_v23  ;;  %v4609_v43 = vpack.c.bf16 %v2101_v42, %v2094_v41  ;;  %v2093_v44 = vld [vmem:[%s7910_s9 + $0x100] sm:$0xff]  ;;  %v2100_v46 = vld [vmem:[%s7910_s9 + $0x138] sm:$0xff]  ;;  %v4647_v42 = vpack.c.bf16 %v2226_v39, %v2219_v38  ;;  %v2139_v38 = vld [vmem:[%s7910_s9 + $0x270] sm:$0xff] }
 0x2dc   : > { %v2192_v23 = vld [vmem:[%s7910_s9 + $0x418] sm:$0xff]  ;;  %v2241_v41 = vld [vmem:[%s7910_s9 + $0x5a0] sm:$0xff] }
 0x2dd   : > { %v1591_v49 = vadd.f32 %v3994_v48, %v6305_v20  ;;  %v3995_v50 = vpop.f32.mrb[20].mxu1  ;;  %4169 = vmatprep.mubr.f32.mxu1 %v1632_v47  ;;  %v2108_v47 = vld [vmem:[%s7910_s9 + $0x178] sm:$0xff]  ;;  %4608 = vmatpush1.bf16.msra.mxu0 %v4607_v40  ;;  %v4611_v48 = vpack.c.bf16 %v2100_v46, %v2093_v44  ;;  %v2234_v40 = vld [vmem:[%s7910_s9 + $0x568] sm:$0xff]  ;;  %v2233_v44 = vld [vmem:[%s7910_s9 + $0x560] sm:$0xff] }
 0x2de   : > { %v3996_v51 = vpop.f32.mrb[21].mxu1  ;;  %4610 = vmatprep.subr.bf16.mxu0 %v4609_v43  ;;  %v4649_v43 = vpack.c.bf16 %v2241_v41, %v2234_v40  ;;  %v2240_v46 = vld [vmem:[%s7910_s9 + $0x598] sm:$0xff] }
 0x2df   : > { %v1633_v52 = vmax.f32 %v1591_v49, 0.0  ;;  %v3997_v53 = vadd.f32 %v3996_v51, %v3995_v50  ;;  %v2115_v49 = vld [vmem:[%s7910_s9 + $0x1b0] sm:$0xff]  ;;  %v2124_v35 = vld [vmem:[%s7910_s9 + $0x1f8] sm:$0xff] }
 0x2e0   : > { %v4613_v50 = vpack.c.bf16 %v2115_v49, %v2108_v47  ;;  %v2107_v51 = vld [vmem:[%s7910_s9 + $0x170] sm:$0xff]  ;;  %v2248_v47 = vld [vmem:[%s7910_s9 + $0x5d8] sm:$0xff]  ;;  %v4651_v49 = vpack.c.bf16 %v2240_v46, %v2233_v44  ;;  %v4491_v40 = vpack.c.bf16 %v2124_v35, %v2117_v34  ;;  %v2138_v46 = vld [vmem:[%s7910_s9 + $0x268] sm:$0xff] }
 0x2e1   : > { %v1596_v54 = vadd.f32 %v3997_v53, %v6305_v20  ;;  %v3998_v55 = vpop.f32.mrb[22].mxu1  ;;  %4170 = vmatmul.mubr.f32.gmra.mrb[40].mxu1 %v1633_v52  ;;  %v2114_v52 = vld [vmem:[%s7910_s9 + $0x1a8] sm:$0xff]  ;;  %4612 = vmatpush1.bf16.msra.mxu0 %v4611_v48  ;;  %v2255_v48 = vld [vmem:[%s7910_s9 + $0x610] sm:$0xff] }
 0x2e2   : > { %v3999_v56 = vpop.f32.mrb[23].mxu1  ;;  %v2122_v53 = vld [vmem:[%s7910_s9 + $0x1e8] sm:$0xff]  ;;  %4614 = vmatprep.subr.bf16.mxu0 %v4613_v50  ;;  %v4653_v50 = vpack.c.bf16 %v2255_v48, %v2248_v47  ;;  %v2131_v44 = vld [vmem:[%s7910_s9 + $0x230] sm:$0xff]  ;;  %v2153_v48 = vld [vmem:[%s7910_s9 + $0x2e0] sm:$0xff] }
 0x2e3   : > { %v1634_v57 = vmax.f32 %v1596_v54, 0.0  ;;  %v4000_v58 = vadd.f32 %v3999_v56, %v3998_v55  ;;  %v2129_v54 = vld [vmem:[%s7910_s9 + $0x220] sm:$0xff]  ;;  %v4615_v55 = vpack.c.bf16 %v2114_v52, %v2107_v51  ;;  %v2247_v51 = vld [vmem:[%s7910_s9 + $0x5d0] sm:$0xff]  ;;  %v2254_v52 = vld [vmem:[%s7910_s9 + $0x608] sm:$0xff] }
 0x2e4   : > { %v4617_v56 = vpack.c.bf16 %v2129_v54, %v2122_v53  ;;  %v2262_v53 = vld [vmem:[%s7910_s9 + $0x648] sm:$0xff]  ;;  %v2269_v54 = vld [vmem:[%s7910_s9 + $0x680] sm:$0xff] }
 0x2e5   : > { %v1601_v59 = vadd.f32 %v4000_v58, %v6305_v20  ;;  %v4001_v60 = vpop.f32.mrb[24].mxu1  ;;  %4172 = vmatprep.mubr.f32.mxu1 %v1634_v57  ;;  %v2121_v57 = vld [vmem:[%s7910_s9 + $0x1e0] sm:$0xff]  ;;  %v2128_v58 = vld [vmem:[%s7910_s9 + $0x218] sm:$0xff]  ;;  %4616 = vmatpush1.bf16.msra.mxu0 %v4615_v55  ;;  %v4655_v55 = vpack.c.bf16 %v2254_v52, %v2247_v51  ;;  %v2146_v47 = vld [vmem:[%s7910_s9 + $0x2a8] sm:$0xff] }
 0x2e6   : > { %v4002_v61 = vpop.f32.mrb[25].mxu1  ;;  %4618 = vmatprep.subr.bf16.mxu0 %v4617_v56  ;;  %v4657_v56 = vpack.c.bf16 %v2269_v54, %v2262_v53  ;;  %v4497_v52 = vpack.c.bf16 %v2153_v48, %v2146_v47  ;;  %v2145_v53 = vld [vmem:[%s7910_s9 + $0x2a0] sm:$0xff]  ;;  %v2152_v54 = vld [vmem:[%s7910_s9 + $0x2d8] sm:$0xff] }
 0x2e7   : > { %v1635_v62 = vmax.f32 %v1601_v59, 0.0  ;;  %v4003_v63 = vadd.f32 %v4002_v61, %v4001_v60  ;;  %v2136_v59 = vld [vmem:[%s7910_s9 + $0x258] sm:$0xff]  ;;  %v2143_v60 = vld [vmem:[%s7910_s9 + $0x290] sm:$0xff]  ;;  %v4619_v61 = vpack.c.bf16 %v2128_v58, %v2121_v57  ;;  %v6597_v57 = vld [vmem:[%s7907_s6] ss:$0 sm:$0xff] }
 0x2e8   : > { %v2229_v48 = vld [vmem:[%s7910_s9 + $0x540] sm:$0xff] }
 0x2e9   : > { %v1606_v0 = vadd.f32 %v4003_v63, %v6305_v20  ;;  %v4004_v1 = vpop.f32.mrb[26].mxu1  ;;  %4173 = vmatmul.mubr.f32.gmra.mrb[42].mxu1 %v1635_v62  ;;  %v4621_v62 = vpack.c.bf16 %v2143_v60, %v2136_v59  ;;  %v2135_v63 = vld [vmem:[%s7910_s9 + $0x250] sm:$0xff]  ;;  %4620 = vmatpush1.bf16.msra.mxu0 %v4619_v61  ;;  %v2061_v59 = vld [vmem:[%s7910_s9] sm:$0xff]  ;;  %v2068_v60 = vld [vmem:[%s7910_s9 + $0x38] sm:$0xff] }
 0x2ea   : > { %v4005_v2 = vpop.f32.mrb[27].mxu1 }
 0x2eb   : > { %v1636_v3 = vmax.f32 %v1606_v0, 0.0  ;;  %v4006_v4 = vadd.f32 %v4005_v2, %v4004_v1  ;;  %v2142_v0 = vld [vmem:[%s7910_s9 + $0x288] sm:$0xff]  ;;  %v2157_v2 = vld [vmem:[%s7910_s9 + $0x300] sm:$0xff]  ;;  %4622 = vmatprep.subr.bf16.mxu0 %v4621_v62  ;;  %v2076_v62 = vld [vmem:[%s7910_s9 + $0x78] sm:$0xff] }
 0x2ec   : > { %v2150_v1 = vld [vmem:[%s7910_s9 + $0x2c8] sm:$0xff] }
 0x2ed   : > { %v1611_v5 = vadd.f32 %v4006_v4, %v6305_v20  ;;  %v4007_v6 = vpop.f32.mrb[28].mxu1  ;;  %4175 = vmatprep.mubr.f32.mxu1 %v1636_v3  ;;  %v4623_v3 = vpack.c.bf16 %v2142_v0, %v2135_v63  ;;  %v4625_v4 = vpack.c.bf16 %v2157_v2, %v2150_v1  ;;  %v2083_v63 = vld [vmem:[%s7910_s9 + $0xb0] sm:$0xff]  ;;  %v4475_v1 = vpack.c.bf16 %v2068_v60, %v2061_v59 }
 0x2ee   : > { %v4008_v7 = vpop.f32.mrb[29].mxu1  ;;  %v4499_v60 = vpack.c.bf16 %v2152_v54, %v2145_v53 }
 0x2ef   : > { %v1637_v8 = vmax.f32 %v1611_v5, 0.0  ;;  %v4009_v9 = vadd.f32 %v4008_v7, %v4007_v6  ;;  %v2149_v5 = vld [vmem:[%s7910_s9 + $0x2c0] sm:$0xff]  ;;  %v2156_v6 = vld [vmem:[%s7910_s9 + $0x2f8] sm:$0xff]  ;;  %4624 = vmatpush1.bf16.msra.mxu0 %v4623_v3 }
 0x2f0   : > { %v2164_v7 = vld [vmem:[%s7910_s9 + $0x338] sm:$0xff]  ;;  %4626 = vmatprep.subr.bf16.mxu0 %v4625_v4  ;;  %v4477_v4 = vpack.c.bf16 %v2083_v63, %v2076_v62 }
 0x2f1   : > { %v1616_v10 = vadd.f32 %v4009_v9, %v6305_v20  ;;  %v4010_v13 = vpop.f32.mrb[30].mxu1  ;;  %4176 = vmatmul.mubr.f32.gmra.mrb[44].mxu1 %v1637_v8  ;;  %v2171_v8 = vld [vmem:[%s7910_s9 + $0x370] sm:$0xff]  ;;  %v4627_v9 = vpack.c.bf16 %v2156_v6, %v2149_v5  ;;  %v2082_v6 = vld [vmem:[%s7910_s9 + $0xa8] sm:$0xff] }
 0x2f2   : > { %v4011_v17 = vpop.f32.mrb[31].mxu1  ;;  %v2075_v5 = vld [vmem:[%s7910_s9 + $0x70] sm:$0xff] }
 0x2f3   : > { %v1638_v15 = vmax.f32 %v1616_v10, 0.0  ;;  %v4012_v16 = vadd.f32 %v4011_v17, %v4010_v13  ;;  %v4629_v10 = vpack.c.bf16 %v2171_v8, %v2164_v7  ;;  %v2163_v13 = vld [vmem:[%s7910_s9 + $0x330] sm:$0xff]  ;;  %v2170_v17 = vld [vmem:[%s7910_s9 + $0x368] sm:$0xff]  ;;  %4628 = vmatpush1.bf16.msra.mxu0 %v4627_v9  ;;  %v2097_v8 = vld [vmem:[%s7910_s9 + $0x120] sm:$0xff]  ;;  %v4479_v9 = vpack.c.bf16 %v2082_v6, %v2075_v5 }
 0x2f4   : > { %v2090_v7 = vld [vmem:[%s7910_s9 + $0xe8] sm:$0xff] }
 0x2f5   : > { %v1621_v18 = vadd.f32 %v4012_v16, %v6305_v20  ;;  %4178 = vmatprep.mubr.f32.mxu1 %v1638_v15  ;;  %v1854_v20 = vld [vmem:[%s7908_s7 + $0xf0] sm:$0xff]  ;;  %v2178_v15 = vld [vmem:[%s7910_s9 + $0x3a8] sm:$0xff]  ;;  %v2185_v16 = vld [vmem:[%s7910_s9 + $0x3e0] sm:$0xff]  ;;  %4630 = vmatprep.subr.bf16.mxu0 %v4629_v10 }
 0x2f6   : > { %v4471_v25 = vpack.c.bf16 %v1854_v20, %v1852_v24  ;;  %v2199_v24 = vld [vmem:[%s7910_s9 + $0x450] sm:$0xff]  ;;  %v4635_v20 = vpack.c.bf16 %v2184_v22, %v2177_v21 }
 0x2f7   : > { %v1639_v19 = vmax.f32 %v1621_v18, 0.0  ;;  %v4631_v18 = vpack.c.bf16 %v2170_v17, %v2163_v13  ;;  %v4481_v17 = vpack.c.bf16 %v2097_v8, %v2090_v7  ;;  %v2111_v21 = vld [vmem:[%s7910_s9 + $0x190] sm:$0xff]  ;;  %v2173_v8 = vld [vmem:[%s7910_s9 + $0x380] sm:$0xff] }
 0x2f8   : > { %4472 = vmatpush1.bf16.msra.mxu1 %v4471_v25  ;;  %v4637_v25 = vpack.c.bf16 %v2199_v24, %v2192_v23 }
 0x2f9   : > { %4179 = vmatmul.mubr.f32.gmra.mrb[46].mxu1 %v1639_v19  ;;  %4474 = vmatprep.subr.bf16.mxu1 %v4473_v29  ;;  %v4633_v19 = vpack.c.bf16 %v2185_v16, %v2178_v15  ;;  %v2213_v29 = vld [vmem:[%s7910_s9 + $0x4c0] sm:$0xff]  ;;  %v2096_v16 = vld [vmem:[%s7910_s9 + $0x118] sm:$0xff] }
 0x2fa   : > { %1932 = vmatprep.mubr.f32.mxu1 %v5292_v45  ;;  %4632 = vmatpush1.bf16.msra.mxu0 %v4631_v18  ;;  %v4641_v31 = vpack.c.bf16 %v2213_v29, %v2206_v28  ;;  %v2089_v15 = vld [vmem:[%s7910_s9 + $0xe0] sm:$0xff]  ;;  %v2118_v28 = vld [vmem:[%s7910_s9 + $0x1c8] sm:$0xff] }
 0x2fb   : > { %4634 = vmatprep.subr.bf16.mxu0 %v4633_v19  ;;  %v2104_v19 = vld [vmem:[%s7910_s9 + $0x158] sm:$0xff]  ;;  %v4483_v23 = vpack.c.bf16 %v2096_v16, %v2089_v15  ;;  %v2125_v29 = vld [vmem:[%s7910_s9 + $0x200] sm:$0xff] }
 0x2fc   : > { %v4489_v33 = vpack.c.bf16 %v2125_v29, %v2118_v28  ;;  %v2201_v29 = vld [vmem:[%s7910_s9 + $0x460] sm:$0xff] }
 0x2fe   : > { %4636 = vmatpush1.bf16.msra.mxu0 %v4635_v20 }
 0x2ff   : > { %4638 = vmatprep.subr.bf16.mxu0 %v4637_v25  ;;  %v4485_v25 = vpack.c.bf16 %v2111_v21, %v2104_v19 }
 0x302   : > { %4640 = vmatpush1.bf16.msra.mxu0 %v4639_v30  ;;  %v4487_v30 = vpack.c.bf16 %v2110_v27, %v2103_v26 }
 0x303   : > { %4642 = vmatprep.subr.bf16.mxu0 %v4641_v31 }
 0x306   : > { %4644 = vmatpush1.bf16.msra.mxu0 %v4643_v36 }
 0x307   : > { %4646 = vmatprep.subr.bf16.mxu0 %v4645_v37  ;;  %v2132_v37 = vld [vmem:[%s7910_s9 + $0x238] sm:$0xff] }
 0x30a   : > { %4648 = vmatpush1.bf16.msra.mxu0 %v4647_v42 }
 0x30b   : > { %4650 = vmatprep.subr.bf16.mxu0 %v4649_v43  ;;  %v4493_v43 = vpack.c.bf16 %v2139_v38, %v2132_v37 }
 0x30e   : > { %4652 = vmatpush1.bf16.msra.mxu0 %v4651_v49  ;;  %v4495_v49 = vpack.c.bf16 %v2138_v46, %v2131_v44 }
 0x30f   : > { %4654 = vmatprep.subr.bf16.mxu0 %v4653_v50 }
 0x312   : > { %4656 = vmatpush1.bf16.msra.mxu0 %v4655_v55 }
 0x313   : > { %4658 = vmatprep.subr.bf16.mxu0 %v4657_v56  ;;  %v2160_v56 = vld [vmem:[%s7910_s9 + $0x318] sm:$0xff] }
 0x394   : > { %v4159_v58 = vpop.f32.mrb[32].mxu1 }
 0x395   : > { %v1729_v61 = vpop.f32.mrb[33].mxu1  ;;  %v1735_v2 = vadd.f32 %v4159_v58, %v6597_v57  ;;  %v2167_v58 = vld [vmem:[%s7910_s9 + $0x350] sm:$0xff] }
 0x396   : > { %v1730_v0 = vadd.f32 %v6597_v57, %v1729_v61  ;;  %v4501_v63 = vpack.c.bf16 %v2167_v58, %v2160_v56 }
 0x397   : > { %v1809_v10 = vmax.f32 %v1735_v2, 0.0  ;;  %v2174_v2 = vld [vmem:[%s7910_s9 + $0x388] sm:$0xff] }
 0x398   : > { %v1808_v3 = vmax.f32 %v1730_v0, 0.0  ;;  %v2159_v0 = vld [vmem:[%s7910_s9 + $0x310] sm:$0xff] }
 0x39a   : > { %1933 = vmatmul.mubr.f32.vlgmr.msra.gmra.mrb[48].mxu1 %v1808_v3  ;;  %v2181_v3 = vld [vmem:[%s7910_s9 + $0x3c0] sm:$0xff] }
 0x39b   : > { %1938 = vmatprep.mubr.f32.mxu1 %v5292_v45  ;;  %4476 = vmatpush1.bf16.msra.mxu1 %v4475_v1  ;;  %v2166_v1 = vld [vmem:[%s7910_s9 + $0x348] sm:$0xff]  ;;  %v4505_v7 = vpack.c.bf16 %v2181_v3, %v2174_v2 }
 0x39c   : > { %v4162_v13 = vpop.f32.mrb[34].mxu1  ;;  %4478 = vmatprep.subr.bf16.mxu1 %v4477_v4  ;;  %v4503_v4 = vpack.c.bf16 %v2166_v1, %v2159_v0 }
 0x39d   : > { %v1739_v18 = vpop.f32.mrb[35].mxu1  ;;  %v1745_v24 = vadd.f32 %v4162_v13, %v6597_v57  ;;  %v2188_v13 = vld [vmem:[%s7910_s9 + $0x3f8] sm:$0xff] }
 0x39e   : > { %v1740_v22 = vadd.f32 %v6597_v57, %v1739_v18  ;;  %1939 = vmatmul.mubr.f32.gmra.mrb[50].mxu1 %v1809_v10 }
 0x39f   : > { %1944 = vmatprep.mubr.f32.mxu1 %v5292_v45  ;;  %4480 = vmatpush1.bf16.msra.mxu1 %v4479_v9  ;;  %v1811_v31 = vmax.f32 %v1745_v24, 0.0  ;;  %v2180_v9 = vld [vmem:[%s7910_s9 + $0x3b8] sm:$0xff]  ;;  %v2202_v24 = vld [vmem:[%s7910_s9 + $0x468] sm:$0xff] }
 0x3a0   : > { %v1810_v20 = vmax.f32 %v1740_v22, 0.0  ;;  %4482 = vmatprep.subr.bf16.mxu1 %v4481_v17  ;;  %v2195_v17 = vld [vmem:[%s7910_s9 + $0x430] sm:$0xff]  ;;  %v4507_v16 = vpack.c.bf16 %v2180_v9, %v2173_v8  ;;  %v2257_v8 = vld [vmem:[%s7910_s9 + $0x620] sm:$0xff]  ;;  %v2264_v9 = vld [vmem:[%s7910_s9 + $0x658] sm:$0xff] }
 0x3a1   : > { %v4509_v21 = vpack.c.bf16 %v2195_v17, %v2188_v13  ;;  %v2187_v22 = vld [vmem:[%s7910_s9 + $0x3f0] sm:$0xff]  ;;  %v2268_v13 = vld [vmem:[%s7910_s9 + $0x678] sm:$0xff] }
 0x3a2   : > { %1945 = vmatmul.mubr.f32.gmra.mrb[52].mxu1 %v1810_v20  ;;  %v2209_v20 = vld [vmem:[%s7910_s9 + $0x4a0] sm:$0xff]  ;;  %v2272_v17 = vld [vmem:[%s7910_s9 + $0x698] sm:$0xff] }
 0x3a3   : > { %1950 = vmatprep.mubr.f32.mxu1 %v5292_v45  ;;  %4484 = vmatpush1.bf16.msra.mxu1 %v4483_v23  ;;  %v2194_v23 = vld [vmem:[%s7910_s9 + $0x428] sm:$0xff]  ;;  %v4513_v28 = vpack.c.bf16 %v2209_v20, %v2202_v24  ;;  %v2275_v20 = vld [vmem:[%s7910_s9 + $0x6b0] sm:$0xff] }
 0x3a4   : > { %v4165_v32 = vpop.f32.mrb[36].mxu1  ;;  %4486 = vmatprep.subr.bf16.mxu1 %v4485_v25  ;;  %v4511_v25 = vpack.c.bf16 %v2194_v23, %v2187_v22  ;;  %v2278_v22 = vld [vmem:[%s7910_s9 + $0x6c8] sm:$0xff] }
 0x3a5   : > { %v1749_v36 = vpop.f32.mrb[37].mxu1  ;;  %v1755_v41 = vadd.f32 %v4165_v32, %v6597_v57  ;;  %v2216_v32 = vld [vmem:[%s7910_s9 + $0x4d8] sm:$0xff] }
 0x3a6   : > { %v1750_v39 = vadd.f32 %v6597_v57, %v1749_v36  ;;  %1951 = vmatmul.mubr.f32.gmra.mrb[54].mxu1 %v1811_v31 }
 0x3a7   : > { %1956 = vmatprep.mubr.f32.mxu1 %v5292_v45  ;;  %4488 = vmatpush1.bf16.msra.mxu1 %v4487_v30  ;;  %v1813_v50 = vmax.f32 %v1755_v41, 0.0  ;;  %v2208_v30 = vld [vmem:[%s7910_s9 + $0x498] sm:$0xff]  ;;  %v2230_v41 = vld [vmem:[%s7910_s9 + $0x548] sm:$0xff] }
 0x3a8   : > { %v1812_v42 = vmax.f32 %v1750_v39, 0.0  ;;  %4490 = vmatprep.subr.bf16.mxu1 %v4489_v33  ;;  %v2223_v33 = vld [vmem:[%s7910_s9 + $0x510] sm:$0xff]  ;;  %v4515_v35 = vpack.c.bf16 %v2208_v30, %v2201_v29  ;;  %v1856_v30 = vld [vmem:[%s7909_s8] sm:$0x3] }
 0x3a9   : > { %v4517_v38 = vpack.c.bf16 %v2223_v33, %v2216_v32  ;;  %v2215_v39 = vld [vmem:[%s7910_s9 + $0x4d0] sm:$0xff]  ;;  %v6847_v32 = vrot.slane %v1856_v30, %v6214_v14 }
 0x3aa   : > { %1957 = vmatmul.mubr.f32.gmra.mrb[56].mxu1 %v1812_v42  ;;  %v2237_v42 = vld [vmem:[%s7910_s9 + $0x580] sm:$0xff] }
 0x3ab   : > { %1962 = vmatprep.mubr.f32.mxu1 %v5292_v45  ;;  %4492 = vmatpush1.bf16.msra.mxu1 %v4491_v40  ;;  %v2222_v40 = vld [vmem:[%s7910_s9 + $0x508] sm:$0xff]  ;;  %v4521_v47 = vpack.c.bf16 %v2237_v42, %v2230_v41 }
 0x3ac   : > { %v4168_v51 = vpop.f32.mrb[38].mxu1  ;;  %4494 = vmatprep.subr.bf16.mxu1 %v4493_v43  ;;  %v4519_v43 = vpack.c.bf16 %v2222_v40, %v2215_v39  ;;  %v2078_v39 = vld [vmem:[%s7910_s9 + $0x88] sm:$0xff]  ;;  %v2085_v40 = vld [vmem:[%s7910_s9 + $0xc0] sm:$0xff] }
 0x3ad   : > { %v1759_v55 = vpop.f32.mrb[39].mxu1  ;;  %v1765_v61 = vadd.f32 %v4168_v51, %v6597_v57  ;;  %v2244_v51 = vld [vmem:[%s7910_s9 + $0x5b8] sm:$0xff] }
 0x3ae   : > { %v1760_v59 = vadd.f32 %v6597_v57, %v1759_v55  ;;  %1963 = vmatmul.mubr.f32.gmra.mrb[58].mxu1 %v1813_v50 }
 0x3af   : > { %1968 = vmatprep.mubr.f32.mxu1 %v5292_v45  ;;  %4496 = vmatpush1.bf16.msra.mxu1 %v4495_v49  ;;  %v1815_v5 = vmax.f32 %v1765_v61, 0.0  ;;  %v2236_v49 = vld [vmem:[%s7910_s9 + $0x578] sm:$0xff]  ;;  %v2258_v61 = vld [vmem:[%s7910_s9 + $0x628] sm:$0xff] }
 0x3b0   : > { %v1814_v62 = vmax.f32 %v1760_v59, 0.0  ;;  %4498 = vmatprep.subr.bf16.mxu1 %v4497_v52  ;;  %v2251_v52 = vld [vmem:[%s7910_s9 + $0x5f0] sm:$0xff]  ;;  %v4523_v54 = vpack.c.bf16 %v2236_v49, %v2229_v48  ;;  %v4541_v48 = vpack.c.bf16 %v2085_v40, %v2078_v39  ;;  %v2077_v49 = vld [vmem:[%s7910_s9 + $0x80] sm:$0xff]  ;;  %v2148_v40 = vld [vmem:[%s7910_s9 + $0x2b8] sm:$0xff] }
 0x3b1   : > { %v4525_v58 = vpack.c.bf16 %v2251_v52, %v2244_v51  ;;  %v2243_v59 = vld [vmem:[%s7910_s9 + $0x5b0] sm:$0xff]  ;;  %v2092_v52 = vld [vmem:[%s7910_s9 + $0xf8] sm:$0xff] }
 0x3b2   : > { %1969 = vmatmul.mubr.f32.gmra.mrb[60].mxu1 %v1814_v62  ;;  %v2265_v62 = vld [vmem:[%s7910_s9 + $0x660] sm:$0xff] }
 0x3b3   : > { %1974 = vmatprep.mubr.f32.mxu1 %v5292_v45  ;;  %4500 = vmatpush1.bf16.msra.mxu1 %v4499_v60  ;;  %v2250_v60 = vld [vmem:[%s7910_s9 + $0x5e8] sm:$0xff]  ;;  %v4529_v2 = vpack.c.bf16 %v2265_v62, %v2258_v61  ;;  %v2091_v62 = vld [vmem:[%s7910_s9 + $0xf0] sm:$0xff] }
 0x3b4   : > { %v4171_v6 = vpop.f32.mrb[40].mxu1  ;;  %4502 = vmatprep.subr.bf16.mxu1 %v4501_v63  ;;  %v4527_v63 = vpack.c.bf16 %v2250_v60, %v2243_v59 }
 0x3b5   : > { %v1769_v10 = vpop.f32.mrb[41].mxu1  ;;  %v1775_v18 = vadd.f32 %v4171_v6, %v6597_v57 }
 0x3b6   : > { %v1770_v15 = vadd.f32 %v6597_v57, %v1769_v10  ;;  %1975 = vmatmul.mubr.f32.gmra.mrb[62].mxu1 %v1815_v5  ;;  %v2261_v10 = vld [vmem:[%s7910_s9 + $0x640] sm:$0xff] }
 0x3b7   : > { %1980 = vmatprep.mubr.f32.mxu1 %v5292_v45  ;;  %4504 = vmatpush1.bf16.msra.mxu1 %v4503_v4  ;;  %v1817_v26 = vmax.f32 %v1775_v18, 0.0 }
 0x3b8   : > { %v1816_v19 = vmax.f32 %v1770_v15, 0.0  ;;  %4506 = vmatprep.subr.bf16.mxu1 %v4505_v7  ;;  %v2279_v15 = vld [vmem:[%s7910_s9 + $0x6d0] sm:$0xff] }
 0x3b9   : > { %v4533_v18 = vpack.c.bf16 %v2279_v15, %v2272_v17  ;;  %v2127_v17 = vld [vmem:[%s7910_s9 + $0x210] sm:$0xff] }
 0x3ba   : > { %1981 = vmatmul.mubr.f32.gmra.mrb[64].mxu1 %v1816_v19  ;;  %v2283_v19 = vld [vmem:[%s7910_s9 + $0x6f0] sm:$0xff] }
 0x3bb   : > { %1986 = vmatprep.mubr.f32.mxu1 %v5292_v45  ;;  %4508 = vmatpush1.bf16.msra.mxu1 %v4507_v16  ;;  %v2276_v16 = vld [vmem:[%s7910_s9 + $0x6b8] sm:$0xff] }
 0x3bc   : > { %v4174_v27 = vpop.f32.mrb[42].mxu1  ;;  %4510 = vmatprep.subr.bf16.mxu1 %v4509_v21  ;;  %v2271_v21 = vld [vmem:[%s7910_s9 + $0x690] sm:$0xff]  ;;  %v4661_v23 = vpack.c.bf16 %v2283_v19, %v2276_v16 }
 0x3bd   : > { %v1779_v31 = vpop.f32.mrb[43].mxu1  ;;  %v1785_v36 = vadd.f32 %v4174_v27, %v6597_v57  ;;  %v4535_v24 = vpack.c.bf16 %v2278_v22, %v2271_v21  ;;  %v2064_v27 = vld [vmem:[%s7910_s9 + $0x18] sm:$0xff] }
 0x3be   : > { %v1780_v34 = vadd.f32 %v6597_v57, %v1779_v31  ;;  %1987 = vmatmul.mubr.f32.gmra.mrb[66].mxu1 %v1817_v26  ;;  %v6844_v31 = vrot.slane %v1856_v30, %v6208_v12 }
 0x3bf   : > { %1992 = vmatprep.mubr.f32.mxu1 %v5292_v45  ;;  %4512 = vmatpush1.bf16.msra.mxu1 %v4511_v25  ;;  %v1819_v44 = vmax.f32 %v1785_v36, 0.0  ;;  %v2282_v25 = vld [vmem:[%s7910_s9 + $0x6e8] sm:$0xff]  ;;  %v2063_v36 = vld [vmem:[%s7910_s9 + $0x10] sm:$0xff] }
 0x3c0   : > { %v1818_v37 = vmax.f32 %v1780_v34, 0.0  ;;  %4514 = vmatprep.subr.bf16.mxu1 %v4513_v28  ;;  %v4663_v26 = vpack.c.bf16 %v2282_v25, %v2275_v20  ;;  %v2071_v28 = vld [vmem:[%s7910_s9 + $0x50] sm:$0xff]  ;;  %v2126_v20 = vld [vmem:[%s7910_s9 + $0x208] sm:$0xff] }
 0x3c1   : > { %v4537_v29 = vpack.c.bf16 %v2071_v28, %v2064_v27  ;;  %v2141_v27 = vld [vmem:[%s7910_s9 + $0x280] sm:$0xff] }
 0x3c2   : > { %1993 = vmatmul.mubr.f32.gmra.mrb[68].mxu1 %v1818_v37  ;;  %v2070_v37 = vld [vmem:[%s7910_s9 + $0x48] sm:$0xff] }
 0x3c3   : > { %1998 = vmatprep.mubr.f32.mxu1 %v5292_v45  ;;  %4516 = vmatpush1.bf16.msra.mxu1 %v4515_v35 }
 0x3c4   : > { %v4177_v46 = vpop.f32.mrb[44].mxu1  ;;  %4518 = vmatprep.subr.bf16.mxu1 %v4517_v38 }
 0x3c5   : > { %v1789_v50 = vpop.f32.mrb[45].mxu1  ;;  %v1795_v55 = vadd.f32 %v4177_v46, %v6597_v57 }
 0x3c6   : > { %v1790_v53 = vadd.f32 %v6597_v57, %v1789_v50  ;;  %1999 = vmatmul.mubr.f32.gmra.mrb[70].mxu1 %v1819_v44  ;;  %v2084_v50 = vld [vmem:[%s7910_s9 + $0xb8] sm:$0xff] }
 0x3c7   : > { %2004 = vmatprep.mubr.f32.mxu1 %v5292_v45  ;;  %4520 = vmatpush1.bf16.msra.mxu1 %v4519_v43  ;;  %v1821_v0 = vmax.f32 %v1795_v55, 0.0  ;;  %v4539_v43 = vpack.c.bf16 %v2070_v37, %v2063_v36  ;;  %v2133_v37 = vld [vmem:[%s7910_s9 + $0x240] sm:$0xff] }
 0x3c8   : > { %v1820_v56 = vmax.f32 %v1790_v53, 0.0  ;;  %4522 = vmatprep.subr.bf16.mxu1 %v4521_v47  ;;  %v2099_v53 = vld [vmem:[%s7910_s9 + $0x130] sm:$0xff] }
 0x3c9   : > { %v4545_v61 = vpack.c.bf16 %v2099_v53, %v2092_v52  ;;  %v2147_v52 = vld [vmem:[%s7910_s9 + $0x2b0] sm:$0xff]  ;;  %v2154_v53 = vld [vmem:[%s7910_s9 + $0x2e8] sm:$0xff] }
 0x3ca   : > { %2005 = vmatmul.mubr.f32.gmra.mrb[72].mxu1 %v1820_v56  ;;  %v4543_v56 = vpack.c.bf16 %v2084_v50, %v2077_v49 }
 0x3cb   : > { %2010 = vmatprep.mubr.f32.mxu1 %v5292_v45  ;;  %4524 = vmatpush1.bf16.msra.mxu1 %v4523_v54 }
 0x3cc   : > { %v4180_v1 = vpop.f32.mrb[46].mxu1  ;;  %4526 = vmatprep.subr.bf16.mxu1 %v4525_v58 }
 0x3cd   : > { %v1799_v3 = vpop.f32.mrb[47].mxu1  ;;  %v1805_v5 = vadd.f32 %v4180_v1, %v6597_v57  ;;  %v2106_v1 = vld [vmem:[%s7910_s9 + $0x168] sm:$0xff] }
 0x3ce   : > { %v1800_v4 = vadd.f32 %v6597_v57, %v1799_v3  ;;  %2011 = vmatmul.mubr.f32.gmra.mrb[74].mxu1 %v1821_v0  ;;  %v4531_v57 = vpack.c.bf16 %v2264_v9, %v2257_v8 }
 0x3cf   : > { %2016 = vmatprep.mubr.f32.mxu1 %v5292_v45  ;;  %4528 = vmatpush1.bf16.msra.mxu1 %v4527_v63  ;;  %v1823_v7 = vmax.f32 %v1805_v5, 0.0  ;;  %v2098_v63 = vld [vmem:[%s7910_s9 + $0x128] sm:$0xff] }
 0x3d0   : > { %v1822_v6 = vmax.f32 %v1800_v4, 0.0  ;;  %4530 = vmatprep.subr.bf16.mxu1 %v4529_v2  ;;  %v2113_v2 = vld [vmem:[%s7910_s9 + $0x1a0] sm:$0xff]  ;;  %v4547_v5 = vpack.c.bf16 %v2098_v63, %v2091_v62  ;;  %v4563_v62 = vpack.c.bf16 %v2154_v53, %v2147_v52  ;;  %v2203_v53 = vld [vmem:[%s7910_s9 + $0x470] sm:$0xff] }
 0x3d1   : > { %v4549_v9 = vpack.c.bf16 %v2113_v2, %v2106_v1 }
 0x3d2   : > { %2017 = vmatmul.mubr.f32.gmra.mrb[76].mxu1 %v1822_v6 }
 0x3d3   : > { %2022 = vmatprep.mubr.f32.mxu1 %v5292_v45  ;;  %v4659_v45 = vpack.c.bf16 %v2268_v13, %v2261_v10  ;;  %4532 = vmatpush1.bf16.msra.mxu1 %v4531_v57  ;;  %v2105_v10 = vld [vmem:[%s7910_s9 + $0x160] sm:$0xff]  ;;  %v2112_v57 = vld [vmem:[%s7910_s9 + $0x198] sm:$0xff] }
 0x3d4   : > { %4534 = vmatprep.subr.bf16.mxu1 %v4533_v18  ;;  %v4551_v18 = vpack.c.bf16 %v2112_v57, %v2105_v10 }
 0x3d5   : > { %4660 = vmatpush1.bf16.msra.mxu0 %v4659_v45  ;;  %v2120_v45 = vld [vmem:[%s7910_s9 + $0x1d8] sm:$0xff] }
 0x3d6   : > { %2023 = vmatmul.mubr.f32.gmra.mrb[78].mxu1 %v1823_v7  ;;  %4662 = vmatprep.subr.bf16.mxu0 %v4661_v23  ;;  %v4553_v23 = vpack.c.bf16 %v2127_v17, %v2120_v45 }
 0x3d7   : > { %4536 = vmatpush1.bf16.msra.mxu1 %v4535_v24  ;;  %v2119_v24 = vld [vmem:[%s7910_s9 + $0x1d0] sm:$0xff] }
 0x3d8   : > { %4538 = vmatprep.subr.bf16.mxu1 %v4537_v29  ;;  %v4555_v30 = vpack.c.bf16 %v2126_v20, %v2119_v24  ;;  %v2190_v24 = vld [vmem:[%s7910_s9 + $0x408] sm:$0xff]  ;;  %v2197_v20 = vld [vmem:[%s7910_s9 + $0x440] sm:$0xff] }
 0x3d9   : > { %4664 = vmatpush1.bf16.msra.mxu0 %v4663_v26  ;;  %v2134_v26 = vld [vmem:[%s7910_s9 + $0x248] sm:$0xff] }
 0x3da   : > { %v4557_v36 = vpack.c.bf16 %v2141_v27, %v2134_v26 }
 0x46d   : > { %v1934_v33 = vpop.f32.mrb[48].mxu1 }
 0x46e   : > { %v1935_v34 = vadd.f32 %v1934_v33, %v6844_v31  ;;  %v1936_v35 = vpop.f32.mrb[49].mxu1 }
 0x46f   : > { %v1937_v38 = vadd.f32 %v1936_v35, %v6847_v32 }
 0x470   : > { %v6865_v44 = vmax.f32 %v1935_v34, 0.0 }
 0x471   : > { %v6863_v41 = vmax.f32 %v1937_v38, 0.0  ;;  %v1940_v42 = vpop.f32.mrb[50].mxu1  ;;  %v2140_v38 = vld [vmem:[%s7910_s9 + $0x278] sm:$0xff] }
 0x472   : > { %v1941_v46 = vadd.f32 %v1940_v42, %v6844_v31  ;;  %v1942_v47 = vpop.f32.mrb[51].mxu1  ;;  %v2155_v42 = vld [vmem:[%s7910_s9 + $0x2f0] sm:$0xff] }
 0x473   : > { %v1943_v51 = vadd.f32 %v1942_v47, %v6847_v32  ;;  %2386 = vmatprep.mubr.f32.mxu1 %v6863_v41  ;;  %2708 = vmatprep.mubr.f32.mxu0 %v6863_v41  ;;  %v4559_v47 = vpack.c.bf16 %v2140_v38, %v2133_v37  ;;  %v2196_v37 = vld [vmem:[%s7910_s9 + $0x438] sm:$0xff] }
 0x474   : > { %2387 = vmatmul.mubr.f32.vlgmr.msra.gmra.mrb[80].mxu1 %v6865_v44  ;;  %2709 = vmatmul.mubr.f32.vlgmr.msra.gmra.mrb[32].mxu0 %v6865_v44  ;;  %v6887_v58 = vmax.f32 %v1941_v46, 0.0 }
 0x475   : > { %v6885_v54 = vmax.f32 %v1943_v51, 0.0  ;;  %v1946_v55 = vpop.f32.mrb[52].mxu1  ;;  %4540 = vmatpush1.bf16.msra.mxu1 %v4539_v43  ;;  %v4561_v51 = vpack.c.bf16 %v2155_v42, %v2148_v40  ;;  %v2211_v40 = vld [vmem:[%s7910_s9 + $0x4b0] sm:$0xff] }
 0x476   : > { %v1947_v59 = vadd.f32 %v1946_v55, %v6844_v31  ;;  %v1948_v60 = vpop.f32.mrb[53].mxu1  ;;  %4542 = vmatprep.subr.bf16.mxu1 %v4541_v48 }
 0x477   : > { %v1949_v0 = vadd.f32 %v1948_v60, %v6847_v32  ;;  %2392 = vmatprep.mubr.f32.mxu1 %v6885_v54  ;;  %2714 = vmatprep.mubr.f32.mxu0 %v6885_v54 }
 0x478   : > { %2393 = vmatmul.mubr.f32.gmra.mrb[82].mxu1 %v6887_v58  ;;  %2715 = vmatmul.mubr.f32.gmra.mrb[34].mxu0 %v6887_v58  ;;  %v6909_v6 = vmax.f32 %v1947_v59, 0.0  ;;  %v2169_v59 = vld [vmem:[%s7910_s9 + $0x360] sm:$0xff] }
 0x479   : > { %v6907_v3 = vmax.f32 %v1949_v0, 0.0  ;;  %v1952_v4 = vpop.f32.mrb[54].mxu1  ;;  %4544 = vmatpush1.bf16.msra.mxu1 %v4543_v56  ;;  %v2162_v56 = vld [vmem:[%s7910_s9 + $0x328] sm:$0xff] }
 0x47a   : > { %v1953_v7 = vadd.f32 %v1952_v4, %v6844_v31  ;;  %v1954_v8 = vpop.f32.mrb[55].mxu1  ;;  %4546 = vmatprep.subr.bf16.mxu1 %v4545_v61  ;;  %v4565_v2 = vpack.c.bf16 %v2169_v59, %v2162_v56  ;;  %v2161_v4 = vld [vmem:[%s7910_s9 + $0x320] sm:$0xff]  ;;  %v2218_v59 = vld [vmem:[%s7910_s9 + $0x4e8] sm:$0xff] }
 0x47b   : > { %v1955_v13 = vadd.f32 %v1954_v8, %v6847_v32  ;;  %2398 = vmatprep.mubr.f32.mxu1 %v6907_v3  ;;  %2720 = vmatprep.mubr.f32.mxu0 %v6907_v3  ;;  %v2176_v8 = vld [vmem:[%s7910_s9 + $0x398] sm:$0xff] }
 0x47c   : > { %2399 = vmatmul.mubr.f32.gmra.mrb[84].mxu1 %v6909_v6  ;;  %2721 = vmatmul.mubr.f32.gmra.mrb[36].mxu0 %v6909_v6  ;;  %v6931_v19 = vmax.f32 %v1953_v7, 0.0 }
 0x47d   : > { %v6929_v15 = vmax.f32 %v1955_v13, 0.0  ;;  %v1958_v16 = vpop.f32.mrb[56].mxu1  ;;  %4548 = vmatpush1.bf16.msra.mxu1 %v4547_v5  ;;  %v2168_v5 = vld [vmem:[%s7910_s9 + $0x358] sm:$0xff] }
 0x47e   : > { %v1959_v21 = vadd.f32 %v1958_v16, %v6844_v31  ;;  %v1960_v22 = vpop.f32.mrb[57].mxu1  ;;  %4550 = vmatprep.subr.bf16.mxu1 %v4549_v9  ;;  %v2183_v9 = vld [vmem:[%s7910_s9 + $0x3d0] sm:$0xff]  ;;  %v4567_v13 = vpack.c.bf16 %v2168_v5, %v2161_v4 }
 0x47f   : > { %v1961_v25 = vadd.f32 %v1960_v22, %v6847_v32  ;;  %2404 = vmatprep.mubr.f32.mxu1 %v6929_v15  ;;  %2726 = vmatprep.mubr.f32.mxu0 %v6929_v15  ;;  %v2182_v22 = vld [vmem:[%s7910_s9 + $0x3c8] sm:$0xff] }
 0x480   : > { %2405 = vmatmul.mubr.f32.gmra.mrb[86].mxu1 %v6931_v19  ;;  %2727 = vmatmul.mubr.f32.gmra.mrb[38].mxu0 %v6931_v19  ;;  %v6953_v33 = vmax.f32 %v1959_v21, 0.0  ;;  %v2175_v21 = vld [vmem:[%s7910_s9 + $0x390] sm:$0xff] }
 0x481   : > { %v6951_v28 = vmax.f32 %v1961_v25, 0.0  ;;  %v1964_v29 = vpop.f32.mrb[58].mxu1  ;;  %4552 = vmatpush1.bf16.msra.mxu1 %v4551_v18  ;;  %v4569_v18 = vpack.c.bf16 %v2183_v9, %v2176_v8  ;;  %v4571_v27 = vpack.c.bf16 %v2182_v22, %v2175_v21  ;;  %v2217_v8 = vld [vmem:[%s7910_s9 + $0x4e0] sm:$0xff]  ;;  %v2224_v9 = vld [vmem:[%s7910_s9 + $0x518] sm:$0xff] }
 0x482   : > { %v1965_v34 = vadd.f32 %v1964_v29, %v6844_v31  ;;  %v1966_v35 = vpop.f32.mrb[59].mxu1  ;;  %4554 = vmatprep.subr.bf16.mxu1 %v4553_v23  ;;  %v4583_v21 = vpack.c.bf16 %v2224_v9, %v2217_v8  ;;  %v2266_v8 = vld [vmem:[%s7910_s9 + $0x668] sm:$0xff] }
 0x483   : > { %v1967_v39 = vadd.f32 %v1966_v35, %v6847_v32  ;;  %2410 = vmatprep.mubr.f32.mxu1 %v6951_v28  ;;  %2732 = vmatprep.mubr.f32.mxu0 %v6951_v28  ;;  %v4573_v35 = vpack.c.bf16 %v2197_v20, %v2190_v24 }
 0x484   : > { %2411 = vmatmul.mubr.f32.gmra.mrb[88].mxu1 %v6953_v33  ;;  %2733 = vmatmul.mubr.f32.gmra.mrb[40].mxu0 %v6953_v33  ;;  %v6975_v48 = vmax.f32 %v1965_v34, 0.0 }
 0x485   : > { %v6973_v43 = vmax.f32 %v1967_v39, 0.0  ;;  %v1970_v46 = vpop.f32.mrb[60].mxu1  ;;  %4556 = vmatpush1.bf16.msra.mxu1 %v4555_v30  ;;  %v2204_v39 = vld [vmem:[%s7910_s9 + $0x478] sm:$0xff] }
 0x486   : > { %v1971_v49 = vadd.f32 %v1970_v46, %v6844_v31  ;;  %v1972_v50 = vpop.f32.mrb[61].mxu1  ;;  %4558 = vmatprep.subr.bf16.mxu1 %v4557_v36  ;;  %v2189_v36 = vld [vmem:[%s7910_s9 + $0x400] sm:$0xff]  ;;  %v4577_v52 = vpack.c.bf16 %v2211_v40, %v2204_v39 }
 0x487   : > { %v1973_v55 = vadd.f32 %v1972_v50, %v6847_v32  ;;  %2416 = vmatprep.mubr.f32.mxu1 %v6973_v43  ;;  %2738 = vmatprep.mubr.f32.mxu0 %v6973_v43 }
 0x488   : > { %2417 = vmatmul.mubr.f32.gmra.mrb[90].mxu1 %v6975_v48  ;;  %2739 = vmatmul.mubr.f32.gmra.mrb[42].mxu0 %v6975_v48  ;;  %v6997_v63 = vmax.f32 %v1971_v49, 0.0 }
 0x489   : > { %v6995_v60 = vmax.f32 %v1973_v55, 0.0  ;;  %v1976_v61 = vpop.f32.mrb[62].mxu1  ;;  %4560 = vmatpush1.bf16.msra.mxu1 %v4559_v47  ;;  %v4575_v47 = vpack.c.bf16 %v2196_v37, %v2189_v36  ;;  %v2210_v55 = vld [vmem:[%s7910_s9 + $0x4a8] sm:$0xff] }
 0x48a   : > { %v1977_v0 = vadd.f32 %v1976_v61, %v6844_v31  ;;  %v1978_v1 = vpop.f32.mrb[63].mxu1  ;;  %4562 = vmatprep.subr.bf16.mxu1 %v4561_v51  ;;  %v2225_v61 = vld [vmem:[%s7910_s9 + $0x520] sm:$0xff] }
 0x48b   : > { %v1979_v7 = vadd.f32 %v1978_v1, %v6847_v32  ;;  %2422 = vmatprep.mubr.f32.mxu1 %v6995_v60  ;;  %2744 = vmatprep.mubr.f32.mxu0 %v6995_v60  ;;  %v4579_v1 = vpack.c.bf16 %v2210_v55, %v2203_v53  ;;  %v2260_v53 = vld [vmem:[%s7910_s9 + $0x638] sm:$0xff]  ;;  %v2267_v55 = vld [vmem:[%s7910_s9 + $0x670] sm:$0xff] }
 0x48c   : > { %2423 = vmatmul.mubr.f32.gmra.mrb[92].mxu1 %v6997_v63  ;;  %2745 = vmatmul.mubr.f32.gmra.mrb[44].mxu0 %v6997_v63  ;;  %v7019_v45 = vmax.f32 %v1977_v0, 0.0 }
 0x48d   : > { %v7017_v10 = vmax.f32 %v1979_v7, 0.0  ;;  %v1982_v57 = vpop.f32.mrb[64].mxu1  ;;  %4564 = vmatpush1.bf16.msra.mxu1 %v4563_v62  ;;  %v4581_v7 = vpack.c.bf16 %v2225_v61, %v2218_v59 }
 0x48e   : > { %v1983_v17 = vadd.f32 %v1982_v57, %v6844_v31  ;;  %v1984_v16 = vpop.f32.mrb[65].mxu1  ;;  %4566 = vmatprep.subr.bf16.mxu1 %v4565_v2 }
 0x48f   : > { %v1985_v23 = vadd.f32 %v1984_v16, %v6847_v32  ;;  %2428 = vmatprep.mubr.f32.mxu1 %v7017_v10  ;;  %2750 = vmatprep.mubr.f32.mxu0 %v7017_v10 }
 0x490   : > { %2429 = vmatmul.mubr.f32.gmra.mrb[94].mxu1 %v7019_v45  ;;  %2751 = vmatmul.mubr.f32.gmra.mrb[46].mxu0 %v7019_v45  ;;  %v7041_v29 = vmax.f32 %v1983_v17, 0.0  ;;  %v2239_v17 = vld [vmem:[%s7910_s9 + $0x590] sm:$0xff] }
 0x491   : > { %v7039_v25 = vmax.f32 %v1985_v23, 0.0  ;;  %v1988_v26 = vpop.f32.mrb[66].mxu1  ;;  %4568 = vmatpush1.bf16.msra.mxu1 %v4567_v13  ;;  %v2232_v13 = vld [vmem:[%s7910_s9 + $0x558] sm:$0xff] }
 0x492   : > { %v1989_v30 = vadd.f32 %v1988_v26, %v6844_v31  ;;  %v1990_v34 = vpop.f32.mrb[67].mxu1  ;;  %4570 = vmatprep.subr.bf16.mxu1 %v4569_v18  ;;  %v4585_v20 = vpack.c.bf16 %v2239_v17, %v2232_v13  ;;  %v2231_v26 = vld [vmem:[%s7910_s9 + $0x550] sm:$0xff]  ;;  %v2281_v13 = vld [vmem:[%s7910_s9 + $0x6e0] sm:$0xff] }
 0x493   : > { %v1991_v38 = vadd.f32 %v1990_v34, %v6847_v32  ;;  %2434 = vmatprep.mubr.f32.mxu1 %v7039_v25  ;;  %2756 = vmatprep.mubr.f32.mxu0 %v7039_v25  ;;  %v2246_v34 = vld [vmem:[%s7910_s9 + $0x5c8] sm:$0xff] }
 0x494   : > { %2435 = vmatmul.mubr.f32.gmra.mrb[96].mxu1 %v7041_v29  ;;  %2757 = vmatmul.mubr.f32.gmra.mrb[48].mxu0 %v7041_v29  ;;  %v7063_v49 = vmax.f32 %v1989_v30, 0.0 }
 0x495   : > { %v7061_v42 = vmax.f32 %v1991_v38, 0.0  ;;  %v1994_v46 = vpop.f32.mrb[68].mxu1  ;;  %4572 = vmatpush1.bf16.msra.mxu1 %v4571_v27  ;;  %v2238_v27 = vld [vmem:[%s7910_s9 + $0x588] sm:$0xff] }
 0x496   : > { %v1995_v50 = vadd.f32 %v1994_v46, %v6844_v31  ;;  %v1996_v51 = vpop.f32.mrb[69].mxu1  ;;  %4574 = vmatprep.subr.bf16.mxu1 %v4573_v35  ;;  %v2253_v35 = vld [vmem:[%s7910_s9 + $0x600] sm:$0xff]  ;;  %v4587_v38 = vpack.c.bf16 %v2238_v27, %v2231_v26 }
 0x497   : > { %v1997_v56 = vadd.f32 %v1996_v51, %v6847_v32  ;;  %2440 = vmatprep.mubr.f32.mxu1 %v7061_v42  ;;  %2762 = vmatprep.mubr.f32.mxu0 %v7061_v42  ;;  %v2252_v51 = vld [vmem:[%s7910_s9 + $0x5f8] sm:$0xff]  ;;  %v2273_v27 = vld [vmem:[%s7910_s9 + $0x6a0] sm:$0xff] }
 0x498   : > { %2441 = vmatmul.mubr.f32.gmra.mrb[98].mxu1 %v7063_v49  ;;  %2763 = vmatmul.mubr.f32.gmra.mrb[50].mxu0 %v7063_v49  ;;  %v7085_v2 = vmax.f32 %v1995_v50, 0.0  ;;  %v2245_v50 = vld [vmem:[%s7910_s9 + $0x5c0] sm:$0xff] }
 0x499   : > { %v7083_v62 = vmax.f32 %v1997_v56, 0.0  ;;  %v2000_v0 = vpop.f32.mrb[70].mxu1  ;;  %4576 = vmatpush1.bf16.msra.mxu1 %v4575_v47  ;;  %v4589_v47 = vpack.c.bf16 %v2253_v35, %v2246_v34  ;;  %v4591_v61 = vpack.c.bf16 %v2252_v51, %v2245_v50  ;;  %v2186_v35 = vld [vmem:[%s7910_s9 + $0x3e8] sm:$0xff]  ;;  %v2193_v50 = vld [vmem:[%s7910_s9 + $0x420] sm:$0xff]  ;;  %v2200_v51 = vld [vmem:[%s7910_s9 + $0x458] sm:$0xff] }
 0x49a   : > { %v2001_v4 = vadd.f32 %v2000_v0, %v6844_v31  ;;  %v2002_v5 = vpop.f32.mrb[71].mxu1  ;;  %4578 = vmatprep.subr.bf16.mxu1 %v4577_v52 }
 0x49b   : > { %v2003_v57 = vadd.f32 %v2002_v5, %v6847_v32  ;;  %2446 = vmatprep.mubr.f32.mxu1 %v7083_v62  ;;  %2768 = vmatprep.mubr.f32.mxu0 %v7083_v62  ;;  %v4593_v5 = vpack.c.bf16 %v2267_v55, %v2260_v53  ;;  %v4669_v53 = vpack.c.bf16 %v2200_v51, %v2193_v50  ;;  %v2081_v55 = vld [vmem:[%s7910_s9 + $0xa0] sm:$0xff]  ;;  %v2144_v50 = vld [vmem:[%s7910_s9 + $0x298] sm:$0xff]  ;;  %v2263_v51 = vld [vmem:[%s7910_s9 + $0x650] sm:$0xff] }
 0x49c   : > { %2447 = vmatmul.mubr.f32.gmra.mrb[100].mxu1 %v7085_v2  ;;  %2769 = vmatmul.mubr.f32.gmra.mrb[52].mxu0 %v7085_v2  ;;  %v7107_v22 = vmax.f32 %v2001_v4, 0.0 }
 0x49d   : > { %v7105_v16 = vmax.f32 %v2003_v57, 0.0  ;;  %v2006_v18 = vpop.f32.mrb[72].mxu1  ;;  %4580 = vmatpush1.bf16.msra.mxu1 %v4579_v1  ;;  %v2274_v57 = vld [vmem:[%s7910_s9 + $0x6a8] sm:$0xff] }
 0x49e   : > { %v2007_v23 = vadd.f32 %v2006_v18, %v6844_v31  ;;  %v2008_v24 = vpop.f32.mrb[73].mxu1  ;;  %4582 = vmatprep.subr.bf16.mxu1 %v4581_v7  ;;  %v2259_v7 = vld [vmem:[%s7910_s9 + $0x630] sm:$0xff]  ;;  %v4597_v26 = vpack.c.bf16 %v2281_v13, %v2274_v57  ;;  %v2228_v57 = vld [vmem:[%s7910_s9 + $0x538] sm:$0xff] }
 0x49f   : > { %v2009_v30 = vadd.f32 %v2008_v24, %v6847_v32  ;;  %2452 = vmatprep.mubr.f32.mxu1 %v7105_v16  ;;  %2774 = vmatprep.mubr.f32.mxu0 %v7105_v16 }
 0x4a0   : > { %2453 = vmatmul.mubr.f32.gmra.mrb[102].mxu1 %v7107_v22  ;;  %2775 = vmatmul.mubr.f32.gmra.mrb[54].mxu0 %v7107_v22  ;;  %v7129_v39 = vmax.f32 %v2007_v23, 0.0 }
 0x4a1   : > { %v7127_v36 = vmax.f32 %v2009_v30, 0.0  ;;  %v2012_v37 = vpop.f32.mrb[74].mxu1  ;;  %4584 = vmatpush1.bf16.msra.mxu1 %v4583_v21  ;;  %v4595_v21 = vpack.c.bf16 %v2266_v8, %v2259_v7  ;;  %v2280_v30 = vld [vmem:[%s7910_s9 + $0x6d8] sm:$0xff]  ;;  %v2095_v7 = vld [vmem:[%s7910_s9 + $0x110] sm:$0xff]  ;;  %v2102_v8 = vld [vmem:[%s7910_s9 + $0x148] sm:$0xff] }
 0x4a2   : > { %v2013_v40 = vadd.f32 %v2012_v37, %v6844_v31  ;;  %v2014_v46 = vpop.f32.mrb[75].mxu1  ;;  %4586 = vmatprep.subr.bf16.mxu1 %v4585_v20  ;;  %v4675_v13 = vpack.c.bf16 %v2102_v8, %v2095_v7  ;;  %v2165_v8 = vld [vmem:[%s7910_s9 + $0x340] sm:$0xff] }
 0x4a3   : > { %v2015_v52 = vadd.f32 %v2014_v46, %v6847_v32  ;;  %2458 = vmatprep.mubr.f32.mxu1 %v7127_v36  ;;  %2780 = vmatprep.mubr.f32.mxu0 %v7127_v36  ;;  %v2067_v46 = vld [vmem:[%s7910_s9 + $0x30] sm:$0xff] }
 0x4a4   : > { %2459 = vmatmul.mubr.f32.gmra.mrb[104].mxu1 %v7129_v39  ;;  %2781 = vmatmul.mubr.f32.gmra.mrb[56].mxu0 %v7129_v39  ;;  %v7151_v0 = vmax.f32 %v2013_v40, 0.0 }
 0x4a5   : > { %v7149_v56 = vmax.f32 %v2015_v52, 0.0  ;;  %v2018_v59 = vpop.f32.mrb[76].mxu1  ;;  %4588 = vmatpush1.bf16.msra.mxu1 %v4587_v38 }
 0x4a6   : > { %v2019_v1 = vadd.f32 %v2018_v59, %v6844_v31  ;;  %v2020_v4 = vpop.f32.mrb[77].mxu1  ;;  %4590 = vmatprep.subr.bf16.mxu1 %v4589_v47  ;;  %v2074_v47 = vld [vmem:[%s7910_s9 + $0x68] sm:$0xff]  ;;  %v2088_v59 = vld [vmem:[%s7910_s9 + $0xd8] sm:$0xff] }
 0x4a7   : > { %v2021_v9 = vadd.f32 %v2020_v4, %v6847_v32  ;;  %2464 = vmatprep.mubr.f32.mxu1 %v7149_v56  ;;  %2786 = vmatprep.mubr.f32.mxu0 %v7149_v56  ;;  %v4667_v52 = vpack.c.bf16 %v2074_v47, %v2067_v46  ;;  %v4671_v4 = vpack.c.bf16 %v2088_v59, %v2081_v55  ;;  %v2137_v47 = vld [vmem:[%s7910_s9 + $0x260] sm:$0xff]  ;;  %v2151_v59 = vld [vmem:[%s7910_s9 + $0x2d0] sm:$0xff] }
 0x4a8   : > { %2465 = vmatmul.mubr.f32.gmra.mrb[106].mxu1 %v7151_v0  ;;  %2787 = vmatmul.mubr.f32.gmra.mrb[58].mxu0 %v7151_v0  ;;  %v7173_v23 = vmax.f32 %v2019_v1, 0.0  ;;  %v2214_v1 = vld [vmem:[%s7910_s9 + $0x4c8] sm:$0xff] }
 0x4a9   : > { %v7171_v17 = vmax.f32 %v2021_v9, 0.0  ;;  %v2024_v18 = vpop.f32.mrb[78].mxu1  ;;  %4592 = vmatpush1.bf16.msra.mxu1 %v4591_v61  ;;  %v2207_v61 = vld [vmem:[%s7910_s9 + $0x490] sm:$0xff]  ;;  %v2221_v9 = vld [vmem:[%s7910_s9 + $0x500] sm:$0xff] }
 0x4aa   : > { %v2025_v24 = vadd.f32 %v2024_v18, %v6844_v31  ;;  %v2026_v20 = vpop.f32.mrb[79].mxu1  ;;  %4594 = vmatprep.subr.bf16.mxu1 %v4593_v5  ;;  %v2179_v31 = vld [vmem:[%s7910_s9 + $0x3b0] sm:$0xff]  ;;  %v4673_v5 = vpack.c.bf16 %v2214_v1, %v2207_v61  ;;  %v4677_v18 = vpack.c.bf16 %v2228_v57, %v2221_v9  ;;  %v2158_v61 = vld [vmem:[%s7910_s9 + $0x308] sm:$0xff]  ;;  %v2277_v1 = vld [vmem:[%s7910_s9 + $0x6c0] sm:$0xff] }
 0x4ab   : > { %v2027_v34 = vadd.f32 %v2026_v20, %v6847_v32  ;;  %2470 = vmatprep.mubr.f32.mxu1 %v7171_v17  ;;  %2792 = vmatprep.mubr.f32.mxu0 %v7171_v17  ;;  %v4599_v32 = vpack.c.bf16 %v2280_v30, %v2273_v27  ;;  %v4665_v40 = vpack.c.bf16 %v2186_v35, %v2179_v31  ;;  %v2235_v20 = vld [vmem:[%s7910_s9 + $0x570] sm:$0xff]  ;;  %v2130_v31 = vld [vmem:[%s7910_s9 + $0x228] sm:$0xff]  ;;  %v2249_v35 = vld [vmem:[%s7910_s9 + $0x5e0] sm:$0xff] }
 0x4ac   : > { %2471 = vmatmul.mubr.f32.gmra.mrb[108].mxu1 %v7173_v23  ;;  %2793 = vmatmul.mubr.f32.gmra.mrb[60].mxu0 %v7173_v23  ;;  %v7195_v38 = vmax.f32 %v2025_v24, 0.0  ;;  %v2116_v24 = vld [vmem:[%s7910_s9 + $0x1b8] sm:$0xff] }
 0x4ad   : > { %v7193_v37 = vmax.f32 %v2027_v34, 0.0  ;;  %4596 = vmatpush1.bf16.msra.mxu1 %v4595_v21  ;;  %v2109_v21 = vld [vmem:[%s7910_s9 + $0x180] sm:$0xff]  ;;  %v2123_v34 = vld [vmem:[%s7910_s9 + $0x1f0] sm:$0xff]  ;;  %v2172_v9 = vld [vmem:[%s7910_s9 + $0x378] sm:$0xff] }
 0x4ae   : > { %4598 = vmatprep.subr.bf16.mxu1 %v4597_v26  ;;  %v2242_v26 = vld [vmem:[%s7910_s9 + $0x5a8] sm:$0xff]  ;;  %v4679_v27 = vpack.c.bf16 %v2116_v24, %v2109_v21  ;;  %v4695_v57 = vpack.c.bf16 %v2172_v9, %v2165_v8 }
 0x4af   : > { %2476 = vmatprep.mubr.f32.mxu1 %v7193_v37  ;;  %2798 = vmatprep.mubr.f32.mxu0 %v7193_v37  ;;  %v4681_v30 = vpack.c.bf16 %v2242_v26, %v2235_v20 }
 0x4b0   : > { %2477 = vmatmul.mubr.f32.gmra.mrb[110].mxu1 %v7195_v38  ;;  %2799 = vmatmul.mubr.f32.gmra.mrb[62].mxu0 %v7195_v38 }
 0x4b1   : > { %4600 = vmatpush1.bf16.msra.mxu1 %v4599_v32  ;;  %2547 = vmatprep.mubr.f32.mxu1 %v6863_v41  ;;  %v2256_v32 = vld [vmem:[%s7910_s9 + $0x618] sm:$0xff] }
 0x4b2   : > { %4666 = vmatprep.subr.bf16.mxu1 %v4665_v40  ;;  %v4683_v40 = vpack.c.bf16 %v2130_v31, %v2123_v34  ;;  %v4685_v46 = vpack.c.bf16 %v2256_v32, %v2249_v35 }
 0x4b4   : > { %2548 = vmatmul.mubr.f32.vlgmr.msra.gmra.mrb[112].mxu1 %v6865_v44 }
 0x4b5   : > { %2553 = vmatprep.mubr.f32.mxu1 %v6885_v54  ;;  %4668 = vmatpush3.bf16.msra.mxu1 %v4667_v52  ;;  %v2270_v52 = vld [vmem:[%s7910_s9 + $0x688] sm:$0xff] }
 0x4b6   : > { %4670 = vmatprep.subr.bf16.mxu1 %v4669_v53  ;;  %v4687_v53 = vpack.c.bf16 %v2144_v50, %v2137_v47  ;;  %v4689_v55 = vpack.c.bf16 %v2270_v52, %v2263_v51 }
 0x4b8   : > { %2554 = vmatmul.mubr.f32.gmra.mrb[114].mxu1 %v6887_v58 }
 0x4b9   : > { %2559 = vmatprep.mubr.f32.mxu1 %v6907_v3  ;;  %4672 = vmatpush3.bf16.msra.mxu1 %v4671_v4  ;;  %v2284_v4 = vld [vmem:[%s7910_s9 + $0x6f8] sm:$0xff] }
 0x4ba   : > { %4674 = vmatprep.subr.bf16.mxu1 %v4673_v5  ;;  %v4691_v5 = vpack.c.bf16 %v2158_v61, %v2151_v59  ;;  %v4693_v7 = vpack.c.bf16 %v2284_v4, %v2277_v1 }
 0x4bc   : > { %2560 = vmatmul.mubr.f32.gmra.mrb[116].mxu1 %v6909_v6 }
 0x4bd   : > { %2565 = vmatprep.mubr.f32.mxu1 %v6929_v15  ;;  %4676 = vmatpush3.bf16.msra.mxu1 %v4675_v13 }
 0x4be   : > { %4678 = vmatprep.subr.bf16.mxu1 %v4677_v18 }
 0x4c0   : > { %2566 = vmatmul.mubr.f32.gmra.mrb[118].mxu1 %v6931_v19 }
 0x4c1   : > { %2571 = vmatprep.mubr.f32.mxu1 %v6951_v28  ;;  %4680 = vmatpush3.bf16.msra.mxu1 %v4679_v27 }
 0x4c2   : > { %4682 = vmatprep.subr.bf16.mxu1 %v4681_v30 }
 0x4c4   : > { %2572 = vmatmul.mubr.f32.gmra.mrb[120].mxu1 %v6953_v33 }
 0x4c5   : > { %2577 = vmatprep.mubr.f32.mxu1 %v6973_v43  ;;  %4684 = vmatpush3.bf16.msra.mxu1 %v4683_v40 }
 0x4c6   : > { %4686 = vmatprep.subr.bf16.mxu1 %v4685_v46 }
 0x4c8   : > { %2578 = vmatmul.mubr.f32.gmra.mrb[122].mxu1 %v6975_v48 }
 0x4c9   : > { %2583 = vmatprep.mubr.f32.mxu1 %v6995_v60  ;;  %4688 = vmatpush3.bf16.msra.mxu1 %v4687_v53 }
 0x4ca   : > { %4690 = vmatprep.subr.bf16.mxu1 %v4689_v55 }
 0x4cc   : > { %2584 = vmatmul.mubr.f32.gmra.mrb[124].mxu1 %v6997_v63 }
 0x4cd   : > { %2589 = vmatprep.mubr.f32.mxu1 %v7017_v10  ;;  %4692 = vmatpush3.bf16.msra.mxu1 %v4691_v5 }
 0x4ce   : > { %4694 = vmatprep.subr.bf16.mxu1 %v4693_v7 }
 0x4d0   : > { %2590 = vmatmul.mubr.f32.gmra.mrb[126].mxu1 %v7019_v45 }
 0x4d1   : > { %2595 = vmatprep.mubr.f32.mxu1 %v7039_v25  ;;  %4696 = vmatpush3.bf16.msra.mxu1 %v4695_v57 }
 0x4d4   : > { %2596 = vmatmul.mubr.f32.gmra.mrb[128].mxu1 %v7041_v29 }
 0x4d5   : > { %2601 = vmatprep.mubr.f32.mxu1 %v7061_v42 }
 0x4d8   : > { %2602 = vmatmul.mubr.f32.gmra.mrb[130].mxu1 %v7063_v49 }
 0x4d9   : > { %2607 = vmatprep.mubr.f32.mxu1 %v7083_v62 }
 0x4dc   : > { %2608 = vmatmul.mubr.f32.gmra.mrb[132].mxu1 %v7085_v2 }
 0x4dd   : > { %2613 = vmatprep.mubr.f32.mxu1 %v7105_v16 }
 0x4e0   : > { %2614 = vmatmul.mubr.f32.gmra.mrb[134].mxu1 %v7107_v22 }
 0x4e1   : > { %2619 = vmatprep.mubr.f32.mxu1 %v7127_v36 }
 0x4e4   : > { %2620 = vmatmul.mubr.f32.gmra.mrb[136].mxu1 %v7129_v39 }
 0x4e5   : > { %2625 = vmatprep.mubr.f32.mxu1 %v7149_v56 }
 0x4e8   : > { %2626 = vmatmul.mubr.f32.gmra.mrb[138].mxu1 %v7151_v0 }
 0x4e9   : > { %2631 = vmatprep.mubr.f32.mxu1 %v7171_v17 }
 0x4ec   : > { %2632 = vmatmul.mubr.f32.gmra.mrb[140].mxu1 %v7173_v23 }
 0x4ed   : > { %2637 = vmatprep.mubr.f32.mxu1 %v7193_v37 }
 0x4f0   : > { %2638 = vmatmul.mubr.f32.gmra.mrb[142].mxu1 %v7195_v38 }
 0x4f1   : > { %2869 = vmatprep.mubr.f32.mxu1 %v6863_v41  ;;  %v2305_v41 = vsub.s32 4, %v6205_v11 }
 0x4f4   : > { %2870 = vmatmul.mubr.f32.vlgmr.msra.gmra.mrb[144].mxu1 %v6865_v44  ;;  %v7359_v44 = vld [vmem:[%s7911_s10] sm:$0x7f] }
 0x4f5   : > { %2874 = vmatprep.mubr.f32.mxu1 %v6885_v54  ;;  %v2309_v54 = vsub.s32 5, %v6205_v11 }
 0x4f8   : > { %2875 = vmatmul.mubr.f32.gmra.mrb[146].mxu1 %v6887_v58  ;;  %v7364_v58 = vrot.slane %v7359_v44, %v6208_v12 }
 0x4f9   : > { %2879 = vmatprep.mubr.f32.mxu1 %v6907_v3  ;;  %v7367_v3 = vrot.slane %v7359_v44, %v2305_v41 }
 0x4fc   : > { %2880 = vmatmul.mubr.f32.gmra.mrb[148].mxu1 %v6909_v6  ;;  %v7371_v6 = vrot.slane %v7359_v44, %v6214_v14 }
 0x4fd   : > { %2884 = vmatprep.mubr.f32.mxu1 %v6929_v15  ;;  %v7374_v15 = vrot.slane %v7359_v44, %v2309_v54 }
 0x500   : > { %2885 = vmatmul.mubr.f32.gmra.mrb[150].mxu1 %v6931_v19 }
 0x501   : > { %2889 = vmatprep.mubr.f32.mxu1 %v6951_v28 }
 0x504   : > { %2890 = vmatmul.mubr.f32.gmra.mrb[152].mxu1 %v6953_v33 }
 0x505   : > { %2894 = vmatprep.mubr.f32.mxu1 %v6973_v43 }
 0x508   : > { %2895 = vmatmul.mubr.f32.gmra.mrb[154].mxu1 %v6975_v48 }
 0x509   : > { %2899 = vmatprep.mubr.f32.mxu1 %v6995_v60 }
 0x50c   : > { %2900 = vmatmul.mubr.f32.gmra.mrb[156].mxu1 %v6997_v63 }
 0x50d   : > { %2904 = vmatprep.mubr.f32.mxu1 %v7017_v10 }
 0x510   : > { %2905 = vmatmul.mubr.f32.gmra.mrb[158].mxu1 %v7019_v45 }
 0x511   : > { %2909 = vmatprep.mubr.f32.mxu1 %v7039_v25 }
 0x514   : > { %2910 = vmatmul.mubr.f32.gmra.mrb[160].mxu1 %v7041_v29 }
 0x515   : > { %2914 = vmatprep.mubr.f32.mxu1 %v7061_v42 }
 0x518   : > { %2915 = vmatmul.mubr.f32.gmra.mrb[162].mxu1 %v7063_v49 }
 0x519   : > { %2919 = vmatprep.mubr.f32.mxu1 %v7083_v62 }
 0x51c   : > { %2920 = vmatmul.mubr.f32.gmra.mrb[164].mxu1 %v7085_v2 }
 0x51d   : > { %2924 = vmatprep.mubr.f32.mxu1 %v7105_v16 }
 0x520   : > { %2925 = vmatmul.mubr.f32.gmra.mrb[166].mxu1 %v7107_v22 }
 0x521   : > { %2929 = vmatprep.mubr.f32.mxu1 %v7127_v36 }
 0x524   : > { %2930 = vmatmul.mubr.f32.gmra.mrb[168].mxu1 %v7129_v39 }
 0x525   : > { %2934 = vmatprep.mubr.f32.mxu1 %v7149_v56 }
 0x528   : > { %2935 = vmatmul.mubr.f32.gmra.mrb[170].mxu1 %v7151_v0 }
 0x529   : > { %2939 = vmatprep.mubr.f32.mxu1 %v7171_v17 }
 0x52c   : > { %2940 = vmatmul.mubr.f32.gmra.mrb[172].mxu1 %v7173_v23 }
 0x52d   : > { %2944 = vmatprep.mubr.f32.mxu1 %v7193_v37 }
 0x530   : > { %2945 = vmatmul.mubr.f32.gmra.mrb[174].mxu1 %v7195_v38 }
 0x547   : > { %v2388_v19 = vpop.f32.mrb[80].mxu1  ;;  %v2710_v28 = vpop.f32.mrb[32].mxu0 }
 0x548   : > { %v2389_v33 = vadd.f32 %v2388_v19, %v7364_v58  ;;  %v2711_v43 = vadd.f32 %v2710_v28, %v7367_v3  ;;  %v2390_v48 = vpop.f32.mrb[81].mxu1  ;;  %v2712_v60 = vpop.f32.mrb[33].mxu0 }
 0x549   : > { %v2391_v12 = vadd.f32 %v2390_v48, %v7371_v6  ;;  %v2713_v63 = vadd.f32 %v2712_v60, %v7374_v15 }
 0x54a   : > { %v3819_v10 = vmul.f32 -1.442695, %v2389_v33  ;;  %v3823_v45 = vmul.f32 -1.442695, %v2711_v43 }
 0x54b   : > { %v3820_v25 = vmul.f32 -1.442695, %v2391_v12  ;;  %v3824_v14 = vmul.f32 -1.442695, %v2713_v63  ;;  %v2394_v29 = vpop.f32.mrb[82].mxu1  ;;  %v2716_v42 = vpop.f32.mrb[34].mxu0 }
 0x54c   : > { %4835 = vpow2.f32 %v3819_v10  ;;  %v2395_v49 = vadd.f32 %v2394_v29, %v7364_v58  ;;  %v2717_v62 = vadd.f32 %v2716_v42, %v7367_v3  ;;  %v2396_v2 = vpop.f32.mrb[83].mxu1  ;;  %v2718_v16 = vpop.f32.mrb[35].mxu0 }
 0x54d   : > { %4837 = vpow2.f32 %v3823_v45  ;;  %v2397_v22 = vadd.f32 %v2396_v2, %v7371_v6  ;;  %v2719_v36 = vadd.f32 %v2718_v16, %v7374_v15 }
 0x54e   : > { %4839 = vpow2.f32 %v3820_v25  ;;  %v3826_v39 = vmul.f32 -1.442695, %v2395_v49  ;;  %v3830_v56 = vmul.f32 -1.442695, %v2717_v62 }
 0x54f   : > { %4841 = vpow2.f32 %v3824_v14  ;;  %v3827_v0 = vmul.f32 -1.442695, %v2397_v22  ;;  %v3831_v17 = vmul.f32 -1.442695, %v2719_v36  ;;  %v2400_v23 = vpop.f32.mrb[84].mxu1  ;;  %v2722_v37 = vpop.f32.mrb[36].mxu0 }
 0x550   : > { %4843 = vpow2.f32 %v3826_v39  ;;  %v2401_v38 = vadd.f32 %v2400_v23, %v7364_v58  ;;  %v2723_v13 = vadd.f32 %v2722_v37, %v7367_v3  ;;  %v2402_v18 = vpop.f32.mrb[85].mxu1  ;;  %v2724_v21 = vpop.f32.mrb[37].mxu0 }
 0x551   : > { %4845 = vpow2.f32 %v3830_v56  ;;  %v2403_v24 = vadd.f32 %v2402_v18, %v7371_v6  ;;  %v2725_v20 = vadd.f32 %v2724_v21, %v7374_v15 }
 0x552   : > { %4847 = vpow2.f32 %v3827_v0  ;;  %v3833_v26 = vmul.f32 -1.442695, %v2401_v38  ;;  %v3837_v27 = vmul.f32 -1.442695, %v2723_v13 }
 0x553   : > { %4849 = vpow2.f32 %v3831_v17  ;;  %v3834_v30 = vmul.f32 -1.442695, %v2403_v24  ;;  %v3838_v34 = vmul.f32 -1.442695, %v2725_v20  ;;  %v2406_v31 = vpop.f32.mrb[86].mxu1  ;;  %v2728_v35 = vpop.f32.mrb[38].mxu0 }
 0x554   : > { %4851 = vpow2.f32 %v3833_v26  ;;  %v2407_v32 = vadd.f32 %v2406_v31, %v7364_v58  ;;  %v2408_v40 = vpop.f32.mrb[87].mxu1  ;;  %v2730_v46 = vpop.f32.mrb[39].mxu0  ;;  %v2729_v45 = vadd.f32 %v2728_v35, %v7367_v3 }
 0x555   : > { %4853 = vpow2.f32 %v3837_v27  ;;  %v2409_v29 = vadd.f32 %v2408_v40, %v7371_v6  ;;  %v2731_v2 = vadd.f32 %v2730_v46, %v7374_v15 }
 0x556   : > { %v4836_v47 = vpop.eup %4835  ;;  %4855 = vpow2.f32 %v3834_v30  ;;  %v3840_v50 = vmul.f32 -1.442695, %v2407_v32  ;;  %v3844_v37 = vmul.f32 -1.442695, %v2729_v45 }
 0x557   : > { %v4838_v51 = vpop.eup %4837  ;;  %v3286_v52 = vadd.f32 1.0, %v4836_v47  ;;  %4857 = vpow2.f32 %v3838_v34  ;;  %v2412_v53 = vpop.f32.mrb[88].mxu1  ;;  %v3841_v21 = vmul.f32 -1.442695, %v2409_v29  ;;  %v3845_v27 = vmul.f32 -1.442695, %v2731_v2 }
 0x558   : > { %v4840_v55 = vpop.eup %4839  ;;  %v3290_v59 = vadd.f32 1.0, %v4838_v51  ;;  %4859 = vpow2.f32 %v3840_v50  ;;  %v2734_v61 = vpop.f32.mrb[40].mxu0  ;;  %v2413_v56 = vadd.f32 %v2412_v53, %v7364_v58 }
 0x559   : > { %v2414_v1 = vpop.f32.mrb[89].mxu1  ;;  %v4842_v4 = vpop.eup %4841  ;;  %4861 = vrcp.f32 %v3286_v52  ;;  %v3287_v5 = vadd.f32 1.0, %v4840_v55  ;;  %v2735_v38 = vadd.f32 %v2734_v61, %v7367_v3 }
 0x55a   : > { %v2736_v7 = vpop.f32.mrb[41].mxu0  ;;  %v4844_v8 = vpop.eup %4843  ;;  %4863 = vrcp.f32 %v3290_v59  ;;  %v3291_v9 = vadd.f32 1.0, %v4842_v4  ;;  %v2415_v24 = vadd.f32 %v2414_v1, %v7371_v6  ;;  %v3847_v32 = vmul.f32 -1.442695, %v2413_v56 }
 0x55b   : > { %v4846_v57 = vpop.eup %4845  ;;  %4865 = vrcp.f32 %v3287_v5  ;;  %v3293_v41 = vadd.f32 1.0, %v4844_v8  ;;  %v2418_v54 = vpop.f32.mrb[90].mxu1  ;;  %v2737_v30 = vadd.f32 %v2736_v7, %v7374_v15  ;;  %v3851_v50 = vmul.f32 -1.442695, %v2735_v38 }
 0x55c   : > { %v4848_v19 = vpop.eup %4847  ;;  %4867 = vrcp.f32 %v3291_v9  ;;  %v3297_v28 = vadd.f32 1.0, %v4846_v57  ;;  %v2740_v33 = vpop.f32.mrb[42].mxu0  ;;  %v2419_v40 = vadd.f32 %v2418_v54, %v7364_v58  ;;  %v3848_v53 = vmul.f32 -1.442695, %v2415_v24 }
 0x55d   : > { %v2420_v43 = vpop.f32.mrb[91].mxu1  ;;  %v4850_v48 = vpop.eup %4849  ;;  %4869 = vrcp.f32 %v3293_v41  ;;  %v3294_v60 = vadd.f32 1.0, %v4848_v19  ;;  %v2741_v51 = vadd.f32 %v2740_v33, %v7367_v3  ;;  %v3852_v4 = vmul.f32 -1.442695, %v2737_v30 }
 0x55e   : > { %v2742_v12 = vpop.f32.mrb[43].mxu0  ;;  %v4852_v63 = vpop.eup %4851  ;;  %4871 = vrcp.f32 %v3297_v28  ;;  %v3298_v10 = vadd.f32 1.0, %v4850_v48  ;;  %v2421_v55 = vadd.f32 %v2420_v43, %v7371_v6  ;;  %v3854_v57 = vmul.f32 -1.442695, %v2419_v40 }
 0x55f   : > { %v4854_v25 = vpop.eup %4853  ;;  %4873 = vrcp.f32 %v3294_v60  ;;  %v3300_v14 = vadd.f32 1.0, %v4852_v63  ;;  %v2424_v42 = vpop.f32.mrb[92].mxu1  ;;  %v2743_v5 = vadd.f32 %v2742_v12, %v7374_v15  ;;  %v3858_v19 = vmul.f32 -1.442695, %v2741_v51 }
 0x560   : > { %v4856_v49 = vpop.eup %4855  ;;  %4875 = vrcp.f32 %v3298_v10  ;;  %v3304_v62 = vadd.f32 1.0, %v4854_v25  ;;  %v2746_v16 = vpop.f32.mrb[44].mxu0  ;;  %v2425_v41 = vadd.f32 %v2424_v42, %v7364_v58  ;;  %v3855_v43 = vmul.f32 -1.442695, %v2421_v55 }
 0x561   : > { %v7392_v22 = vpop.f32.mrb[93].mxu1  ;;  %v4858_v36 = vpop.eup %4857  ;;  %4877 = vrcp.f32 %v3300_v14  ;;  %v3301_v39 = vadd.f32 1.0, %v4856_v49  ;;  %v2747_v28 = vadd.f32 %v2746_v16, %v7367_v3  ;;  %v3859_v63 = vmul.f32 -1.442695, %v2743_v5 }
 0x562   : > { %v7402_v0 = vpop.f32.mrb[45].mxu0  ;;  %v4860_v17 = vpop.eup %4859  ;;  %4879 = vrcp.f32 %v3304_v62  ;;  %v3305_v23 = vadd.f32 1.0, %v4858_v36  ;;  %v3861_v14 = vmul.f32 -1.442695, %v2425_v41  ;;  %v2427_v30 = vadd.f32 %v7392_v22, %v7371_v6 }
 0x563   : > { %v4862_v13 = vpop.eup %4861  ;;  %4881 = vrcp.f32 %v3301_v39  ;;  %v3307_v18 = vadd.f32 1.0, %v4860_v17  ;;  %v7406_v20 = vpop.f32.mrb[94].mxu1  ;;  %v3865_v49 = vmul.f32 -1.442695, %v2747_v28 }
 0x564   : > { %v4864_v26 = vpop.eup %4863  ;;  %3622 = vst [vmem:[%s7399_s24] sm:$0xff] %v4862_v13  ;;  %4883 = vrcp.f32 %v3305_v23  ;;  %v7410_v34 = vpop.f32.mrb[46].mxu0 }
 0x565   : > { %v7412_v31 = vpop.f32.mrb[95].mxu1  ;;  %v4866_v35 = vpop.eup %4865  ;;  %3626 = vst [vmem:[%s7399_s24 + $0x20] sm:$0xff] %v4864_v26  ;;  %4885 = vrcp.f32 %v3307_v18 }
 0x566   : > { %v7416_v46 = vpop.f32.mrb[47].mxu0  ;;  %v4868_v47 = vpop.eup %4867  ;;  %3623 = vst [vmem:[%s7399_s24 + $0x8] sm:$0xff] %v4866_v35  ;;  %4887 = vpow2.f32 %v3844_v37 }
 0x567   : > { %v4870_v52 = vpop.eup %4869  ;;  %3627 = vst [vmem:[%s7399_s24 + $0x28] sm:$0xff] %v4868_v47  ;;  %4889 = vpow2.f32 %v3841_v21  ;;  %v7422_v59 = vpop.f32.mrb[96].mxu1  ;;  %v2749_v47 = vadd.f32 %v7402_v0, %v7374_v15 }
 0x568   : > { %v7424_v61 = vpop.f32.mrb[48].mxu0  ;;  %v4872_v1 = vpop.eup %4871  ;;  %3629 = vst [vmem:[%s7399_s24 + $0x38] sm:$0xff] %v4870_v52  ;;  %4891 = vpow2.f32 %v3845_v27 }
 0x569   : > { %v7428_v7 = vpop.f32.mrb[97].mxu1  ;;  %v7430_v8 = vpop.f32.mrb[49].mxu0  ;;  %3633 = vst [vmem:[%s7399_s24 + $0x58] sm:$0xff] %v4872_v1  ;;  %4893 = vpow2.f32 %v3847_v32 }
 0x56a   : > { %v4874_v9 = vpop.eup %4873  ;;  %4895 = vpow2.f32 %v3851_v50 }
 0x56b   : > { %v4876_v54 = vpop.eup %4875  ;;  %3630 = vst [vmem:[%s7399_s24 + $0x40] sm:$0xff] %v4874_v9  ;;  %4897 = vpow2.f32 %v3848_v53  ;;  %v7437_v48 = vpop.f32.mrb[98].mxu1 }
 0x56c   : > { %v4878_v33 = vpop.eup %4877  ;;  %3634 = vst [vmem:[%s7399_s24 + $0x60] sm:$0xff] %v4876_v54  ;;  %v7439_v60 = vpop.f32.mrb[50].mxu0  ;;  %4899 = vpow2.f32 %v3852_v4  ;;  %v3862_v54 = vmul.f32 -1.442695, %v2427_v30  ;;  %v2755_v30 = vadd.f32 %v7416_v46, %v7374_v15 }
 0x56d   : > { %v4880_v12 = vpop.eup %4879  ;;  %3636 = vst [vmem:[%s7399_s24 + $0x70] sm:$0xff] %v4878_v33  ;;  %v7442_v10 = vpop.f32.mrb[99].mxu1  ;;  %4901 = vpow2.f32 %v3854_v57 }
 0x56e   : > { %v2766_v45 = vpop.f32.mrb[51].mxu0  ;;  %v4882_v25 = vpop.eup %4881  ;;  %3640 = vst [vmem:[%s7399_s24 + $0x90] sm:$0xff] %v4880_v12  ;;  %4903 = vpow2.f32 %v3858_v19  ;;  %v2431_v19 = vadd.f32 %v7406_v20, %v7364_v58  ;;  %v3866_v12 = vmul.f32 -1.442695, %v2749_v47 }
 0x56f   : > { %v7446_v29 = vadd.f32 %v2766_v45, %v7374_v15  ;;  %v4884_v42 = vpop.eup %4883  ;;  %3637 = vst [vmem:[%s7399_s24 + $0x78] sm:$0xff] %v4882_v25  ;;  %4905 = vpow2.f32 %v3855_v43  ;;  %v2448_v2 = vpop.f32.mrb[100].mxu1 }
 0x570   : > { %v4886_v62 = vpop.eup %4885  ;;  %3641 = vst [vmem:[%s7399_s24 + $0x98] sm:$0xff] %v4884_v42  ;;  %v2770_v16 = vpop.f32.mrb[52].mxu0  ;;  %4907 = vpow2.f32 %v3859_v63  ;;  %v7452_v39 = vadd.f32 %v2448_v2, %v7364_v58 }
 0x571   : > { %v4888_v36 = vpop.eup %4887  ;;  %3643 = vst [vmem:[%s7399_s24 + $0xa8] sm:$0xff] %v4886_v62  ;;  %v7455_v56 = vadd.f32 %v2770_v16, %v7367_v3  ;;  %v2450_v17 = vpop.f32.mrb[101].mxu1  ;;  %4909 = vpow2.f32 %v3861_v14 }
 0x572   : > { %v2772_v23 = vpop.f32.mrb[53].mxu0  ;;  %v4890_v37 = vpop.eup %4889  ;;  %v3311_v38 = vadd.f32 1.0, %v4888_v36  ;;  %v7458_v13 = vadd.f32 %v2450_v17, %v7371_v6  ;;  %4911 = vpow2.f32 %v3865_v49  ;;  %v2753_v36 = vadd.f32 %v7410_v34, %v7367_v3 }
 0x573   : > { %v7461_v18 = vadd.f32 %v2772_v23, %v7374_v15  ;;  %v4892_v21 = vpop.eup %4891  ;;  %v3308_v24 = vadd.f32 1.0, %v4890_v37  ;;  %v2454_v35 = vpop.f32.mrb[102].mxu1 }
 0x574   : > { %v4894_v26 = vpop.eup %4893  ;;  %4913 = vrcp.f32 %v3311_v38  ;;  %v3312_v27 = vadd.f32 1.0, %v4892_v21  ;;  %v7468_v50 = vadd.f32 %v2454_v35, %v7364_v58  ;;  %v2776_v51 = vpop.f32.mrb[54].mxu0  ;;  %v3868_v38 = vmul.f32 -1.442695, %v2431_v19 }
 0x575   : > { %v4896_v32 = vpop.eup %4895  ;;  %4915 = vrcp.f32 %v3308_v24  ;;  %v3314_v40 = vadd.f32 1.0, %v4894_v26  ;;  %v2456_v52 = vpop.f32.mrb[103].mxu1  ;;  %v7471_v1 = vadd.f32 %v2776_v51, %v7367_v3  ;;  %v2433_v21 = vadd.f32 %v7412_v31, %v7371_v6 }
 0x576   : > { %v4898_v53 = vpop.eup %4897  ;;  %4917 = vrcp.f32 %v3312_v27  ;;  %v3318_v55 = vadd.f32 1.0, %v4896_v32  ;;  %v7474_v22 = vadd.f32 %v2456_v52, %v7371_v6  ;;  %v2778_v4 = vpop.f32.mrb[55].mxu0  ;;  %v3872_v46 = vmul.f32 -1.442695, %v2753_v36 }
 0x577   : > { %v4900_v5 = vpop.eup %4899  ;;  %4919 = vrcp.f32 %v3314_v40  ;;  %v3315_v9 = vadd.f32 1.0, %v4898_v53  ;;  %v7477_v0 = vadd.f32 %v2778_v4, %v7374_v15  ;;  %v2460_v28 = vpop.f32.mrb[104].mxu1 }
 0x578   : > { %v4902_v57 = vpop.eup %4901  ;;  %4921 = vrcp.f32 %v3318_v55  ;;  %v3319_v41 = vadd.f32 1.0, %v4900_v5  ;;  %v7482_v63 = vadd.f32 %v2460_v28, %v7364_v58  ;;  %v2782_v45 = vpop.f32.mrb[56].mxu0  ;;  %v2437_v55 = vadd.f32 %v7422_v59, %v7364_v58 }
 0x579   : > { %v4904_v33 = vpop.eup %4903  ;;  %4923 = vrcp.f32 %v3315_v9  ;;  %v3321_v43 = vadd.f32 1.0, %v4902_v57  ;;  %v2462_v25 = vpop.f32.mrb[105].mxu1  ;;  %v7485_v49 = vadd.f32 %v2782_v45, %v7367_v3  ;;  %v3869_v9 = vmul.f32 -1.442695, %v2433_v21 }
 0x57a   : > { %v4906_v14 = vpop.eup %4905  ;;  %4925 = vrcp.f32 %v3319_v41  ;;  %v3325_v42 = vadd.f32 1.0, %v4904_v33  ;;  %v7488_v62 = vadd.f32 %v2462_v25, %v7371_v6  ;;  %v2784_v20 = vpop.f32.mrb[57].mxu0  ;;  %v2759_v57 = vadd.f32 %v7424_v61, %v7367_v3 }
 0x57b   : > { %v4908_v2 = vpop.eup %4907  ;;  %4927 = vrcp.f32 %v3321_v43  ;;  %v3322_v16 = vadd.f32 1.0, %v4906_v14  ;;  %v7493_v17 = vadd.f32 %v2784_v20, %v7374_v15  ;;  %v2466_v24 = vpop.f32.mrb[106].mxu1  ;;  %v2439_v41 = vadd.f32 %v7428_v7, %v7371_v6 }
 0x57c   : > { %v4910_v23 = vpop.eup %4909  ;;  %4929 = vrcp.f32 %v3325_v42  ;;  %v3326_v37 = vadd.f32 1.0, %v4908_v2  ;;  %v7500_v34 = vadd.f32 %v2466_v24, %v7364_v58  ;;  %v2788_v35 = vpop.f32.mrb[58].mxu0  ;;  %v3873_v59 = vmul.f32 -1.442695, %v2755_v30 }
 0x57d   : > { %v4912_v26 = vpop.eup %4911  ;;  %4931 = vrcp.f32 %v3322_v16  ;;  %v3328_v27 = vadd.f32 1.0, %v4910_v23  ;;  %v2468_v32 = vpop.f32.mrb[107].mxu1  ;;  %v7503_v51 = vadd.f32 %v2788_v35, %v7367_v3  ;;  %v2761_v7 = vadd.f32 %v7430_v8, %v7374_v15 }
 0x57e   : > { %v4914_v40 = vpop.eup %4913  ;;  %4933 = vrcp.f32 %v3326_v37  ;;  %v3332_v47 = vadd.f32 1.0, %v4912_v26  ;;  %v7506_v31 = vadd.f32 %v2468_v32, %v7371_v6  ;;  %v2790_v52 = vpop.f32.mrb[59].mxu0  ;;  %v3875_v2 = vmul.f32 -1.442695, %v2437_v55 }
 0x57f   : > { %v4916_v53 = vpop.eup %4915  ;;  %3647 = vst [vmem:[%s7399_s24 + $0xc8] sm:$0xff] %v4914_v40  ;;  %4935 = vrcp.f32 %v3328_v27  ;;  %v7512_v4 = vadd.f32 %v2790_v52, %v7374_v15  ;;  %v2472_v19 = vpop.f32.mrb[108].mxu1  ;;  %v2443_v16 = vadd.f32 %v7437_v48, %v7364_v58  ;;  %v3876_v8 = vmul.f32 -1.442695, %v2439_v41 }
 0x580   : > { %v4918_v5 = vpop.eup %4917  ;;  %3644 = vst [vmem:[%s7399_s24 + $0xb0] sm:$0xff] %v4916_v53  ;;  %4937 = vrcp.f32 %v3332_v47  ;;  %v2794_v28 = vpop.f32.mrb[60].mxu0  ;;  %v7521_v43 = vadd.f32 %v2472_v19, %v7364_v58  ;;  %v2765_v23 = vadd.f32 %v7439_v60, %v7367_v3  ;;  %v3880_v60 = vmul.f32 -1.442695, %v2761_v7 }
 0x581   : > { %v4920_v33 = vpop.eup %4919  ;;  %3648 = vst [vmem:[%s7399_s24 + $0xd0] sm:$0xff] %v4918_v5  ;;  %4939 = vpow2.f32 %v3862_v54  ;;  %v7524_v45 = vadd.f32 %v2794_v28, %v7367_v3  ;;  %v2474_v25 = vpop.f32.mrb[109].mxu1 }
 0x582   : > { %v2796_v14 = vpop.f32.mrb[61].mxu0  ;;  %v4922_v61 = vpop.eup %4921  ;;  %3650 = vst [vmem:[%s7399_s24 + $0xe0] sm:$0xff] %v4920_v33  ;;  %4941 = vpow2.f32 %v3866_v12  ;;  %v7530_v42 = vadd.f32 %v2474_v25, %v7371_v6  ;;  %v3879_v12 = vmul.f32 -1.442695, %v2759_v57  ;;  %v3886_v47 = vmul.f32 -1.442695, %v2765_v23 }
 0x583   : > { %v7533_v54 = vadd.f32 %v2796_v14, %v7374_v15  ;;  %v4924_v20 = vpop.eup %4923  ;;  %3654 = vst [vmem:[%s7399_s24 + $0x100] sm:$0xff] %v4922_v61  ;;  %4943 = vpow2.f32 %v3868_v38  ;;  %v2478_v37 = vpop.f32.mrb[110].mxu1  ;;  %v2445_v38 = vadd.f32 %v7442_v10, %v7371_v6 }
 0x584   : > { %v4926_v36 = vpop.eup %4925  ;;  %3651 = vst [vmem:[%s7399_s24 + $0xe8] sm:$0xff] %v4924_v20  ;;  %4945 = vpow2.f32 %v3872_v46  ;;  %v2800_v21 = vpop.f32.mrb[62].mxu0  ;;  %v7545_v48 = vadd.f32 %v2478_v37, %v7364_v58  ;;  %v3882_v58 = vmul.f32 -1.442695, %v2443_v16 }
 0x585   : > { %v4928_v24 = vpop.eup %4927  ;;  %3655 = vst [vmem:[%s7399_s24 + $0x108] sm:$0xff] %v4926_v36  ;;  %4947 = vpow2.f32 %v3869_v9  ;;  %v7548_v26 = vadd.f32 %v2800_v21, %v7367_v3  ;;  %v2480_v27 = vpop.f32.mrb[111].mxu1 }
 0x586   : > { %v2802_v30 = vpop.f32.mrb[63].mxu0  ;;  %v4930_v35 = vpop.eup %4929  ;;  %3657 = vst [vmem:[%s7399_s24 + $0x118] sm:$0xff] %v4928_v24  ;;  %4949 = vpow2.f32 %v3873_v59  ;;  %v7552_v32 = vadd.f32 %v2480_v27, %v7371_v6  ;;  %v3883_v6 = vmul.f32 -1.442695, %v2445_v38 }
 0x587   : > { %v7555_v40 = vadd.f32 %v2802_v30, %v7374_v15  ;;  %v4932_v10 = vpop.eup %4931  ;;  %3661 = vst [vmem:[%s7399_s24 + $0x138] sm:$0xff] %v4930_v35  ;;  %4951 = vpow2.f32 %v3875_v2  ;;  %v7559_v52 = vpop.f32.mrb[112].mxu1 }
 0x588   : > { %v4934_v3 = vpop.eup %4933  ;;  %3658 = vst [vmem:[%s7399_s24 + $0x120] sm:$0xff] %v4932_v10  ;;  %4953 = vpow2.f32 %v3879_v12  ;;  %v7562_v46 = vpop.f32.mrb[113].mxu1 }
 0x589   : > { %v4936_v53 = vpop.eup %4935  ;;  %3662 = vst [vmem:[%s7399_s24 + $0x140] sm:$0xff] %v4934_v3  ;;  %4955 = vpow2.f32 %v3876_v8 }
 0x58a   : > { %v4938_v15 = vpop.eup %4937  ;;  %3664 = vst [vmem:[%s7399_s24 + $0x150] sm:$0xff] %v4936_v53  ;;  %4957 = vpow2.f32 %v3880_v60 }
 0x58b   : > { %v4940_v55 = vpop.eup %4939  ;;  %3668 = vst [vmem:[%s7399_s24 + $0x170] sm:$0xff] %v4938_v15  ;;  %4959 = vpow2.f32 %v3882_v58  ;;  %v7566_v57 = vpop.f32.mrb[114].mxu1  ;;  %v3889_v15 = vmul.f32 -1.442695, %v7452_v39  ;;  %v3894_v39 = vmul.f32 -1.442695, %v7461_v18 }
 0x58c   : > { %v4942_v5 = vpop.eup %4941  ;;  %v3329_v9 = vadd.f32 1.0, %v4940_v55  ;;  %4961 = vpow2.f32 %v3886_v47  ;;  %v7568_v28 = vpop.f32.mrb[115].mxu1  ;;  %v3887_v47 = vmul.f32 -1.442695, %v7446_v29  ;;  %v3890_v29 = vmul.f32 -1.442695, %v7458_v13 }
 0x58d   : > { %v4944_v41 = vpop.eup %4943  ;;  %v3333_v19 = vadd.f32 1.0, %v4942_v5  ;;  %4963 = vpow2.f32 %v3883_v6  ;;  %v3900_v13 = vmul.f32 -1.442695, %v7471_v1  ;;  %v3897_v18 = vmul.f32 -1.442695, %v7474_v22 }
 0x58e   : > { %v4946_v33 = vpop.eup %4945  ;;  %4965 = vrcp.f32 %v3329_v9  ;;  %v3335_v59 = vadd.f32 1.0, %v4944_v41  ;;  %v3893_v9 = vmul.f32 -1.442695, %v7455_v56  ;;  %v3896_v56 = vmul.f32 -1.442695, %v7468_v50 }
 0x58f   : > { %v4948_v25 = vpop.eup %4947  ;;  %4967 = vrcp.f32 %v3333_v19  ;;  %v3339_v14 = vadd.f32 1.0, %v4946_v33  ;;  %v7570_v20 = vpop.f32.mrb[116].mxu1  ;;  %v3901_v50 = vmul.f32 -1.442695, %v7477_v0  ;;  %v3903_v1 = vmul.f32 -1.442695, %v7482_v63 }
 0x590   : > { %v4950_v61 = vpop.eup %4949  ;;  %4969 = vrcp.f32 %v3335_v59  ;;  %v3336_v7 = vadd.f32 1.0, %v4948_v25  ;;  %v7572_v36 = vpop.f32.mrb[117].mxu1  ;;  %v3907_v22 = vmul.f32 -1.442695, %v7485_v49  ;;  %v3904_v0 = vmul.f32 -1.442695, %v7488_v62 }
 0x591   : > { %v4952_v2 = vpop.eup %4951  ;;  %4971 = vrcp.f32 %v3339_v14  ;;  %v3340_v16 = vadd.f32 1.0, %v4950_v61  ;;  %v3908_v63 = vmul.f32 -1.442695, %v7493_v17 }
 0x592   : > { %v4954_v12 = vpop.eup %4953  ;;  %4973 = vrcp.f32 %v3336_v7  ;;  %v3342_v8 = vadd.f32 1.0, %v4952_v2 }
 0x593   : > { %v4956_v23 = vpop.eup %4955  ;;  %4975 = vrcp.f32 %v3340_v16  ;;  %v3346_v37 = vadd.f32 1.0, %v4954_v12  ;;  %v7574_v38 = vpop.f32.mrb[118].mxu1 }
 0x594   : > { %v4958_v21 = vpop.eup %4957  ;;  %4977 = vrcp.f32 %v3342_v8  ;;  %v3343_v24 = vadd.f32 1.0, %v4956_v23  ;;  %v7576_v35 = vpop.f32.mrb[119].mxu1 }
 0x595   : > { %v4960_v27 = vpop.eup %4959  ;;  %4979 = vrcp.f32 %v3346_v37  ;;  %v3347_v30 = vadd.f32 1.0, %v4958_v21 }
 0x596   : > { %v4962_v60 = vpop.eup %4961  ;;  %4981 = vrcp.f32 %v3343_v24  ;;  %v3349_v10 = vadd.f32 1.0, %v4960_v27 }
 0x597   : > { %v4964_v58 = vpop.eup %4963  ;;  %4983 = vrcp.f32 %v3347_v30  ;;  %v3353_v3 = vadd.f32 1.0, %v4962_v60  ;;  %v7580_v55 = vpop.f32.mrb[120].mxu1 }
 0x598   : > { %v4966_v53 = vpop.eup %4965  ;;  %4985 = vrcp.f32 %v3349_v10  ;;  %v3350_v6 = vadd.f32 1.0, %v4964_v58  ;;  %v7584_v41 = vpop.f32.mrb[121].mxu1 }
 0x599   : > { %v4968_v5 = vpop.eup %4967  ;;  %3665 = vst [vmem:[%s7399_s24 + $0x158] sm:$0xff] %v4966_v53  ;;  %4987 = vrcp.f32 %v3353_v3 }
 0x59a   : > { %v4970_v19 = vpop.eup %4969  ;;  %3669 = vst [vmem:[%s7399_s24 + $0x178] sm:$0xff] %v4968_v5  ;;  %4989 = vrcp.f32 %v3350_v6 }
 0x59b   : > { %v4972_v33 = vpop.eup %4971  ;;  %3671 = vst [vmem:[%s7399_s24 + $0x188] sm:$0xff] %v4970_v19  ;;  %4991 = vpow2.f32 %v3887_v47  ;;  %v7592_v25 = vpop.f32.mrb[122].mxu1 }
 0x59c   : > { %v4974_v59 = vpop.eup %4973  ;;  %3675 = vst [vmem:[%s7399_s24 + $0x1a8] sm:$0xff] %v4972_v33  ;;  %4993 = vpow2.f32 %v3889_v15  ;;  %v7596_v61 = vpop.f32.mrb[123].mxu1 }
 0x59d   : > { %v4976_v14 = vpop.eup %4975  ;;  %3672 = vst [vmem:[%s7399_s24 + $0x190] sm:$0xff] %v4974_v59  ;;  %4995 = vpow2.f32 %v3893_v9 }
 0x59e   : > { %v4978_v7 = vpop.eup %4977  ;;  %3676 = vst [vmem:[%s7399_s24 + $0x1b0] sm:$0xff] %v4976_v14  ;;  %4997 = vpow2.f32 %v3890_v29 }
 0x59f   : > { %v4980_v2 = vpop.eup %4979  ;;  %3678 = vst [vmem:[%s7399_s24 + $0x1c0] sm:$0xff] %v4978_v7  ;;  %4999 = vpow2.f32 %v3894_v39  ;;  %v7604_v12 = vpop.f32.mrb[124].mxu1 }
 0x5a0   : > { %v4982_v16 = vpop.eup %4981  ;;  %3682 = vst [vmem:[%s7399_s24 + $0x1e0] sm:$0xff] %v4980_v2  ;;  %5001 = vpow2.f32 %v3896_v56  ;;  %v7608_v23 = vpop.f32.mrb[125].mxu1 }
 0x5a1   : > { %v4984_v8 = vpop.eup %4983  ;;  %3679 = vst [vmem:[%s7399_s24 + $0x1c8] sm:$0xff] %v4982_v16  ;;  %5003 = vpow2.f32 %v3900_v13 }
 0x5a2   : > { %v4986_v37 = vpop.eup %4985  ;;  %3683 = vst [vmem:[%s7399_s24 + $0x1e8] sm:$0xff] %v4984_v8  ;;  %5005 = vpow2.f32 %v3897_v18 }
 0x5a3   : > { %v4988_v21 = vpop.eup %4987  ;;  %3685 = vst [vmem:[%s7399_s24 + $0x1f8] sm:$0xff] %v4986_v37  ;;  %5007 = vpow2.f32 %v3901_v50  ;;  %v7615_v27 = vpop.f32.mrb[126].mxu1 }
 0x5a4   : > { %v4990_v24 = vpop.eup %4989  ;;  %3689 = vst [vmem:[%s7399_s24 + $0x218] sm:$0xff] %v4988_v21  ;;  %5009 = vpow2.f32 %v3903_v1  ;;  %v7618_v49 = vpop.f32.mrb[127].mxu1  ;;  %v2297_v21 = vsub.s32 2, %v6205_v11 }
 0x5a5   : > { %v4992_v30 = vpop.eup %4991  ;;  %3686 = vst [vmem:[%s7399_s24 + $0x200] sm:$0xff] %v4990_v24  ;;  %5011 = vpow2.f32 %v3907_v22 }
 0x5a6   : > { %v4994_v60 = vpop.eup %4993  ;;  %v3354_v10 = vadd.f32 1.0, %v4992_v30  ;;  %5013 = vpow2.f32 %v3904_v0  ;;  %v3910_v0 = vmul.f32 -1.442695, %v7500_v34  ;;  %v3915_v34 = vmul.f32 -1.442695, %v7512_v4 }
 0x5a7   : > { %v4996_v58 = vpop.eup %4995  ;;  %v3356_v62 = vadd.f32 1.0, %v4994_v60  ;;  %5015 = vpow2.f32 %v3908_v63  ;;  %v7620_v17 = vpop.f32.mrb[128].mxu1  ;;  %v3914_v60 = vmul.f32 -1.442695, %v7503_v51  ;;  %v3917_v51 = vmul.f32 -1.442695, %v7521_v43 }
 0x5a8   : > { %v4998_v3 = vpop.eup %4997  ;;  %5017 = vrcp.f32 %v3354_v10  ;;  %v3360_v47 = vadd.f32 1.0, %v4996_v58  ;;  %v7622_v15 = vpop.f32.mrb[129].mxu1  ;;  %v3911_v58 = vmul.f32 -1.442695, %v7506_v31 }
 0x5a9   : > { %v5000_v53 = vpop.eup %4999  ;;  %5019 = vrcp.f32 %v3356_v62  ;;  %v3357_v6 = vadd.f32 1.0, %v4998_v3 }
 0x5aa   : > { %v5002_v5 = vpop.eup %5001  ;;  %5021 = vrcp.f32 %v3360_v47  ;;  %v3361_v9 = vadd.f32 1.0, %v5000_v53  ;;  %v7644_v53 = vrot.slane %v7359_v44, %v2297_v21  ;;  %v3922_v44 = vmul.f32 -1.442695, %v7533_v54 }
 0x5ab   : > { %v5004_v19 = vpop.eup %5003  ;;  %5023 = vrcp.f32 %v3357_v6  ;;  %v3363_v29 = vadd.f32 1.0, %v5002_v5  ;;  %v7624_v59 = vpop.f32.mrb[130].mxu1  ;;  %v3921_v5 = vmul.f32 -1.442695, %v7524_v45  ;;  %v3924_v45 = vmul.f32 -1.442695, %v7545_v48 }
 0x5ac   : > { %v5006_v33 = vpop.eup %5005  ;;  %5025 = vrcp.f32 %v3361_v9  ;;  %v3367_v39 = vadd.f32 1.0, %v5004_v19  ;;  %v7626_v13 = vpop.f32.mrb[131].mxu1  ;;  %v3918_v9 = vmul.f32 -1.442695, %v7530_v42  ;;  %v3929_v48 = vmul.f32 -1.442695, %v7555_v40 }
 0x5ad   : > { %v5008_v56 = vpop.eup %5007  ;;  %5027 = vrcp.f32 %v3363_v29  ;;  %v3364_v14 = vadd.f32 1.0, %v5006_v33  ;;  %v2550_v33 = vadd.f32 %v7559_v52, %v7644_v53 }
 0x5ae   : > { %v5010_v7 = vpop.eup %5009  ;;  %5029 = vrcp.f32 %v3367_v39  ;;  %v3368_v18 = vadd.f32 1.0, %v5008_v56  ;;  %v3928_v56 = vmul.f32 -1.442695, %v7548_v26 }
 0x5af   : > { %v5012_v2 = vpop.eup %5011  ;;  %5031 = vrcp.f32 %v3364_v14  ;;  %v3370_v50 = vadd.f32 1.0, %v5010_v7  ;;  %v7628_v8 = vpop.f32.mrb[132].mxu1  ;;  %v3925_v14 = vmul.f32 -1.442695, %v7552_v32  ;;  %v2301_v32 = vsub.s32 3, %v6205_v11 }
 0x5b0   : > { %v5014_v16 = vpop.eup %5013  ;;  %5033 = vrcp.f32 %v3368_v18  ;;  %v3374_v1 = vadd.f32 1.0, %v5012_v2  ;;  %v7632_v63 = vpop.f32.mrb[133].mxu1  ;;  %v3821_v2 = vmul.f32 -1.442695, %v2550_v33 }
 0x5b1   : > { %v5016_v22 = vpop.eup %5015  ;;  %5035 = vrcp.f32 %v3370_v50  ;;  %v3371_v37 = vadd.f32 1.0, %v5014_v16 }
 0x5b2   : > { %v5018_v24 = vpop.eup %5017  ;;  %5037 = vrcp.f32 %v3374_v1  ;;  %v3375_v30 = vadd.f32 1.0, %v5016_v22 }
 0x5b3   : > { %v5020_v10 = vpop.eup %5019  ;;  %3690 = vst [vmem:[%s7399_s24 + $0x220] sm:$0xff] %v5018_v24  ;;  %5039 = vrcp.f32 %v3371_v37  ;;  %v7639_v3 = vpop.f32.mrb[134].mxu1 }
 0x5b4   : > { %v5022_v62 = vpop.eup %5021  ;;  %3692 = vst [vmem:[%s7399_s24 + $0x230] sm:$0xff] %v5020_v10  ;;  %5041 = vrcp.f32 %v3375_v30  ;;  %v7646_v6 = vpop.f32.mrb[135].mxu1 }
 0x5b5   : > { %v5024_v47 = vpop.eup %5023  ;;  %3696 = vst [vmem:[%s7399_s24 + $0x250] sm:$0xff] %v5022_v62  ;;  %5043 = vpow2.f32 %v3910_v0  ;;  %v7684_v62 = vld [vmem:[%s7911_s10] sm:$0x7f] }
 0x5b6   : > { %v5026_v31 = vpop.eup %5025  ;;  %3693 = vst [vmem:[%s7399_s24 + $0x238] sm:$0xff] %v5024_v47  ;;  %5045 = vpow2.f32 %v3914_v60 }
 0x5b7   : > { %v5028_v4 = vpop.eup %5027  ;;  %3697 = vst [vmem:[%s7399_s24 + $0x258] sm:$0xff] %v5026_v31  ;;  %5047 = vpow2.f32 %v3911_v58  ;;  %v7654_v43 = vpop.f32.mrb[136].mxu1 }
 0x5b8   : > { %v5030_v19 = vpop.eup %5029  ;;  %3699 = vst [vmem:[%s7399_s24 + $0x268] sm:$0xff] %v5028_v4  ;;  %5049 = vpow2.f32 %v3915_v34  ;;  %v7660_v39 = vpop.f32.mrb[137].mxu1  ;;  %v7687_v34 = vrot.slane %v7684_v62, %v2301_v32 }
 0x5b9   : > { %v5032_v29 = vpop.eup %5031  ;;  %3703 = vst [vmem:[%s7399_s24 + $0x288] sm:$0xff] %v5030_v19  ;;  %5051 = vpow2.f32 %v3917_v51 }
 0x5ba   : > { %v5034_v42 = vpop.eup %5033  ;;  %3700 = vst [vmem:[%s7399_s24 + $0x270] sm:$0xff] %v5032_v29  ;;  %5053 = vpow2.f32 %v3921_v5 }
 0x5bb   : > { %v5036_v54 = vpop.eup %5035  ;;  %3704 = vst [vmem:[%s7399_s24 + $0x290] sm:$0xff] %v5034_v42  ;;  %5055 = vpow2.f32 %v3918_v9  ;;  %v7668_v52 = vpop.f32.mrb[138].mxu1  ;;  %v2552_v42 = vadd.f32 %v7562_v46, %v7687_v34  ;;  %v2562_v46 = vadd.f32 %v7570_v20, %v7644_v53 }
 0x5bc   : > { %v5038_v7 = vpop.eup %5037  ;;  %3706 = vst [vmem:[%s7399_s24 + $0x2a0] sm:$0xff] %v5036_v54  ;;  %5057 = vpow2.f32 %v3922_v44  ;;  %v7671_v50 = vpop.f32.mrb[139].mxu1 }
 0x5bd   : > { %v5040_v18 = vpop.eup %5039  ;;  %3710 = vst [vmem:[%s7399_s24 + $0x2c0] sm:$0xff] %v5038_v7  ;;  %5059 = vpow2.f32 %v3924_v45 }
 0x5be   : > { %v5042_v26 = vpop.eup %5041  ;;  %3707 = vst [vmem:[%s7399_s24 + $0x2a8] sm:$0xff] %v5040_v18  ;;  %5061 = vpow2.f32 %v3928_v56 }
 0x5bf   : > { %v5044_v16 = vpop.eup %5043  ;;  %3711 = vst [vmem:[%s7399_s24 + $0x2c8] sm:$0xff] %v5042_v26  ;;  %5063 = vpow2.f32 %v3925_v14  ;;  %v2633_v40 = vpop.f32.mrb[140].mxu1  ;;  %v2556_v14 = vadd.f32 %v7566_v57, %v7644_v53 }
 0x5c0   : > { %v5046_v1 = vpop.eup %5045  ;;  %v3377_v22 = vadd.f32 1.0, %v5044_v16  ;;  %5065 = vpow2.f32 %v3929_v48  ;;  %v7677_v21 = vadd.f32 %v2633_v40, %v7644_v53  ;;  %v7679_v24 = vpop.f32.mrb[141].mxu1  ;;  %v3822_v40 = vmul.f32 -1.442695, %v2552_v42 }
 0x5c1   : > { %v5048_v37 = vpop.eup %5047  ;;  %v3381_v0 = vadd.f32 1.0, %v5046_v1  ;;  %5067 = vpow2.f32 %v3821_v2  ;;  %v2558_v2 = vadd.f32 %v7568_v28, %v7687_v34 }
 0x5c2   : > { %v5050_v30 = vpop.eup %5049  ;;  %5069 = vrcp.f32 %v3377_v22  ;;  %v3378_v60 = vadd.f32 1.0, %v5048_v37  ;;  %v2564_v37 = vadd.f32 %v7572_v36, %v7687_v34  ;;  %v3835_v36 = vmul.f32 -1.442695, %v2562_v46 }
 0x5c3   : > { %v5052_v10 = vpop.eup %5051  ;;  %5071 = vrcp.f32 %v3381_v0  ;;  %v3382_v58 = vadd.f32 1.0, %v5050_v30  ;;  %v2639_v31 = vpop.f32.mrb[142].mxu1  ;;  %v3828_v30 = vmul.f32 -1.442695, %v2556_v14 }
 0x5c4   : > { %v5054_v47 = vpop.eup %5053  ;;  %5073 = vrcp.f32 %v3378_v60  ;;  %v3384_v51 = vadd.f32 1.0, %v5052_v10  ;;  %v7690_v9 = vadd.f32 %v2639_v31, %v7644_v53  ;;  %v7692_v19 = vpop.f32.mrb[143].mxu1  ;;  %v2568_v60 = vadd.f32 %v7574_v38, %v7644_v53 }
 0x5c5   : > { %v5056_v5 = vpop.eup %5055  ;;  %5075 = vrcp.f32 %v3382_v58  ;;  %v3388_v4 = vadd.f32 1.0, %v5054_v47  ;;  %v3829_v58 = vmul.f32 -1.442695, %v2558_v2  ;;  %v2570_v47 = vadd.f32 %v7576_v35, %v7687_v34 }
 0x5c6   : > { %v5058_v44 = vpop.eup %5057  ;;  %5077 = vrcp.f32 %v3384_v51  ;;  %v3385_v29 = vadd.f32 1.0, %v5056_v5  ;;  %v2574_v5 = vadd.f32 %v7580_v55, %v7644_v53 }
 0x5c7   : > { %v5060_v45 = vpop.eup %5059  ;;  %5079 = vrcp.f32 %v3388_v4  ;;  %v3389_v33 = vadd.f32 1.0, %v5058_v44  ;;  %v4077_v7 = vpop.f32.mrb[144].mxu1  ;;  %v3836_v44 = vmul.f32 -1.442695, %v2564_v37 }
 0x5c8   : > { %v5062_v56 = vpop.eup %5061  ;;  %5081 = vrcp.f32 %v3385_v29  ;;  %v3391_v54 = vadd.f32 1.0, %v5060_v45  ;;  %v4078_v26 = vpop.f32.mrb[145].mxu1  ;;  %v2576_v29 = vadd.f32 %v7584_v41, %v7687_v34  ;;  %v3842_v45 = vmul.f32 -1.442695, %v2568_v60 }
 0x5c9   : > { %v5064_v48 = vpop.eup %5063  ;;  %5083 = vrcp.f32 %v3389_v33  ;;  %v3395_v18 = vadd.f32 1.0, %v5062_v56  ;;  %v7702_v1 = vadd.f32 %v4078_v26, %v4077_v7  ;;  %v2580_v33 = vadd.f32 %v7592_v25, %v7644_v53 }
 0x5ca   : > { %v5066_v16 = vpop.eup %5065  ;;  %5085 = vrcp.f32 %v3391_v54  ;;  %v3392_v32 = vadd.f32 1.0, %v5064_v48  ;;  %v3843_v56 = vmul.f32 -1.442695, %v2570_v47  ;;  %v2582_v54 = vadd.f32 %v7596_v61, %v7687_v34 }
 0x5cb   : > { %v5068_v22 = vpop.eup %5067  ;;  %5087 = vrcp.f32 %v3395_v18  ;;  %v3396_v57 = vadd.f32 1.0, %v5066_v16  ;;  %v4080_v10 = vpop.f32.mrb[146].mxu1  ;;  %v3849_v41 = vmul.f32 -1.442695, %v2574_v5  ;;  %v2586_v48 = vadd.f32 %v7604_v12, %v7644_v53 }
 0x5cc   : > { %v5070_v0 = vpop.eup %5069  ;;  %5089 = vrcp.f32 %v3392_v32  ;;  %v3288_v28 = vadd.f32 1.0, %v5068_v22  ;;  %v4081_v51 = vpop.f32.mrb[147].mxu1  ;;  %v3850_v2 = vmul.f32 -1.442695, %v2576_v29  ;;  %v2588_v26 = vadd.f32 %v7608_v23, %v7687_v34 }
 0x5cd   : > { %v5072_v20 = vpop.eup %5071  ;;  %3713 = vst [vmem:[%s7399_s24 + $0x2d8] sm:$0xff] %v5070_v0  ;;  %5091 = vrcp.f32 %v3396_v57  ;;  %v7714_v4 = vadd.f32 %v4081_v51, %v4080_v10  ;;  %v3856_v16 = vmul.f32 -1.442695, %v2580_v33  ;;  %v3857_v12 = vmul.f32 -1.442695, %v2582_v54 }
 0x5ce   : > { %v5074_v31 = vpop.eup %5073  ;;  %3717 = vst [vmem:[%s7399_s24 + $0x2f8] sm:$0xff] %v5072_v20  ;;  %5093 = vrcp.f32 %v3288_v28  ;;  %v3864_v0 = vmul.f32 -1.442695, %v2588_v26 }
 0x5cf   : > { %v5076_v38 = vpop.eup %5075  ;;  %3714 = vst [vmem:[%s7399_s24 + $0x2e0] sm:$0xff] %v5074_v31  ;;  %5095 = vpow2.f32 %v3822_v40  ;;  %v4083_v42 = vpop.f32.mrb[148].mxu1  ;;  %v3863_v40 = vmul.f32 -1.442695, %v2586_v48 }
 0x5d0   : > { %v5078_v35 = vpop.eup %5077  ;;  %3718 = vst [vmem:[%s7399_s24 + $0x300] sm:$0xff] %v5076_v38  ;;  %5097 = vpow2.f32 %v3828_v30  ;;  %v4084_v14 = vpop.f32.mrb[149].mxu1 }
 0x5d1   : > { %v5080_v55 = vpop.eup %5079  ;;  %3720 = vst [vmem:[%s7399_s24 + $0x310] sm:$0xff] %v5078_v35  ;;  %5099 = vpow2.f32 %v3829_v58  ;;  %v7728_v18 = vadd.f32 %v4084_v14, %v4083_v42 }
 0x5d2   : > { %v5082_v7 = vpop.eup %5081  ;;  %3724 = vst [vmem:[%s7399_s24 + $0x330] sm:$0xff] %v5080_v55  ;;  %5101 = vpow2.f32 %v3835_v36 }
 0x5d3   : > { %v5084_v25 = vpop.eup %5083  ;;  %3721 = vst [vmem:[%s7399_s24 + $0x318] sm:$0xff] %v5082_v7  ;;  %5103 = vpow2.f32 %v3836_v44  ;;  %v4086_v32 = vpop.f32.mrb[150].mxu1  ;;  %v2592_v7 = vadd.f32 %v7615_v27, %v7644_v53 }
 0x5d4   : > { %v5086_v61 = vpop.eup %5085  ;;  %3725 = vst [vmem:[%s7399_s24 + $0x338] sm:$0xff] %v5084_v25  ;;  %5105 = vpow2.f32 %v3842_v45  ;;  %v4087_v22 = vpop.f32.mrb[151].mxu1 }
 0x5d5   : > { %v5088_v46 = vpop.eup %5087  ;;  %3727 = vst [vmem:[%s7399_s24 + $0x348] sm:$0xff] %v5086_v61  ;;  %5107 = vpow2.f32 %v3843_v56  ;;  %v7736_v37 = vadd.f32 %v4087_v22, %v4086_v32  ;;  %v2598_v22 = vadd.f32 %v7620_v17, %v7644_v53 }
 0x5d6   : > { %v5090_v57 = vpop.eup %5089  ;;  %3731 = vst [vmem:[%s7399_s24 + $0x368] sm:$0xff] %v5088_v46  ;;  %5109 = vpow2.f32 %v3849_v41 }
 0x5d7   : > { %v5092_v23 = vpop.eup %5091  ;;  %3728 = vst [vmem:[%s7399_s24 + $0x350] sm:$0xff] %v5090_v57  ;;  %5111 = vpow2.f32 %v3850_v2  ;;  %v4089_v30 = vpop.f32.mrb[152].mxu1  ;;  %v2594_v2 = vadd.f32 %v7618_v49, %v7687_v34  ;;  %v2600_v49 = vadd.f32 %v7622_v15, %v7687_v34 }
 0x5d8   : > { %v5094_v28 = vpop.eup %5093  ;;  %3732 = vst [vmem:[%s7399_s24 + $0x370] sm:$0xff] %v5092_v23  ;;  %5113 = vpow2.f32 %v3856_v16  ;;  %v4090_v10 = vpop.f32.mrb[153].mxu1 }
 0x5d9   : > { %v5096_v60 = vpop.eup %5095  ;;  %3624 = vst [vmem:[%s7399_s24 + $0x10] sm:$0xff] %v5094_v28  ;;  %5115 = vpow2.f32 %v3857_v12  ;;  %v7741_v47 = vadd.f32 %v4090_v10, %v4089_v30  ;;  %v3871_v30 = vmul.f32 -1.442695, %v2594_v2  ;;  %v2628_v2 = vadd.f32 %v7668_v52, %v7644_v53 }
 0x5da   : > { %v5098_v20 = vpop.eup %5097  ;;  %v3289_v58 = vadd.f32 1.0, %v5096_v60  ;;  %5117 = vpow2.f32 %v3863_v40  ;;  %v3870_v40 = vmul.f32 -1.442695, %v2592_v7  ;;  %v2604_v60 = vadd.f32 %v7624_v59, %v7644_v53 }
 0x5db   : > { %v5100_v51 = vpop.eup %5099  ;;  %v3295_v31 = vadd.f32 1.0, %v5098_v20  ;;  %5119 = vpow2.f32 %v3864_v0  ;;  %v4092_v38 = vpop.f32.mrb[154].mxu1  ;;  %v3878_v59 = vmul.f32 -1.442695, %v2600_v49  ;;  %v3912_v52 = vmul.f32 -1.442695, %v2628_v2 }
 0x5dc   : > { %v5102_v36 = vpop.eup %5101  ;;  %5121 = vrcp.f32 %v3289_v58  ;;  %v3296_v5 = vadd.f32 1.0, %v5100_v51  ;;  %v4093_v35 = vpop.f32.mrb[155].mxu1  ;;  %v2606_v58 = vadd.f32 %v7626_v13, %v7687_v34 }
 0x5dd   : > { %v5104_v44 = vpop.eup %5103  ;;  %5123 = vrcp.f32 %v3295_v31  ;;  %v3302_v29 = vadd.f32 1.0, %v5102_v36  ;;  %v7743_v42 = vadd.f32 %v4093_v35, %v4092_v38  ;;  %v3877_v31 = vmul.f32 -1.442695, %v2598_v22 }
 0x5de   : > { %v5106_v45 = vpop.eup %5105  ;;  %5125 = vrcp.f32 %v3296_v5  ;;  %v3303_v33 = vadd.f32 1.0, %v5104_v44  ;;  %v2610_v36 = vadd.f32 %v7628_v8, %v7644_v53  ;;  %v2612_v38 = vadd.f32 %v7632_v63, %v7687_v34 }
 0x5df   : > { %v5108_v55 = vpop.eup %5107  ;;  %5127 = vrcp.f32 %v3302_v29  ;;  %v3309_v56 = vadd.f32 1.0, %v5106_v45  ;;  %v4095_v41 = vpop.f32.mrb[156].mxu1  ;;  %v3884_v29 = vmul.f32 -1.442695, %v2604_v60  ;;  %v2616_v35 = vadd.f32 %v7639_v3, %v7644_v53 }
 0x5e0   : > { %v5110_v54 = vpop.eup %5109  ;;  %5129 = vrcp.f32 %v3303_v33  ;;  %v3310_v14 = vadd.f32 1.0, %v5108_v55  ;;  %v4096_v26 = vpop.f32.mrb[157].mxu1  ;;  %v3885_v8 = vmul.f32 -1.442695, %v2606_v58  ;;  %v2618_v55 = vadd.f32 %v7646_v6, %v7687_v34 }
 0x5e1   : > { %v5112_v48 = vpop.eup %5111  ;;  %5131 = vrcp.f32 %v3309_v56  ;;  %v3316_v25 = vadd.f32 1.0, %v5110_v54  ;;  %v7749_v32 = vadd.f32 %v4096_v26, %v4095_v41  ;;  %v3891_v54 = vmul.f32 -1.442695, %v2610_v36 }
 0x5e2   : > { %v5114_v61 = vpop.eup %5113  ;;  %5133 = vrcp.f32 %v3310_v14  ;;  %v3317_v16 = vadd.f32 1.0, %v5112_v48  ;;  %v2622_v14 = vadd.f32 %v7654_v43, %v7644_v53  ;;  %v3892_v7 = vmul.f32 -1.442695, %v2612_v38 }
 0x5e3   : > { %v5116_v46 = vpop.eup %5115  ;;  %5135 = vrcp.f32 %v3316_v25  ;;  %v3323_v12 = vadd.f32 1.0, %v5114_v61  ;;  %v4098_v23 = vpop.f32.mrb[158].mxu1  ;;  %v2624_v41 = vadd.f32 %v7660_v39, %v7687_v34  ;;  %v3898_v25 = vmul.f32 -1.442695, %v2616_v35 }
 0x5e4   : > { %v5118_v27 = vpop.eup %5117  ;;  %5137 = vrcp.f32 %v3317_v16  ;;  %v3324_v57 = vadd.f32 1.0, %v5116_v46  ;;  %v4099_v10 = vpop.f32.mrb[159].mxu1  ;;  %v3899_v61 = vmul.f32 -1.442695, %v2618_v55  ;;  %v3905_v39 = vmul.f32 -1.442695, %v2622_v14 }
 0x5e5   : > { %v5120_v0 = vpop.eup %5119  ;;  %5139 = vrcp.f32 %v3323_v12  ;;  %v3330_v28 = vadd.f32 1.0, %v5118_v27  ;;  %v7759_v51 = vadd.f32 %v4099_v10, %v4098_v23  ;;  %v3906_v22 = vmul.f32 -1.442695, %v2624_v41 }
 0x5e6   : > { %v5122_v20 = vpop.eup %5121  ;;  %5141 = vrcp.f32 %v3324_v57  ;;  %v3331_v17 = vadd.f32 1.0, %v5120_v0  ;;  %v2313_v38 = vsub.s32 6, %v6205_v11 }
 0x5e7   : > { %v5124_v15 = vpop.eup %5123  ;;  %3625 = vst [vmem:[%s7399_s24 + $0x18] sm:$0xff] %v5122_v20  ;;  %5143 = vrcp.f32 %v3330_v28  ;;  %v4101_v44 = vpop.f32.mrb[160].mxu1 }
 0x5e8   : > { %v5126_v5 = vpop.eup %5125  ;;  %3631 = vst [vmem:[%s7399_s24 + $0x48] sm:$0xff] %v5124_v15  ;;  %5145 = vrcp.f32 %v3331_v17  ;;  %v4102_v45 = vpop.f32.mrb[161].mxu1  ;;  %v7802_v11 = vrot.slane %v7684_v62, %v2313_v38 }
 0x5e9   : > { %v5128_v13 = vpop.eup %5127  ;;  %3632 = vst [vmem:[%s7399_s24 + $0x50] sm:$0xff] %v5126_v5  ;;  %5147 = vpow2.f32 %v3870_v40  ;;  %v7773_v56 = vadd.f32 %v4102_v45, %v4101_v44 }
 0x5ea   : > { %v5130_v33 = vpop.eup %5129  ;;  %3638 = vst [vmem:[%s7399_s24 + $0x80] sm:$0xff] %v5128_v13  ;;  %5149 = vpow2.f32 %v3871_v30 }
 0x5eb   : > { %v5132_v63 = vpop.eup %5131  ;;  %3639 = vst [vmem:[%s7399_s24 + $0x88] sm:$0xff] %v5130_v33  ;;  %5151 = vpow2.f32 %v3877_v31  ;;  %v4104_v48 = vpop.f32.mrb[162].mxu1 }
 0x5ec   : > { %v5134_v3 = vpop.eup %5133  ;;  %3645 = vst [vmem:[%s7399_s24 + $0xb8] sm:$0xff] %v5132_v63  ;;  %5153 = vpow2.f32 %v3878_v59  ;;  %v4105_v26 = vpop.f32.mrb[163].mxu1 }
 0x5ed   : > { %v5136_v6 = vpop.eup %5135  ;;  %3646 = vst [vmem:[%s7399_s24 + $0xc0] sm:$0xff] %v5134_v3  ;;  %5155 = vpow2.f32 %v3884_v29  ;;  %v7785_v16 = vadd.f32 %v4105_v26, %v4104_v48 }
 0x5ee   : > { %v5138_v43 = vpop.eup %5137  ;;  %3652 = vst [vmem:[%s7399_s24 + $0xf0] sm:$0xff] %v5136_v6  ;;  %5157 = vpow2.f32 %v3885_v8  ;;  %v2636_v6 = vadd.f32 %v7679_v24, %v7687_v34  ;;  %v3919_v24 = vmul.f32 -1.442695, %v7677_v21  ;;  %v3926_v21 = vmul.f32 -1.442695, %v7690_v9 }
 0x5ef   : > { %v5140_v46 = vpop.eup %5139  ;;  %3653 = vst [vmem:[%s7399_s24 + $0xf8] sm:$0xff] %v5138_v43  ;;  %5159 = vpow2.f32 %v3891_v54  ;;  %v4107_v27 = vpop.f32.mrb[164].mxu1  ;;  %v2630_v54 = vadd.f32 %v7671_v50, %v7687_v34  ;;  %v2892_v9 = vadd.f32 %v7741_v47, %v7802_v11 }
 0x5f0   : > { %v5142_v12 = vpop.eup %5141  ;;  %3659 = vst [vmem:[%s7399_s24 + $0x128] sm:$0xff] %v5140_v46  ;;  %5161 = vpow2.f32 %v3892_v7  ;;  %v4108_v57 = vpop.f32.mrb[165].mxu1  ;;  %v2642_v46 = vadd.f32 %v7692_v19, %v7687_v34  ;;  %v2882_v19 = vadd.f32 %v7728_v18, %v7802_v11 }
 0x5f1   : > { %v5144_v53 = vpop.eup %5143  ;;  %3660 = vst [vmem:[%s7399_s24 + $0x130] sm:$0xff] %v5142_v12  ;;  %5163 = vpow2.f32 %v3898_v25  ;;  %v7791_v49 = vadd.f32 %v4108_v57, %v4107_v27  ;;  %v3913_v62 = vmul.f32 -1.442695, %v2630_v54  ;;  %v2877_v57 = vadd.f32 %v7714_v4, %v7802_v11 }
 0x5f2   : > { %v5146_v40 = vpop.eup %5145  ;;  %3666 = vst [vmem:[%s7399_s24 + $0x160] sm:$0xff] %v5144_v53  ;;  %5165 = vpow2.f32 %v3899_v61  ;;  %v2887_v4 = vadd.f32 %v7736_v37, %v7802_v11  ;;  %v3839_v37 = vmul.f32 -1.442695, %v2882_v19  ;;  %v3853_v38 = vmul.f32 -1.442695, %v2892_v9 }
 0x5f3   : > { %v5148_v23 = vpop.eup %5147  ;;  %3667 = vst [vmem:[%s7399_s24 + $0x168] sm:$0xff] %v5146_v40  ;;  %5167 = vpow2.f32 %v3905_v39  ;;  %v4110_v30 = vpop.f32.mrb[166].mxu1 }
 0x5f4   : > { %v5150_v0 = vpop.eup %5149  ;;  %v3337_v28 = vadd.f32 1.0, %v5148_v23  ;;  %5169 = vpow2.f32 %v3906_v22  ;;  %v4111_v20 = vpop.f32.mrb[167].mxu1  ;;  %v2872_v22 = vadd.f32 %v7702_v1, %v7802_v11 }
 0x5f5   : > { %v5152_v60 = vpop.eup %5151  ;;  %v3338_v10 = vadd.f32 1.0, %v5150_v0  ;;  %5171 = vpow2.f32 %v3912_v52  ;;  %v7794_v15 = vadd.f32 %v4111_v20, %v4110_v30  ;;  %v3920_v52 = vmul.f32 -1.442695, %v2636_v6 }
 0x5f6   : > { %v5154_v17 = vpop.eup %5153  ;;  %5173 = vrcp.f32 %v3337_v28  ;;  %v3344_v58 = vadd.f32 1.0, %v5152_v60  ;;  %v3927_v0 = vmul.f32 -1.442695, %v2642_v46  ;;  %v3825_v30 = vmul.f32 -1.442695, %v2872_v22 }
 0x5f7   : > { %v5156_v31 = vpop.eup %5155  ;;  %5175 = vrcp.f32 %v3338_v10  ;;  %v3345_v36 = vadd.f32 1.0, %v5154_v17  ;;  %v4113_v44 = vpop.f32.mrb[168].mxu1  ;;  %v3832_v10 = vmul.f32 -1.442695, %v2877_v57  ;;  %v2897_v20 = vadd.f32 %v7743_v42, %v7802_v11 }
 0x5f8   : > { %v5158_v5 = vpop.eup %5157  ;;  %5177 = vrcp.f32 %v3344_v58  ;;  %v3351_v59 = vadd.f32 1.0, %v5156_v31  ;;  %v4114_v35 = vpop.f32.mrb[169].mxu1  ;;  %v2902_v31 = vadd.f32 %v7749_v32, %v7802_v11  ;;  %v2907_v42 = vadd.f32 %v7759_v51, %v7802_v11 }
 0x5f9   : > { %v5160_v13 = vpop.eup %5159  ;;  %5179 = vrcp.f32 %v3345_v36  ;;  %v3352_v29 = vadd.f32 1.0, %v5158_v5  ;;  %v7797_v8 = vadd.f32 %v4114_v35, %v4113_v44  ;;  %v3846_v5 = vmul.f32 -1.442695, %v2887_v4 }
 0x5fa   : > { %v5162_v45 = vpop.eup %5161  ;;  %5181 = vrcp.f32 %v3351_v59  ;;  %v3358_v33 = vadd.f32 1.0, %v5160_v13  ;;  %v3860_v32 = vmul.f32 -1.442695, %v2897_v20  ;;  %v2917_v22 = vadd.f32 %v7785_v16, %v7802_v11 }
 0x5fb   : > { %v5164_v55 = vpop.eup %5163  ;;  %5183 = vrcp.f32 %v3352_v29  ;;  %v3359_v63 = vadd.f32 1.0, %v5162_v45  ;;  %v4116_v7 = vpop.f32.mrb[170].mxu1  ;;  %v3867_v29 = vmul.f32 -1.442695, %v2902_v31  ;;  %v3874_v45 = vmul.f32 -1.442695, %v2907_v42 }
 0x5fc   : > { %v5166_v14 = vpop.eup %5165  ;;  %5185 = vrcp.f32 %v3358_v33  ;;  %v3365_v3 = vadd.f32 1.0, %v5164_v55  ;;  %v4117_v25 = vpop.f32.mrb[171].mxu1  ;;  %v2932_v16 = vadd.f32 %v7797_v8, %v7802_v11 }
 0x5fd   : > { %v5168_v41 = vpop.eup %5167  ;;  %5187 = vrcp.f32 %v3359_v63  ;;  %v3366_v48 = vadd.f32 1.0, %v5166_v14  ;;  %v7806_v43 = vadd.f32 %v4117_v25, %v4116_v7 }
 0x5fe   : > { %v5170_v2 = vpop.eup %5169  ;;  %5189 = vrcp.f32 %v3365_v3  ;;  %v3372_v26 = vadd.f32 1.0, %v5168_v41 }
 0x5ff   : > { %v5172_v50 = vpop.eup %5171  ;;  %5191 = vrcp.f32 %v3366_v48  ;;  %v3373_v61 = vadd.f32 1.0, %v5170_v2  ;;  %v4119_v27 = vpop.f32.mrb[172].mxu1  ;;  %v2937_v4 = vadd.f32 %v7806_v43, %v7802_v11  ;;  %v3909_v43 = vmul.f32 -1.442695, %v2932_v16 }
 0x600   : > { %v5174_v39 = vpop.eup %5173  ;;  %5193 = vrcp.f32 %v3372_v26  ;;  %v3379_v12 = vadd.f32 1.0, %v5172_v50  ;;  %v4120_v40 = vpop.f32.mrb[173].mxu1 }
 0x601   : > { %v5176_v53 = vpop.eup %5175  ;;  %3673 = vst [vmem:[%s7399_s24 + $0x198] sm:$0xff] %v5174_v39  ;;  %5195 = vrcp.f32 %v3373_v61  ;;  %v7820_v1 = vadd.f32 %v4120_v40, %v4119_v27  ;;  %v2912_v39 = vadd.f32 %v7773_v56, %v7802_v11  ;;  %v3916_v20 = vmul.f32 -1.442695, %v2937_v4 }
 0x602   : > { %v5178_v34 = vpop.eup %5177  ;;  %3674 = vst [vmem:[%s7399_s24 + $0x1a0] sm:$0xff] %v5176_v53  ;;  %5197 = vrcp.f32 %v3379_v12 }
 0x603   : > { %v5180_v23 = vpop.eup %5179  ;;  %3680 = vst [vmem:[%s7399_s24 + $0x1d0] sm:$0xff] %v5178_v34  ;;  %5199 = vpow2.f32 %v3913_v62  ;;  %v4122_v60 = vpop.f32.mrb[174].mxu1  ;;  %v2927_v34 = vadd.f32 %v7794_v15, %v7802_v11  ;;  %v3881_v19 = vmul.f32 -1.442695, %v2912_v39 }
 0x604   : > { %v5182_v28 = vpop.eup %5181  ;;  %3681 = vst [vmem:[%s7399_s24 + $0x1d8] sm:$0xff] %v5180_v23  ;;  %5201 = vpow2.f32 %v3919_v24  ;;  %v4123_v17 = vpop.f32.mrb[175].mxu1 }
 0x605   : > { %v5184_v18 = vpop.eup %5183  ;;  %3687 = vst [vmem:[%s7399_s24 + $0x208] sm:$0xff] %v5182_v28  ;;  %5203 = vpow2.f32 %v3920_v52  ;;  %v7834_v47 = vadd.f32 %v4123_v17, %v4122_v60  ;;  %v2922_v52 = vadd.f32 %v7791_v49, %v7802_v11  ;;  %v3888_v49 = vmul.f32 -1.442695, %v2917_v22 }
 0x606   : > { %v5186_v58 = vpop.eup %5185  ;;  %3688 = vst [vmem:[%s7399_s24 + $0x210] sm:$0xff] %v5184_v18  ;;  %5205 = vpow2.f32 %v3926_v21  ;;  %v3902_v8 = vmul.f32 -1.442695, %v2927_v34 }
 0x607   : > { %v5188_v36 = vpop.eup %5187  ;;  %3694 = vst [vmem:[%s7399_s24 + $0x240] sm:$0xff] %v5186_v58  ;;  %5207 = vpow2.f32 %v3927_v0  ;;  %v3895_v15 = vmul.f32 -1.442695, %v2922_v52  ;;  %v2947_v60 = vadd.f32 %v7834_v47, %v7802_v11 }
 0x608   : > { %v5190_v59 = vpop.eup %5189  ;;  %3695 = vst [vmem:[%s7399_s24 + $0x248] sm:$0xff] %v5188_v36  ;;  %5209 = vpow2.f32 %v3825_v30  ;;  %v2942_v30 = vadd.f32 %v7820_v1, %v7802_v11 }
 0x609   : > { %v5192_v44 = vpop.eup %5191  ;;  %3701 = vst [vmem:[%s7399_s24 + $0x278] sm:$0xff] %v5190_v59  ;;  %5211 = vpow2.f32 %v3832_v10  ;;  %v3930_v11 = vmul.f32 -1.442695, %v2947_v60 }
 0x60a   : > { %v5194_v13 = vpop.eup %5193  ;;  %3702 = vst [vmem:[%s7399_s24 + $0x280] sm:$0xff] %v5192_v44  ;;  %5213 = vpow2.f32 %v3839_v37  ;;  %v3923_v17 = vmul.f32 -1.442695, %v2942_v30 }
 0x60b   : > { %v5196_v35 = vpop.eup %5195  ;;  %3708 = vst [vmem:[%s7399_s24 + $0x2b0] sm:$0xff] %v5194_v13  ;;  %5215 = vpow2.f32 %v3846_v5 }
 0x60c   : > { %v5198_v33 = vpop.eup %5197  ;;  %3709 = vst [vmem:[%s7399_s24 + $0x2b8] sm:$0xff] %v5196_v35  ;;  %5217 = vpow2.f32 %v3853_v38 }
 0x60d   : > { %v5200_v51 = vpop.eup %5199  ;;  %3715 = vst [vmem:[%s7399_s24 + $0x2e8] sm:$0xff] %v5198_v33  ;;  %5219 = vpow2.f32 %v3860_v32 }
 0x60e   : > { %v5202_v55 = vpop.eup %5201  ;;  %v3380_v63 = vadd.f32 1.0, %v5200_v51  ;;  %5221 = vpow2.f32 %v3867_v29 }
 0x60f   : > { %v5204_v54 = vpop.eup %5203  ;;  %v3386_v14 = vadd.f32 1.0, %v5202_v55  ;;  %5223 = vpow2.f32 %v3874_v45 }
 0x610   : > { %v5206_v3 = vpop.eup %5205  ;;  %5225 = vrcp.f32 %v3380_v63  ;;  %v3387_v7 = vadd.f32 1.0, %v5204_v54 }
 0x611   : > { %v5208_v41 = vpop.eup %5207  ;;  %5227 = vrcp.f32 %v3386_v14  ;;  %v3393_v48 = vadd.f32 1.0, %v5206_v3 }
 0x612   : > { %v5210_v6 = vpop.eup %5209  ;;  %5229 = vrcp.f32 %v3387_v7  ;;  %v3394_v25 = vadd.f32 1.0, %v5208_v41 }
 0x613   : > { %v5212_v2 = vpop.eup %5211  ;;  %5231 = vrcp.f32 %v3393_v48  ;;  %v3292_v26 = vadd.f32 1.0, %v5210_v6 }
 0x614   : > { %v5214_v50 = vpop.eup %5213  ;;  %5233 = vrcp.f32 %v3394_v25  ;;  %v3299_v61 = vadd.f32 1.0, %v5212_v2 }
 0x615   : > { %v5216_v62 = vpop.eup %5215  ;;  %5235 = vrcp.f32 %v3292_v26  ;;  %v3306_v46 = vadd.f32 1.0, %v5214_v50 }
 0x616   : > { %v5218_v12 = vpop.eup %5217  ;;  %5237 = vrcp.f32 %v3299_v61  ;;  %v3313_v24 = vadd.f32 1.0, %v5216_v62 }
 0x617   : > { %v5220_v27 = vpop.eup %5219  ;;  %5239 = vrcp.f32 %v3306_v46  ;;  %v3320_v53 = vadd.f32 1.0, %v5218_v12 }
 0x618   : > { %v5222_v57 = vpop.eup %5221  ;;  %5241 = vrcp.f32 %v3313_v24  ;;  %v3327_v40 = vadd.f32 1.0, %v5220_v27 }
 0x619   : > { %v5224_v56 = vpop.eup %5223  ;;  %5243 = vrcp.f32 %v3320_v53  ;;  %v3334_v21 = vadd.f32 1.0, %v5222_v57 }
 0x61a   : > { %v5226_v23 = vpop.eup %5225  ;;  %5245 = vrcp.f32 %v3327_v40  ;;  %v3341_v0 = vadd.f32 1.0, %v5224_v56 }
 0x61b   : > { %v5228_v28 = vpop.eup %5227  ;;  %3716 = vst [vmem:[%s7399_s24 + $0x2f0] sm:$0xff] %v5226_v23  ;;  %5247 = vrcp.f32 %v3334_v21 }
 0x61c   : > { %v5230_v9 = vpop.eup %5229  ;;  %3722 = vst [vmem:[%s7399_s24 + $0x320] sm:$0xff] %v5228_v28  ;;  %5249 = vrcp.f32 %v3341_v0 }
 0x61d   : > { %v5232_v18 = vpop.eup %5231  ;;  %3723 = vst [vmem:[%s7399_s24 + $0x328] sm:$0xff] %v5230_v9  ;;  %5251 = vpow2.f32 %v3881_v19 }
 0x61e   : > { %v5234_v10 = vpop.eup %5233  ;;  %3729 = vst [vmem:[%s7399_s24 + $0x358] sm:$0xff] %v5232_v18  ;;  %5253 = vpow2.f32 %v3888_v49 }
 0x61f   : > { %v5236_v1 = vpop.eup %5235  ;;  %3730 = vst [vmem:[%s7399_s24 + $0x360] sm:$0xff] %v5234_v10  ;;  %5255 = vpow2.f32 %v3895_v15 }
 0x620   : > { %v5238_v58 = vpop.eup %5237  ;;  %3628 = vst.msk [vmem:[%s7399_s24 + $0x30] sm:$0xff] %vm715_vm0, %v5236_v1  ;;  %5257 = vpow2.f32 %v3902_v8 }
 0x621   : > { %v5240_v37 = vpop.eup %5239  ;;  %3635 = vst.msk [vmem:[%s7399_s24 + $0x68] sm:$0xff] %vm715_vm0, %v5238_v58  ;;  %5259 = vpow2.f32 %v3909_v43 }
 0x622   : > { %v5242_v31 = vpop.eup %5241  ;;  %3642 = vst.msk [vmem:[%s7399_s24 + $0xa0] sm:$0xff] %vm715_vm0, %v5240_v37  ;;  %5261 = vpow2.f32 %v3916_v20 }
 0x623   : > { %v5244_v47 = vpop.eup %5243  ;;  %3649 = vst.msk [vmem:[%s7399_s24 + $0xd8] sm:$0xff] %vm715_vm0, %v5242_v31  ;;  %5263 = vpow2.f32 %v3923_v17 }
 0x624   : > { %v5246_v36 = vpop.eup %5245  ;;  %3656 = vst.msk [vmem:[%s7399_s24 + $0x110] sm:$0xff] %vm715_vm0, %v5244_v47  ;;  %5265 = vpow2.f32 %v3930_v11 }
 0x625   : > { %v5248_v5 = vpop.eup %5247  ;;  %3663 = vst.msk [vmem:[%s7399_s24 + $0x148] sm:$0xff] %vm715_vm0, %v5246_v36 }
 0x626   : > { %v5250_v42 = vpop.eup %5249  ;;  %3670 = vst.msk [vmem:[%s7399_s24 + $0x180] sm:$0xff] %vm715_vm0, %v5248_v5 }
 0x627   : > { %v5252_v59 = vpop.eup %5251  ;;  %3677 = vst.msk [vmem:[%s7399_s24 + $0x1b8] sm:$0xff] %vm715_vm0, %v5250_v42 }
 0x628   : > { %v5254_v38 = vpop.eup %5253  ;;  %v3348_v44 = vadd.f32 1.0, %v5252_v59 }
 0x629   : > { %v5256_v32 = vpop.eup %5255  ;;  %v3355_v13 = vadd.f32 1.0, %v5254_v38 }
 0x62a   : > { %v5258_v29 = vpop.eup %5257  ;;  %5267 = vrcp.f32 %v3348_v44  ;;  %v3362_v35 = vadd.f32 1.0, %v5256_v32 }
 0x62b   : > { %v5260_v45 = vpop.eup %5259  ;;  %5269 = vrcp.f32 %v3355_v13  ;;  %v3369_v33 = vadd.f32 1.0, %v5258_v29 }
 0x62c   : > { %v5262_v51 = vpop.eup %5261  ;;  %5271 = vrcp.f32 %v3362_v35  ;;  %v3376_v55 = vadd.f32 1.0, %v5260_v45 }
 0x62d   : > { %v5264_v63 = vpop.eup %5263  ;;  %5273 = vrcp.f32 %v3369_v33  ;;  %v3383_v54 = vadd.f32 1.0, %v5262_v51 }
 0x62e   : > { %v5266_v14 = vpop.eup %5265  ;;  %5275 = vrcp.f32 %v3376_v55  ;;  %v3390_v3 = vadd.f32 1.0, %v5264_v63 }
 0x62f   : > { %5277 = vrcp.f32 %v3383_v54  ;;  %v3397_v7 = vadd.f32 1.0, %v5266_v14 }
 0x630   : > { %5279 = vrcp.f32 %v3390_v3 }
 0x631   : > { %5281 = vrcp.f32 %v3397_v7 }
 0x634   : > { %v5268_v41 = vpop.eup %5267 }
 0x635   : > { %v5270_v48 = vpop.eup %5269  ;;  %3684 = vst.msk [vmem:[%s7399_s24 + $0x1f0] sm:$0xff] %vm715_vm0, %v5268_v41 }
 0x636   : > { %v5272_v6 = vpop.eup %5271  ;;  %3691 = vst.msk [vmem:[%s7399_s24 + $0x228] sm:$0xff] %vm715_vm0, %v5270_v48 }
 0x637   : > { %v5274_v25 = vpop.eup %5273  ;;  %3698 = vst.msk [vmem:[%s7399_s24 + $0x260] sm:$0xff] %vm715_vm0, %v5272_v6 }
 0x638   : > { %v5276_v2 = vpop.eup %5275  ;;  %3705 = vst.msk [vmem:[%s7399_s24 + $0x298] sm:$0xff] %vm715_vm0, %v5274_v25 }
 0x639   : > { %v5278_v26 = vpop.eup %5277  ;;  %3712 = vst.msk [vmem:[%s7399_s24 + $0x2d0] sm:$0xff] %vm715_vm0, %v5276_v2 }
 0x63a   : > { %v5280_v50 = vpop.eup %5279  ;;  %3719 = vst.msk [vmem:[%s7399_s24 + $0x308] sm:$0xff] %vm715_vm0, %v5278_v26 }
 0x63b   : > { %v5282_v61 = vpop.eup %5281  ;;  %3726 = vst.msk [vmem:[%s7399_s24 + $0x340] sm:$0xff] %vm715_vm0, %v5280_v50 }
 0x63c   : > { %3733 = vst.msk [vmem:[%s7399_s24 + $0x378] sm:$0xff] %vm715_vm0, %v5282_v61 }
 0x63d PF: > { %s21_s17 = sadd.s32 1, %s5290_s17  }
 0x63e   : > { %p18_p4 = scmp.ge.s32.totalorder %s21_s17, 4  }
 0x640   :  { %20 = sbr.rel (!%p18_p4) target bundleno = 1 (0x1), region = 94 }

</bundles_post_ra>
